<compile_context>
chip_gen: v7x
topology: tpu7x:2x2x1
jax: 0.10.0
libtpu: 0.0.40
codegen_flags: <defaults>
</compile_context>

<pallas_src>
import functools

import jax
import jax.numpy as jnp
from jax import lax
from jax.experimental import pallas as pl
from jax.experimental.pallas import tpu as pltpu

EPS = 1e-5
LANE = 128
# MXU-input dtype (bf16: ~2-3x MXU throughput on v5e/v6e/v7x, half the weight
# DMA).  Accumulation stays f32 via preferred_element_type.
MATMUL_DTYPE = jnp.bfloat16
# HBM storage dtype for the y1/y2/y3 intermediates (chain is HBM-bound).
INTERMEDIATE_DTYPE = jnp.bfloat16


def _vmem_limit_bytes():
    """Generation-aware scoped-VMEM request: ~3/4 of physical (v7x: 48 of
    64 MiB; v5e/v6e: 96 of 128 MiB), capped at 100 MiB."""
    try:
        info = pltpu.get_tpu_info()
        cap = int(getattr(info, "vmem_capacity_bytes", 0)) or (64 << 20)
    except Exception:  # no TPU info available -> conservative default
        cap = 64 << 20
    return int(min(cap * 3 // 4, 100 << 20))


_VMEM_LIMIT = _vmem_limit_bytes()


# ---------------------------------------------------------------------------
# Kernels
# ---------------------------------------------------------------------------
def _conv1x1_stats_kernel(x_ref, w_ref, scale_ref, shift_ref, y_ref, stats_ref,
                          *, apply_input_bn_relu):
    """y = (relu(x*scale+shift) if apply_input_bn_relu else x) @ w, plus
    per-channel partial [sum, sumsq] of y (f32, pre-downcast) for the
    following BatchNorm."""
    x = x_ref[...]                                           # (bm, Cin)
    if apply_input_bn_relu:
        # BN/ReLU in f32 (v5e has no bf16 VPU); x may be stored as bf16.
        x = jnp.maximum(x.astype(jnp.float32) * scale_ref[...] + shift_ref[...],
                        0.0)
    y = jnp.dot(x.astype(MATMUL_DTYPE), w_ref[...],          # w pre-cast bf16
                preferred_element_type=jnp.float32)          # (bm, Cout) f32
    y_ref[...] = y.astype(y_ref.dtype)
    s = jnp.sum(y, axis=0, keepdims=True)                    # (1, Cout)
    sq = jnp.sum(y * y, axis=0, keepdims=True)               # (1, Cout)
    stats_ref[...] = jnp.concatenate([s, sq], axis=0).reshape(1, 2, -1)


def _conv3x3_stats_kernel(a_ref, w_ref, scale_ref, shift_ref, y_ref, stats_ref,
                          slab_ref, *, th):
    """One (H, W, P) plane of y1: relu(bn1(y1)) -> 3x3 stride-1 pad-1 conv,
    plus partial BN stats of the pre-BN conv output.

    The plane is processed in H-chunks of `th` rows.  For each chunk a
    (th+2, W, 3P) bf16 "slab" is staged once in VMEM: lane blocks
    [0:P]/[P:2P]/[2P:3P] hold the activation shifted by dj = -1/0/+1 along W
    (built with pltpu.roll + a border mask, no concatenates), rows are the
    chunk rows plus a 1-row halo each side (halo rows outside the plane are
    zeroed -- only those, never the full scratch).  The conv is then three
    fat (th*W, 3P) @ (3P, P) MXU matmuls (one per di) accumulated in f32.
    """
    _, H, W, P = a_ref.shape
    scale = scale_ref[...]                                   # (1, P) f32
    shift = shift_ref[...]

    def taps(rows_f32):
        # rows_f32: (R, W, P) post-BN/ReLU f32 rows -> (left, center, right)
        # where left[i, j] = rows[i, j-1] (0 at j=0), right[i,j] = rows[i,j+1].
        r = rows_f32.shape[0]
        col = lax.broadcasted_iota(jnp.int32, (r, W, P), 1)
        left = jnp.where(col >= 1, pltpu.roll(rows_f32, shift=1, axis=1), 0.0)
        right = jnp.where(col <= W - 2,
                          pltpu.roll(rows_f32, shift=W - 1, axis=1), 0.0)
        return (left.astype(MATMUL_DTYPE), rows_f32.astype(MATMUL_DTYPE),
                right.astype(MATMUL_DTYPE))

    s_tot = jnp.zeros((1, P), jnp.float32)
    sq_tot = jnp.zeros((1, P), jnp.float32)

    for c in range(H // th):                                 # static (1 chunk for small H)
        r0 = c * th
        lo = max(r0 - 1, 0)                                  # first input row needed
        hi = min(r0 + th + 1, H)                             # one past last row needed
        rows = jnp.maximum(
            a_ref[0, lo:hi].astype(jnp.float32) * scale + shift, 0.0)
        l, ctr, r = taps(rows)

        # Fill the slab (rows r0-1 .. r0+th of the padded plane).
        if r0 == 0:                                          # top halo outside plane
            slab_ref[0:1] = jnp.zeros((1, W, 3 * P), MATMUL_DTYPE)
        if r0 + th == H:                                     # bottom halo outside plane
            slab_ref[th + 1:th + 2] = jnp.zeros((1, W, 3 * P), MATMUL_DTYPE)
        dst = lo - (r0 - 1)                                  # 1 at top edge, else 0
        cnt = hi - lo
        slab_ref[dst:dst + cnt, :, 0:P] = l                  # lane-aligned stores
        slab_ref[dst:dst + cnt, :, P:2 * P] = ctr
        slab_ref[dst:dst + cnt, :, 2 * P:3 * P] = r

        acc = None
        for di in range(3):                                  # static, unrolled
            patches = slab_ref[di:di + th].reshape(th * W, 3 * P)   # bf16
            contrib = jnp.dot(patches, w_ref[di],
                              preferred_element_type=jnp.float32)   # (th*W, P)
            acc = contrib if acc is None else acc + contrib

        y_ref[0, r0:r0 + th] = acc.reshape(th, W, P).astype(y_ref.dtype)
        s_tot = s_tot + jnp.sum(acc, axis=0, keepdims=True)
        sq_tot = sq_tot + jnp.sum(acc * acc, axis=0, keepdims=True)

    stats_ref[...] = jnp.concatenate([s_tot, sq_tot], axis=0).reshape(1, 2, P)


def _bn_residual_relu_kernel(y_ref, x_ref, scale_ref, shift_ref, o_ref):
    o_ref[...] = jnp.maximum(
        y_ref[...].astype(jnp.float32) * scale_ref[...] + shift_ref[...]
        + x_ref[...], 0.0)


# ---------------------------------------------------------------------------
# Tiling helpers
# ---------------------------------------------------------------------------
def _row_block(m, c, target_bytes=8 << 20):
    """Largest row tile bm that divides m, preferring 256-alignment (MXU M
    width on v6e/v7x), sized so a (bm, c) f32 tile is around target_bytes."""
    cap = max(8, min(4096, target_bytes // (4 * c)))
    cap = int(min(cap, m))
    for align in (256, 128, 64, 8, 1):
        bm = (cap // align) * align
        while bm >= align:
            if m % bm == 0:
                return bm
            bm -= align
    return m


def _pick_th(h, w, p, target_bytes=4 << 20):
    """Largest H-chunk th in {h, h/2, h/4, h/8} (divisor of h) whose
    (th+2, w, 3p) bf16 slab fits target_bytes; bounds the in-kernel working
    set for large planes (v7x has only 64 MiB VMEM per TensorCore)."""
    itemsize = jnp.dtype(MATMUL_DTYPE).itemsize
    th = h
    for n_chunks in (1, 2, 4, 8):
        if h % n_chunks == 0:
            th = h // n_chunks
            if (th + 2) * w * 3 * p * itemsize <= target_bytes:
                break
    return th


# ---------------------------------------------------------------------------
# Stage wrappers (one pallas_call each)
# ---------------------------------------------------------------------------
def _conv1x1_stage(x2d, w, scale, shift, *, apply_input_bn_relu, bm, out_dtype):
    m, cin = x2d.shape
    cout = w.shape[1]
    nt = m // bm
    kernel = functools.partial(_conv1x1_stats_kernel,
                               apply_input_bn_relu=apply_input_bn_relu)
    y, stats = pl.pallas_call(
        kernel,
        grid=(nt,),
        in_specs=[
            pl.BlockSpec((bm, cin), lambda i: (i, 0)),
            pl.BlockSpec((cin, cout), lambda i: (0, 0)),     # resident weight
            pl.BlockSpec((1, cin), lambda i: (0, 0)),
            pl.BlockSpec((1, cin), lambda i: (0, 0)),
        ],
        out_specs=[
            pl.BlockSpec((bm, cout), lambda i: (i, 0)),
            pl.BlockSpec((1, 2, cout), lambda i: (i, 0, 0)),  # per-tile stats
        ],
        out_shape=[
            jax.ShapeDtypeStruct((m, cout), out_dtype),
            jax.ShapeDtypeStruct((nt, 2, cout), jnp.float32),
        ],
        compiler_params=pltpu.CompilerParams(
            dimension_semantics=("parallel",),
            vmem_limit_bytes=_VMEM_LIMIT),
        cost_estimate=pl.CostEstimate(
            flops=2 * m * cin * cout,
            transcendentals=0,
            bytes_accessed=int(x2d.dtype.itemsize * m * cin + 2 * cin * cout
                               + jnp.dtype(out_dtype).itemsize * m * cout)),
    )(x2d, w, scale, shift)
    return y, stats


def _conv3x3_stage(a, w2f, scale, shift):
    n, h, w, p = a.shape
    th = _pick_th(h, w, p)
    kernel = functools.partial(_conv3x3_stats_kernel, th=th)
    y, stats = pl.pallas_call(
        kernel,
        grid=(n,),
        in_specs=[
            pl.BlockSpec((1, h, w, p), lambda i: (i, 0, 0, 0)),
            pl.BlockSpec((3, 3 * p, p), lambda i: (0, 0, 0)),  # resident weight
            pl.BlockSpec((1, p), lambda i: (0, 0)),
            pl.BlockSpec((1, p), lambda i: (0, 0)),
        ],
        out_specs=[
            pl.BlockSpec((1, h, w, p), lambda i: (i, 0, 0, 0)),
            pl.BlockSpec((1, 2, p), lambda i: (i, 0, 0)),
        ],
        out_shape=[
            jax.ShapeDtypeStruct((n, h, w, p), INTERMEDIATE_DTYPE),
            jax.ShapeDtypeStruct((n, 2, p), jnp.float32),
        ],
        scratch_shapes=[pltpu.VMEM((th + 2, w, 3 * p), MATMUL_DTYPE)],
        compiler_params=pltpu.CompilerParams(
            dimension_semantics=("parallel",),
            vmem_limit_bytes=_VMEM_LIMIT),
        cost_estimate=pl.CostEstimate(
            flops=2 * n * h * w * 9 * p * p,
            transcendentals=0,
            bytes_accessed=int(2 * (2 * n * h * w * p + 9 * p * p))),
    )(a, w2f, scale, shift)
    return y, stats


def _residual_stage(y2d, x2d, scale, shift, *, bm):
    m, c = y2d.shape
    nt = m // bm
    return pl.pallas_call(
        _bn_residual_relu_kernel,
        grid=(nt,),
        in_specs=[
            pl.BlockSpec((bm, c), lambda i: (i, 0)),
            pl.BlockSpec((bm, c), lambda i: (i, 0)),
            pl.BlockSpec((1, c), lambda i: (0, 0)),
            pl.BlockSpec((1, c), lambda i: (0, 0)),
        ],
        out_specs=pl.BlockSpec((bm, c), lambda i: (i, 0)),
        out_shape=jax.ShapeDtypeStruct((m, c), jnp.float32),
        compiler_params=pltpu.CompilerParams(
            dimension_semantics=("parallel",),
            vmem_limit_bytes=_VMEM_LIMIT),
        cost_estimate=pl.CostEstimate(
            flops=3 * m * c,
            transcendentals=0,
            bytes_accessed=int(4 * 2 * m * c + 2 * m * c)),
    )(y2d, x2d, scale, shift)


def _fold_bn(stats, count, gamma, beta):
    """stats: (tiles, 2, C) partial [sum, sumsq] -> per-channel (scale, shift)
    for y_norm = y * scale + shift (training-mode BN, biased variance).
    Conv outputs here are (near) zero-mean (bias=False) so E[y^2]-E[y]^2 is
    well conditioned; TODO(synk): use a shifted/Welford sumsq after biased
    layers."""
    total = jnp.sum(stats[:, 0, :], axis=0)
    total_sq = jnp.sum(stats[:, 1, :], axis=0)
    mean = total / count
    var = jnp.maximum(total_sq / count - mean * mean, 0.0)
    scale = gamma * lax.rsqrt(var + EPS)
    shift = beta - mean * scale
    return scale.reshape(1, -1), shift.reshape(1, -1)


# ---------------------------------------------------------------------------
# Forward passes
# ---------------------------------------------------------------------------
def bottleneck_forward_nhwc(x, params):
    """x: (N, H, W, Cin_pad) NHWC f32 with channel dim padded to a 128-multiple.
    params: output of prepare_params.  Returns (N, H, W, Cout_pad) f32."""
    w1, w2f, w3, g1, b1, g2, b2, g3, b3 = params
    n, h, w, cin = x.shape
    p = w1.shape[1]
    cout = w3.shape[1]
    m = n * h * w
    bm = _row_block(m, max(cin, p, cout), target_bytes=8 << 20)
    bm_res = _row_block(m, cout, target_bytes=16 << 20)

    x2d = x.reshape(m, cin)
    one = jnp.ones((1, cin), jnp.float32)
    zero = jnp.zeros((1, cin), jnp.float32)

    # conv1 (1x1) + BN1 stats
    y1, st1 = _conv1x1_stage(x2d, w1, one, zero, apply_input_bn_relu=False,
                             bm=bm, out_dtype=INTERMEDIATE_DTYPE)
    sc1, sh1 = _fold_bn(st1, m, g1, b1)

    # relu(bn1) -> conv2 (3x3, pad=1, stride=1) + BN2 stats
    y2, st2 = _conv3x3_stage(y1.reshape(n, h, w, p), w2f, sc1, sh1)
    sc2, sh2 = _fold_bn(st2, m, g2, b2)

    # relu(bn2) -> conv3 (1x1) + BN3 stats
    y3, st3 = _conv1x1_stage(y2.reshape(m, p), w3, sc2, sh2,
                             apply_input_bn_relu=True, bm=bm,
                             out_dtype=INTERMEDIATE_DTYPE)
    sc3, sh3 = _fold_bn(st3, m, g3, b3)

    # bn3 + residual add (downsample=None) + relu
    out = _residual_stage(y3, x2d, sc3, sh3, bm=bm_res)
    return out.reshape(n, h, w, cout)


def _round_up(n, mult=LANE):
    return ((n + mult - 1) // mult) * mult


def _pad_axis(a, axis, target):
    if a.shape[axis] == target:
        return a
    widths = [(0, 0)] * a.ndim
    widths[axis] = (0, target - a.shape[axis])
    return jnp.pad(a, widths)


def prepare_params(w1_oihw, w2_oihw, w3_oihw, g1, b1, g2, b2, g3, b3):
    """Convert PyTorch OIHW weights to kernel layout, zero-pad all channel
    dims to multiples of 128, and pre-cast conv weights to bf16 (MXU input
    dtype).  Padded channels carry exact zeros end-to-end (gamma padded with
    0), so they never contaminate real channels."""
    planes, inplanes = w1_oihw.shape[0], w1_oihw.shape[1]
    outplanes = w3_oihw.shape[0]
    cin_p, p_p, cout_p = _round_up(inplanes), _round_up(planes), _round_up(outplanes)

    w1 = _pad_axis(_pad_axis(jnp.transpose(w1_oihw[:, :, 0, 0], (1, 0)), 0, cin_p),
                   1, p_p).astype(MATMUL_DTYPE)
    w3 = _pad_axis(_pad_axis(jnp.transpose(w3_oihw[:, :, 0, 0], (1, 0)), 0, p_p),
                   1, cout_p).astype(MATMUL_DTYPE)
    w2 = jnp.transpose(w2_oihw, (2, 3, 1, 0))                 # (3, 3, Cin, Cout)
    w2 = _pad_axis(_pad_axis(w2, 2, p_p), 3, p_p)
    w2f = w2.reshape(3, 3 * p_p, p_p).astype(MATMUL_DTYPE)    # fold dj into K

    pads = lambda v, t: _pad_axis(v.astype(jnp.float32), 0, t)
    return (w1, w2f, w3,
            pads(g1, p_p), pads(b1, p_p),
            pads(g2, p_p), pads(b2, p_p),
            pads(g3, cout_p), pads(b3, cout_p))


def bottleneck_forward_nchw(x_nchw, params, out_channels):
    """PyTorch-interface adapter (NCHW in/out).  In an NHWC-native model the
    transposes and channel padding below disappear entirely."""
    cin_p = params[0].shape[0]
    x = jnp.transpose(x_nchw, (0, 2, 3, 1))
    x = _pad_axis(x, 3, cin_p)
    out = bottleneck_forward_nhwc(x, params)
    return jnp.transpose(out[..., :out_channels], (0, 3, 1, 2))


# ---------------- pure-JAX reference (NCHW, mirrors the PyTorch module) -----
def _ref_forward(x, w1_oihw, w2_oihw, w3_oihw, g1, b1, g2, b2, g3, b3):
    def conv(x, w, pad=0):
        return lax.conv_general_dilated(
            x, w, (1, 1), [(pad, pad), (pad, pad)],
            dimension_numbers=("NCHW", "OIHW", "NCHW"))

    def bn(x, g, b):
        mean = jnp.mean(x, axis=(0, 2, 3), keepdims=True)
        var = jnp.mean((x - mean) ** 2, axis=(0, 2, 3), keepdims=True)
        return ((x - mean) * lax.rsqrt(var + EPS) * g.reshape(1, -1, 1, 1)
                + b.reshape(1, -1, 1, 1))

    out = jax.nn.relu(bn(conv(x, w1_oihw), g1, b1))
    out = jax.nn.relu(bn(conv(out, w2_oihw, pad=1), g2, b2))
    out = bn(conv(out, w3_oihw), g3, b3)
    return jax.nn.relu(out + x)


if __name__ == "__main__":
    # Small shapes: stride=1 & downsample=None requires inplanes == planes*4.
    N, H, W = 2, 16, 16
    planes = 4
    inplanes = planes * 4  # = 16 (Bottleneck.expansion)

    key = jax.random.PRNGKey(0)
    kx, k1, k2, k3 = jax.random.split(key, 4)

    x = jax.random.normal(kx, (N, inplanes, H, W), jnp.float32)

    # PyTorch OIHW conv weights (deterministic synthetic init, bias=False).
    w1_oihw = 0.1 * jax.random.normal(k1, (planes, inplanes, 1, 1), jnp.float32)
    w2_oihw = 0.1 * jax.random.normal(k2, (planes, planes, 3, 3), jnp.float32)
    w3_oihw = 0.1 * jax.random.normal(k3, (planes * 4, planes, 1, 1), jnp.float32)

    # BatchNorm affine params: PyTorch default init (weight=1, bias=0).
    g1 = jnp.ones((planes,), jnp.float32);      b1 = jnp.zeros((planes,), jnp.float32)
    g2 = jnp.ones((planes,), jnp.float32);      b2 = jnp.zeros((planes,), jnp.float32)
    g3 = jnp.ones((planes * 4,), jnp.float32);  b3 = jnp.zeros((planes * 4,), jnp.float32)

    params = prepare_params(w1_oihw, w2_oihw, w3_oihw, g1, b1, g2, b2, g3, b3)

    fwd = jax.jit(bottleneck_forward_nchw, static_argnums=2)
    out = jax.block_until_ready(fwd(x, params, inplanes))

    ref = jax.block_until_ready(
        _ref_forward(x, w1_oihw, w2_oihw, w3_oihw, g1, b1, g2, b2, g3, b3))

    assert out.shape == (N, inplanes, H, W)
    # Tolerance sized for end-to-end bf16 (MXU inputs + HBM intermediates)
    # vs an f32 reference across 3 conv+BN stages; structural bugs give O(1).
    err = float(jnp.max(jnp.abs(out - ref)))
    assert jnp.allclose(out, ref, atol=7.5e-2, rtol=5e-2), f"max abs diff {err}"

    print("KERNEL_OK")
</pallas_src>

<mosaic_0001>
module attributes {stable_mosaic.version = 11 : i64} {
  func.func @_conv1x1_stats_kernel(%arg0: i32, %arg1: memref<512x128xf32, #tpu.memory_space<vmem>>, %arg2: memref<128x128xbf16, #tpu.memory_space<vmem>>, %arg3: memref<1x128xf32, #tpu.memory_space<vmem>>, %arg4: memref<1x128xf32, #tpu.memory_space<vmem>>, %arg5: memref<512x128xbf16, #tpu.memory_space<vmem>>, %arg6: memref<1x2x128xf32, #tpu.memory_space<vmem>>) attributes {dimension_semantics = [#tpu.dimension_semantics<parallel>], iteration_bounds = array<i64: 1>, scalar_prefetch = 0 : i64, scratch_operands = 0 : i64, tpu.core_type = #tpu.core_type<tc>, window_params = [{transform_indices = @transform_0, window_bounds = array<i64: 512, 128>}, {pipeline_mode = #tpu.pipeline_mode<synchronous>, transform_indices = @transform_1, window_bounds = array<i64: 128, 128>}, {pipeline_mode = #tpu.pipeline_mode<synchronous>, transform_indices = @transform_2, window_bounds = array<i64: 1, 128>}, {pipeline_mode = #tpu.pipeline_mode<synchronous>, transform_indices = @transform_3, window_bounds = array<i64: 1, 128>}, {transform_indices = @transform_4, window_bounds = array<i64: 512, 128>}, {transform_indices = @transform_5, window_bounds = array<i64: 1, 2, 128>}]} {
    %c0 = arith.constant 0 : index
    %c0_0 = arith.constant 0 : index
    %0 = vector.load %arg1[%c0, %c0_0] : memref<512x128xf32, #tpu.memory_space<vmem>>, vector<512x128xf32>
    %1 = arith.truncf %0 : vector<512x128xf32> to vector<512x128xbf16>
    %c0_1 = arith.constant 0 : index
    %c0_2 = arith.constant 0 : index
    %2 = vector.load %arg2[%c0_1, %c0_2] : memref<128x128xbf16, #tpu.memory_space<vmem>>, vector<128x128xbf16>
    %cst = arith.constant dense<0.000000e+00> : vector<512x128xf32>
    %3 = tpu.matmul %1, %2, %cst {dimension_numbers = #tpu.dot_dimension_numbers<[1], [0], [0], [1], [0, 0, 1, 1], [], []>} : vector<512x128xbf16>, vector<128x128xbf16>, vector<512x128xf32> -> vector<512x128xf32>
    %4 = arith.truncf %3 : vector<512x128xf32> to vector<512x128xbf16>
    %c0_3 = arith.constant 0 : index
    %c0_4 = arith.constant 0 : index
    %5 = vector.load %arg5[%c0_3, %c0_4] : memref<512x128xbf16, #tpu.memory_space<vmem>>, vector<512x128xbf16>
    tpu.vector_store %arg5[%c0_3, %c0_4], %4 {strides = array<i32>} : memref<512x128xbf16, #tpu.memory_space<vmem>>, vector<512x128xbf16>,
    %cst_5 = arith.constant dense<0.000000e+00> : vector<128xf32>
    %6 = vector.multi_reduction <add>, %3, %cst_5 [0] : vector<512x128xf32> to vector<128xf32>
    %7 = vector.shape_cast %6 : vector<128xf32> to vector<1x128xf32>
    %8 = arith.mulf %3, %3 : vector<512x128xf32>
    %cst_6 = arith.constant dense<0.000000e+00> : vector<128xf32>
    %9 = vector.multi_reduction <add>, %8, %cst_6 [0] : vector<512x128xf32> to vector<128xf32>
    %10 = vector.shape_cast %9 : vector<128xf32> to vector<1x128xf32>
    %11 = tpu.concatenate %7, %10 in 0 : vector<1x128xf32>, vector<1x128xf32> -> vector<2x128xf32>
    %12 = vector.shape_cast %11 : vector<2x128xf32> to vector<1x2x128xf32>
    %c0_7 = arith.constant 0 : index
    %c0_8 = arith.constant 0 : index
    %c0_9 = arith.constant 0 : index
    %13 = vector.load %arg6[%c0_7, %c0_8, %c0_9] : memref<1x2x128xf32, #tpu.memory_space<vmem>>, vector<1x2x128xf32>
    tpu.vector_store %arg6[%c0_7, %c0_8, %c0_9], %12 {strides = array<i32>} : memref<1x2x128xf32, #tpu.memory_space<vmem>>, vector<1x2x128xf32>,
    return
  }
  func.func @transform_0(%arg0: i32) -> (i32, i32) {
    %c0_i32 = arith.constant 0 : i32
    %c0_i32_0 = arith.constant 0 : i32
    return %arg0, %c0_i32 : i32, i32
  }
  func.func @transform_1(%arg0: i32) -> (i32, i32) {
    %c0_i32 = arith.constant 0 : i32
    %c0_i32_0 = arith.constant 0 : i32
    %c0_i32_1 = arith.constant 0 : i32
    return %c0_i32, %c0_i32_0 : i32, i32
  }
  func.func @transform_2(%arg0: i32) -> (i32, i32) {
    %c0_i32 = arith.constant 0 : i32
    %c0_i32_0 = arith.constant 0 : i32
    %c0_i32_1 = arith.constant 0 : i32
    return %c0_i32, %c0_i32_0 : i32, i32
  }
  func.func @transform_3(%arg0: i32) -> (i32, i32) {
    %c0_i32 = arith.constant 0 : i32
    %c0_i32_0 = arith.constant 0 : i32
    %c0_i32_1 = arith.constant 0 : i32
    return %c0_i32, %c0_i32_0 : i32, i32
  }
  func.func @transform_4(%arg0: i32) -> (i32, i32) {
    %c0_i32 = arith.constant 0 : i32
    %c0_i32_0 = arith.constant 0 : i32
    return %arg0, %c0_i32 : i32, i32
  }
  func.func @transform_5(%arg0: i32) -> (i32, i32, i32) {
    %c0_i32 = arith.constant 0 : i32
    %c0_i32_0 = arith.constant 0 : i32
    %c0_i32_1 = arith.constant 0 : i32
    return %arg0, %c0_i32, %c0_i32_0 : i32, i32, i32
  }
}

module attributes {stable_mosaic.version = 11 : i64} {
  func.func @_conv1x1_stats_kernel(%arg0: i32, %arg1: memref<512x128xbf16, #tpu.memory_space<vmem>>, %arg2: memref<128x128xbf16, #tpu.memory_space<vmem>>, %arg3: memref<1x128xf32, #tpu.memory_space<vmem>>, %arg4: memref<1x128xf32, #tpu.memory_space<vmem>>, %arg5: memref<512x128xbf16, #tpu.memory_space<vmem>>, %arg6: memref<1x2x128xf32, #tpu.memory_space<vmem>>) attributes {dimension_semantics = [#tpu.dimension_semantics<parallel>], iteration_bounds = array<i64: 1>, scalar_prefetch = 0 : i64, scratch_operands = 0 : i64, tpu.core_type = #tpu.core_type<tc>, window_params = [{transform_indices = @transform_0, window_bounds = array<i64: 512, 128>}, {pipeline_mode = #tpu.pipeline_mode<synchronous>, transform_indices = @transform_1, window_bounds = array<i64: 128, 128>}, {pipeline_mode = #tpu.pipeline_mode<synchronous>, transform_indices = @transform_2, window_bounds = array<i64: 1, 128>}, {pipeline_mode = #tpu.pipeline_mode<synchronous>, transform_indices = @transform_3, window_bounds = array<i64: 1, 128>}, {transform_indices = @transform_4, window_bounds = array<i64: 512, 128>}, {transform_indices = @transform_5, window_bounds = array<i64: 1, 2, 128>}]} {
    %c0 = arith.constant 0 : index
    %c0_0 = arith.constant 0 : index
    %0 = vector.load %arg1[%c0, %c0_0] : memref<512x128xbf16, #tpu.memory_space<vmem>>, vector<512x128xbf16>
    %1 = arith.extf %0 : vector<512x128xbf16> to vector<512x128xf32>
    %c0_1 = arith.constant 0 : index
    %c0_2 = arith.constant 0 : index
    %2 = vector.load %arg3[%c0_1, %c0_2] : memref<1x128xf32, #tpu.memory_space<vmem>>, vector<1x128xf32>
    %3 = vector.broadcast %2 : vector<1x128xf32> to vector<512x128xf32>
    %4 = arith.mulf %1, %3 : vector<512x128xf32>
    %c0_3 = arith.constant 0 : index
    %c0_4 = arith.constant 0 : index
    %5 = vector.load %arg4[%c0_3, %c0_4] : memref<1x128xf32, #tpu.memory_space<vmem>>, vector<1x128xf32>
    %6 = vector.broadcast %5 : vector<1x128xf32> to vector<512x128xf32>
    %7 = arith.addf %4, %6 : vector<512x128xf32>
    %cst = arith.constant 0.000000e+00 : f32
    %8 = vector.broadcast %cst : f32 to vector<512x128xf32>
    %9 = arith.maximumf %7, %8 : vector<512x128xf32>
    %10 = arith.truncf %9 : vector<512x128xf32> to vector<512x128xbf16>
    %c0_5 = arith.constant 0 : index
    %c0_6 = arith.constant 0 : index
    %11 = vector.load %arg2[%c0_5, %c0_6] : memref<128x128xbf16, #tpu.memory_space<vmem>>, vector<128x128xbf16>
    %cst_7 = arith.constant dense<0.000000e+00> : vector<512x128xf32>
    %12 = tpu.matmul %10, %11, %cst_7 {dimension_numbers = #tpu.dot_dimension_numbers<[1], [0], [0], [1], [0, 0, 1, 1], [], []>} : vector<512x128xbf16>, vector<128x128xbf16>, vector<512x128xf32> -> vector<512x128xf32>
    %13 = arith.truncf %12 : vector<512x128xf32> to vector<512x128xbf16>
    %c0_8 = arith.constant 0 : index
    %c0_9 = arith.constant 0 : index
    %14 = vector.load %arg5[%c0_8, %c0_9] : memref<512x128xbf16, #tpu.memory_space<vmem>>, vector<512x128xbf16>
    tpu.vector_store %arg5[%c0_8, %c0_9], %13 {strides = array<i32>} : memref<512x128xbf16, #tpu.memory_space<vmem>>, vector<512x128xbf16>,
    %cst_10 = arith.constant dense<0.000000e+00> : vector<128xf32>
    %15 = vector.multi_reduction <add>, %12, %cst_10 [0] : vector<512x128xf32> to vector<128xf32>
    %16 = vector.shape_cast %15 : vector<128xf32> to vector<1x128xf32>
    %17 = arith.mulf %12, %12 : vector<512x128xf32>
    %cst_11 = arith.constant dense<0.000000e+00> : vector<128xf32>
    %18 = vector.multi_reduction <add>, %17, %cst_11 [0] : vector<512x128xf32> to vector<128xf32>
    %19 = vector.shape_cast %18 : vector<128xf32> to vector<1x128xf32>
    %20 = tpu.concatenate %16, %19 in 0 : vector<1x128xf32>, vector<1x128xf32> -> vector<2x128xf32>
    %21 = vector.shape_cast %20 : vector<2x128xf32> to vector<1x2x128xf32>
    %c0_12 = arith.constant 0 : index
    %c0_13 = arith.constant 0 : index
    %c0_14 = arith.constant 0 : index
    %22 = vector.load %arg6[%c0_12, %c0_13, %c0_14] : memref<1x2x128xf32, #tpu.memory_space<vmem>>, vector<1x2x128xf32>
    tpu.vector_store %arg6[%c0_12, %c0_13, %c0_14], %21 {strides = array<i32>} : memref<1x2x128xf32, #tpu.memory_space<vmem>>, vector<1x2x128xf32>,
    return
  }
  func.func @transform_0(%arg0: i32) -> (i32, i32) {
    %c0_i32 = arith.constant 0 : i32
    %c0_i32_0 = arith.constant 0 : i32
    return %arg0, %c0_i32 : i32, i32
  }
  func.func @transform_1(%arg0: i32) -> (i32, i32) {
    %c0_i32 = arith.constant 0 : i32
    %c0_i32_0 = arith.constant 0 : i32
    %c0_i32_1 = arith.constant 0 : i32
    return %c0_i32, %c0_i32_0 : i32, i32
  }
  func.func @transform_2(%arg0: i32) -> (i32, i32) {
    %c0_i32 = arith.constant 0 : i32
    %c0_i32_0 = arith.constant 0 : i32
    %c0_i32_1 = arith.constant 0 : i32
    return %c0_i32, %c0_i32_0 : i32, i32
  }
  func.func @transform_3(%arg0: i32) -> (i32, i32) {
    %c0_i32 = arith.constant 0 : i32
    %c0_i32_0 = arith.constant 0 : i32
    %c0_i32_1 = arith.constant 0 : i32
    return %c0_i32, %c0_i32_0 : i32, i32
  }
  func.func @transform_4(%arg0: i32) -> (i32, i32) {
    %c0_i32 = arith.constant 0 : i32
    %c0_i32_0 = arith.constant 0 : i32
    return %arg0, %c0_i32 : i32, i32
  }
  func.func @transform_5(%arg0: i32) -> (i32, i32, i32) {
    %c0_i32 = arith.constant 0 : i32
    %c0_i32_0 = arith.constant 0 : i32
    %c0_i32_1 = arith.constant 0 : i32
    return %arg0, %c0_i32, %c0_i32_0 : i32, i32, i32
  }
}

module attributes {stable_mosaic.version = 11 : i64} {
  func.func @_conv3x3_stats_kernel(%arg0: i32, %arg1: memref<1x16x16x128xbf16, #tpu.memory_space<vmem>>, %arg2: memref<3x384x128xbf16, #tpu.memory_space<vmem>>, %arg3: memref<1x128xf32, #tpu.memory_space<vmem>>, %arg4: memref<1x128xf32, #tpu.memory_space<vmem>>, %arg5: memref<1x16x16x128xbf16, #tpu.memory_space<vmem>>, %arg6: memref<1x2x128xf32, #tpu.memory_space<vmem>>, %arg7: memref<18x16x384xbf16, #tpu.memory_space<vmem>>) attributes {dimension_semantics = [#tpu.dimension_semantics<parallel>], iteration_bounds = array<i64: 2>, scalar_prefetch = 0 : i64, scratch_operands = 1 : i64, tpu.core_type = #tpu.core_type<tc>, window_params = [{transform_indices = @transform_0, window_bounds = array<i64: 1, 16, 16, 128>}, {pipeline_mode = #tpu.pipeline_mode<synchronous>, transform_indices = @transform_1, window_bounds = array<i64: 3, 384, 128>}, {pipeline_mode = #tpu.pipeline_mode<synchronous>, transform_indices = @transform_2, window_bounds = array<i64: 1, 128>}, {pipeline_mode = #tpu.pipeline_mode<synchronous>, transform_indices = @transform_3, window_bounds = array<i64: 1, 128>}, {transform_indices = @transform_4, window_bounds = array<i64: 1, 16, 16, 128>}, {transform_indices = @transform_5, window_bounds = array<i64: 1, 2, 128>}]} {
    %c0 = arith.constant 0 : index
    %c0_0 = arith.constant 0 : index
    %0 = vector.load %arg3[%c0, %c0_0] : memref<1x128xf32, #tpu.memory_space<vmem>>, vector<1x128xf32>
    %c0_1 = arith.constant 0 : index
    %c0_2 = arith.constant 0 : index
    %1 = vector.load %arg4[%c0_1, %c0_2] : memref<1x128xf32, #tpu.memory_space<vmem>>, vector<1x128xf32>
    %cst = arith.constant 0.000000e+00 : f32
    %2 = vector.broadcast %cst : f32 to vector<1x128xf32>
    %cst_3 = arith.constant 0.000000e+00 : f32
    %3 = vector.broadcast %cst_3 : f32 to vector<1x128xf32>
    %c0_4 = arith.constant 0 : index
    %c0_5 = arith.constant 0 : index
    %c0_6 = arith.constant 0 : index
    %c0_7 = arith.constant 0 : index
    %4 = vector.load %arg1[%c0_4, %c0_5, %c0_6, %c0_7] : memref<1x16x16x128xbf16, #tpu.memory_space<vmem>>, vector<1x16x16x128xbf16>
    %5 = vector.shape_cast %4 : vector<1x16x16x128xbf16> to vector<16x16x128xbf16>
    %6 = arith.extf %5 : vector<16x16x128xbf16> to vector<16x16x128xf32>
    %7 = vector.shape_cast %0 : vector<1x128xf32> to vector<1x1x128xf32>
    %8 = vector.broadcast %7 : vector<1x1x128xf32> to vector<16x16x128xf32>
    %9 = arith.mulf %6, %8 : vector<16x16x128xf32>
    %10 = vector.shape_cast %1 : vector<1x128xf32> to vector<1x1x128xf32>
    %11 = vector.broadcast %10 : vector<1x1x128xf32> to vector<16x16x128xf32>
    %12 = arith.addf %9, %11 : vector<16x16x128xf32>
    %cst_8 = arith.constant 0.000000e+00 : f32
    %13 = vector.broadcast %cst_8 : f32 to vector<16x16x128xf32>
    %14 = arith.maximumf %12, %13 : vector<16x16x128xf32>
    %15 = tpu.iota {dimensions = array<i32: 1>} : vector<16x16x128xi32>
    %c1_i32 = arith.constant 1 : i32
    %16 = vector.broadcast %c1_i32 : i32 to vector<16x16x128xi32>
    %17 = arith.cmpi sge, %15, %16 : vector<16x16x128xi32>
    %c1_i32_9 = arith.constant 1 : i32
    %18 = tpu.dynamic_rotate %14 by %c1_i32_9 dim 1 : vector<16x16x128xf32>, i32 -> vector<16x16x128xf32>
    %cst_10 = arith.constant 0.000000e+00 : f32
    %19 = vector.broadcast %cst_10 : f32 to vector<16x16x128xf32>
    %20 = arith.select %17, %18, %19 : vector<16x16x128xi1>, vector<16x16x128xf32>
    %c14_i32 = arith.constant 14 : i32
    %21 = vector.broadcast %c14_i32 : i32 to vector<16x16x128xi32>
    %22 = arith.cmpi sle, %15, %21 : vector<16x16x128xi32>
    %c15_i32 = arith.constant 15 : i32
    %23 = tpu.dynamic_rotate %14 by %c15_i32 dim 1 : vector<16x16x128xf32>, i32 -> vector<16x16x128xf32>
    %cst_11 = arith.constant 0.000000e+00 : f32
    %24 = vector.broadcast %cst_11 : f32 to vector<16x16x128xf32>
    %25 = arith.select %22, %23, %24 : vector<16x16x128xi1>, vector<16x16x128xf32>
    %26 = arith.truncf %20 : vector<16x16x128xf32> to vector<16x16x128xbf16>
    %27 = arith.truncf %14 : vector<16x16x128xf32> to vector<16x16x128xbf16>
    %28 = arith.truncf %25 : vector<16x16x128xf32> to vector<16x16x128xbf16>
    %cst_12 = arith.constant 0.000000e+00 : bf16
    %29 = vector.broadcast %cst_12 : bf16 to vector<1x16x384xbf16>
    %c0_13 = arith.constant 0 : index
    %c0_14 = arith.constant 0 : index
    %c0_15 = arith.constant 0 : index
    %30 = vector.load %arg7[%c0_13, %c0_14, %c0_15] : memref<18x16x384xbf16, #tpu.memory_space<vmem>>, vector<1x16x384xbf16>
    tpu.vector_store %arg7[%c0_13, %c0_14, %c0_15], %29 {strides = array<i32>} : memref<18x16x384xbf16, #tpu.memory_space<vmem>>, vector<1x16x384xbf16>,
    %cst_16 = arith.constant 0.000000e+00 : bf16
    %31 = vector.broadcast %cst_16 : bf16 to vector<1x16x384xbf16>
    %c17 = arith.constant 17 : index
    %c0_17 = arith.constant 0 : index
    %c0_18 = arith.constant 0 : index
    %32 = vector.load %arg7[%c17, %c0_17, %c0_18] : memref<18x16x384xbf16, #tpu.memory_space<vmem>>, vector<1x16x384xbf16>
    tpu.vector_store %arg7[%c17, %c0_17, %c0_18], %31 {strides = array<i32>} : memref<18x16x384xbf16, #tpu.memory_space<vmem>>, vector<1x16x384xbf16>,
    %c1 = arith.constant 1 : index
    %c0_19 = arith.constant 0 : index
    %c0_20 = arith.constant 0 : index
    %33 = vector.load %arg7[%c1, %c0_19, %c0_20] : memref<18x16x384xbf16, #tpu.memory_space<vmem>>, vector<16x16x128xbf16>
    tpu.vector_store %arg7[%c1, %c0_19, %c0_20], %26 {strides = array<i32>} : memref<18x16x384xbf16, #tpu.memory_space<vmem>>, vector<16x16x128xbf16>,
    %c1_21 = arith.constant 1 : index
    %c0_22 = arith.constant 0 : index
    %c128 = arith.constant 128 : index
    %34 = vector.load %arg7[%c1_21, %c0_22, %c128] : memref<18x16x384xbf16, #tpu.memory_space<vmem>>, vector<16x16x128xbf16>
    tpu.vector_store %arg7[%c1_21, %c0_22, %c128], %27 {strides = array<i32>} : memref<18x16x384xbf16, #tpu.memory_space<vmem>>, vector<16x16x128xbf16>,
    %c1_23 = arith.constant 1 : index
    %c0_24 = arith.constant 0 : index
    %c256 = arith.constant 256 : index
    %35 = vector.load %arg7[%c1_23, %c0_24, %c256] : memref<18x16x384xbf16, #tpu.memory_space<vmem>>, vector<16x16x128xbf16>
    tpu.vector_store %arg7[%c1_23, %c0_24, %c256], %28 {strides = array<i32>} : memref<18x16x384xbf16, #tpu.memory_space<vmem>>, vector<16x16x128xbf16>,
    %c0_25 = arith.constant 0 : index
    %c0_26 = arith.constant 0 : index
    %c0_27 = arith.constant 0 : index
    %36 = vector.load %arg7[%c0_25, %c0_26, %c0_27] : memref<18x16x384xbf16, #tpu.memory_space<vmem>>, vector<16x16x384xbf16>
    %37 = vector.shape_cast %36 : vector<16x16x384xbf16> to vector<256x384xbf16>
    %c0_28 = arith.constant 0 : index
    %c0_29 = arith.constant 0 : index
    %c0_30 = arith.constant 0 : index
    %38 = vector.load %arg2[%c0_28, %c0_29, %c0_30] : memref<3x384x128xbf16, #tpu.memory_space<vmem>>, vector<1x384x128xbf16>
    %39 = vector.shape_cast %38 : vector<1x384x128xbf16> to vector<384x128xbf16>
    %cst_31 = arith.constant dense<0.000000e+00> : vector<256x128xf32>
    %40 = tpu.matmul %37, %39, %cst_31 {dimension_numbers = #tpu.dot_dimension_numbers<[1], [0], [0], [1], [0, 0, 1, 1], [], []>} : vector<256x384xbf16>, vector<384x128xbf16>, vector<256x128xf32> -> vector<256x128xf32>
    %c1_32 = arith.constant 1 : index
    %c0_33 = arith.constant 0 : index
    %c0_34 = arith.constant 0 : index
    %41 = vector.load %arg7[%c1_32, %c0_33, %c0_34] : memref<18x16x384xbf16, #tpu.memory_space<vmem>>, vector<16x16x384xbf16>
    %42 = vector.shape_cast %41 : vector<16x16x384xbf16> to vector<256x384xbf16>
    %c1_35 = arith.constant 1 : index
    %c0_36 = arith.constant 0 : index
    %c0_37 = arith.constant 0 : index
    %43 = vector.load %arg2[%c1_35, %c0_36, %c0_37] : memref<3x384x128xbf16, #tpu.memory_space<vmem>>, vector<1x384x128xbf16>
    %44 = vector.shape_cast %43 : vector<1x384x128xbf16> to vector<384x128xbf16>
    %cst_38 = arith.constant dense<0.000000e+00> : vector<256x128xf32>
    %45 = tpu.matmul %42, %44, %cst_38 {dimension_numbers = #tpu.dot_dimension_numbers<[1], [0], [0], [1], [0, 0, 1, 1], [], []>} : vector<256x384xbf16>, vector<384x128xbf16>, vector<256x128xf32> -> vector<256x128xf32>
    %46 = arith.addf %40, %45 : vector<256x128xf32>
    %c2 = arith.constant 2 : index
    %c0_39 = arith.constant 0 : index
    %c0_40 = arith.constant 0 : index
    %47 = vector.load %arg7[%c2, %c0_39, %c0_40] : memref<18x16x384xbf16, #tpu.memory_space<vmem>>, vector<16x16x384xbf16>
    %48 = vector.shape_cast %47 : vector<16x16x384xbf16> to vector<256x384xbf16>
    %c2_41 = arith.constant 2 : index
    %c0_42 = arith.constant 0 : index
    %c0_43 = arith.constant 0 : index
    %49 = vector.load %arg2[%c2_41, %c0_42, %c0_43] : memref<3x384x128xbf16, #tpu.memory_space<vmem>>, vector<1x384x128xbf16>
    %50 = vector.shape_cast %49 : vector<1x384x128xbf16> to vector<384x128xbf16>
    %cst_44 = arith.constant dense<0.000000e+00> : vector<256x128xf32>
    %51 = tpu.matmul %48, %50, %cst_44 {dimension_numbers = #tpu.dot_dimension_numbers<[1], [0], [0], [1], [0, 0, 1, 1], [], []>} : vector<256x384xbf16>, vector<384x128xbf16>, vector<256x128xf32> -> vector<256x128xf32>
    %52 = arith.addf %46, %51 : vector<256x128xf32>
    %53 = vector.shape_cast %52 : vector<256x128xf32> to vector<16x16x128xf32>
    %54 = arith.truncf %53 : vector<16x16x128xf32> to vector<16x16x128xbf16>
    %c0_45 = arith.constant 0 : index
    %c0_46 = arith.constant 0 : index
    %c0_47 = arith.constant 0 : index
    %c0_48 = arith.constant 0 : index
    %55 = vector.load %arg5[%c0_45, %c0_46, %c0_47, %c0_48] : memref<1x16x16x128xbf16, #tpu.memory_space<vmem>>, vector<1x16x16x128xbf16>
    %56 = vector.shape_cast %55 : vector<1x16x16x128xbf16> to vector<16x16x128xbf16>
    %57 = vector.shape_cast %54 : vector<16x16x128xbf16> to vector<1x16x16x128xbf16>
    tpu.vector_store %arg5[%c0_45, %c0_46, %c0_47, %c0_48], %57 {strides = array<i32>} : memref<1x16x16x128xbf16, #tpu.memory_space<vmem>>, vector<1x16x16x128xbf16>,
    %cst_49 = arith.constant dense<0.000000e+00> : vector<128xf32>
    %58 = vector.multi_reduction <add>, %52, %cst_49 [0] : vector<256x128xf32> to vector<128xf32>
    %59 = vector.shape_cast %58 : vector<128xf32> to vector<1x128xf32>
    %60 = arith.addf %2, %59 : vector<1x128xf32>
    %61 = arith.mulf %52, %52 : vector<256x128xf32>
    %cst_50 = arith.constant dense<0.000000e+00> : vector<128xf32>
    %62 = vector.multi_reduction <add>, %61, %cst_50 [0] : vector<256x128xf32> to vector<128xf32>
    %63 = vector.shape_cast %62 : vector<128xf32> to vector<1x128xf32>
    %64 = arith.addf %3, %63 : vector<1x128xf32>
    %65 = tpu.concatenate %60, %64 in 0 : vector<1x128xf32>, vector<1x128xf32> -> vector<2x128xf32>
    %66 = vector.shape_cast %65 : vector<2x128xf32> to vector<1x2x128xf32>
    %c0_51 = arith.constant 0 : index
    %c0_52 = arith.constant 0 : index
    %c0_53 = arith.constant 0 : index
    %67 = vector.load %arg6[%c0_51, %c0_52, %c0_53] : memref<1x2x128xf32, #tpu.memory_space<vmem>>, vector<1x2x128xf32>
    tpu.vector_store %arg6[%c0_51, %c0_52, %c0_53], %66 {strides = array<i32>} : memref<1x2x128xf32, #tpu.memory_space<vmem>>, vector<1x2x128xf32>,
    return
  }
  func.func @transform_0(%arg0: i32) -> (i32, i32, i32, i32) {
    %c0_i32 = arith.constant 0 : i32
    %c0_i32_0 = arith.constant 0 : i32
    %c0_i32_1 = arith.constant 0 : i32
    %c0_i32_2 = arith.constant 0 : i32
    return %arg0, %c0_i32, %c0_i32_0, %c0_i32_1 : i32, i32, i32, i32
  }
  func.func @transform_1(%arg0: i32) -> (i32, i32, i32) {
    %c0_i32 = arith.constant 0 : i32
    %c0_i32_0 = arith.constant 0 : i32
    %c0_i32_1 = arith.constant 0 : i32
    %c0_i32_2 = arith.constant 0 : i32
    return %c0_i32, %c0_i32_0, %c0_i32_1 : i32, i32, i32
  }
  func.func @transform_2(%arg0: i32) -> (i32, i32) {
    %c0_i32 = arith.constant 0 : i32
    %c0_i32_0 = arith.constant 0 : i32
    %c0_i32_1 = arith.constant 0 : i32
    return %c0_i32, %c0_i32_0 : i32, i32
  }
  func.func @transform_3(%arg0: i32) -> (i32, i32) {
    %c0_i32 = arith.constant 0 : i32
    %c0_i32_0 = arith.constant 0 : i32
    %c0_i32_1 = arith.constant 0 : i32
    return %c0_i32, %c0_i32_0 : i32, i32
  }
  func.func @transform_4(%arg0: i32) -> (i32, i32, i32, i32) {
    %c0_i32 = arith.constant 0 : i32
    %c0_i32_0 = arith.constant 0 : i32
    %c0_i32_1 = arith.constant 0 : i32
    %c0_i32_2 = arith.constant 0 : i32
    return %arg0, %c0_i32, %c0_i32_0, %c0_i32_1 : i32, i32, i32, i32
  }
  func.func @transform_5(%arg0: i32) -> (i32, i32, i32) {
    %c0_i32 = arith.constant 0 : i32
    %c0_i32_0 = arith.constant 0 : i32
    %c0_i32_1 = arith.constant 0 : i32
    return %arg0, %c0_i32, %c0_i32_0 : i32, i32, i32
  }
}

module attributes {stable_mosaic.version = 11 : i64} {
  func.func @_bn_residual_relu_kernel(%arg0: i32, %arg1: memref<512x128xbf16, #tpu.memory_space<vmem>>, %arg2: memref<512x128xf32, #tpu.memory_space<vmem>>, %arg3: memref<1x128xf32, #tpu.memory_space<vmem>>, %arg4: memref<1x128xf32, #tpu.memory_space<vmem>>, %arg5: memref<512x128xf32, #tpu.memory_space<vmem>>) attributes {dimension_semantics = [#tpu.dimension_semantics<parallel>], iteration_bounds = array<i64: 1>, scalar_prefetch = 0 : i64, scratch_operands = 0 : i64, tpu.core_type = #tpu.core_type<tc>, window_params = [{transform_indices = @transform_0, window_bounds = array<i64: 512, 128>}, {transform_indices = @transform_1, window_bounds = array<i64: 512, 128>}, {pipeline_mode = #tpu.pipeline_mode<synchronous>, transform_indices = @transform_2, window_bounds = array<i64: 1, 128>}, {pipeline_mode = #tpu.pipeline_mode<synchronous>, transform_indices = @transform_3, window_bounds = array<i64: 1, 128>}, {transform_indices = @transform_4, window_bounds = array<i64: 512, 128>}]} {
    %c0 = arith.constant 0 : index
    %c0_0 = arith.constant 0 : index
    %0 = vector.load %arg1[%c0, %c0_0] : memref<512x128xbf16, #tpu.memory_space<vmem>>, vector<512x128xbf16>
    %1 = arith.extf %0 : vector<512x128xbf16> to vector<512x128xf32>
    %c0_1 = arith.constant 0 : index
    %c0_2 = arith.constant 0 : index
    %2 = vector.load %arg3[%c0_1, %c0_2] : memref<1x128xf32, #tpu.memory_space<vmem>>, vector<1x128xf32>
    %3 = vector.broadcast %2 : vector<1x128xf32> to vector<512x128xf32>
    %4 = arith.mulf %1, %3 : vector<512x128xf32>
    %c0_3 = arith.constant 0 : index
    %c0_4 = arith.constant 0 : index
    %5 = vector.load %arg4[%c0_3, %c0_4] : memref<1x128xf32, #tpu.memory_space<vmem>>, vector<1x128xf32>
    %6 = vector.broadcast %5 : vector<1x128xf32> to vector<512x128xf32>
    %7 = arith.addf %4, %6 : vector<512x128xf32>
    %c0_5 = arith.constant 0 : index
    %c0_6 = arith.constant 0 : index
    %8 = vector.load %arg2[%c0_5, %c0_6] : memref<512x128xf32, #tpu.memory_space<vmem>>, vector<512x128xf32>
    %9 = arith.addf %7, %8 : vector<512x128xf32>
    %cst = arith.constant 0.000000e+00 : f32
    %10 = vector.broadcast %cst : f32 to vector<512x128xf32>
    %11 = arith.maximumf %9, %10 : vector<512x128xf32>
    %c0_7 = arith.constant 0 : index
    %c0_8 = arith.constant 0 : index
    %12 = vector.load %arg5[%c0_7, %c0_8] : memref<512x128xf32, #tpu.memory_space<vmem>>, vector<512x128xf32>
    tpu.vector_store %arg5[%c0_7, %c0_8], %11 {strides = array<i32>} : memref<512x128xf32, #tpu.memory_space<vmem>>, vector<512x128xf32>,
    return
  }
  func.func @transform_0(%arg0: i32) -> (i32, i32) {
    %c0_i32 = arith.constant 0 : i32
    %c0_i32_0 = arith.constant 0 : i32
    return %arg0, %c0_i32 : i32, i32
  }
  func.func @transform_1(%arg0: i32) -> (i32, i32) {
    %c0_i32 = arith.constant 0 : i32
    %c0_i32_0 = arith.constant 0 : i32
    return %arg0, %c0_i32 : i32, i32
  }
  func.func @transform_2(%arg0: i32) -> (i32, i32) {
    %c0_i32 = arith.constant 0 : i32
    %c0_i32_0 = arith.constant 0 : i32
    %c0_i32_1 = arith.constant 0 : i32
    return %c0_i32, %c0_i32_0 : i32, i32
  }
  func.func @transform_3(%arg0: i32) -> (i32, i32) {
    %c0_i32 = arith.constant 0 : i32
    %c0_i32_0 = arith.constant 0 : i32
    %c0_i32_1 = arith.constant 0 : i32
    return %c0_i32, %c0_i32_0 : i32, i32
  }
  func.func @transform_4(%arg0: i32) -> (i32, i32) {
    %c0_i32 = arith.constant 0 : i32
    %c0_i32_0 = arith.constant 0 : i32
    return %arg0, %c0_i32 : i32, i32
  }
}

</mosaic_0001>

<bundles_post_ra>
// kernel: bottleneck_forward_nchw.4
= control target key start
LH: loop header
LB: loop body
LE: loop exit
PB: predicated region body
PF: predicated region fallthrough
CT: control target
= control target key end

     0   :  { %vm991_vm0 = vcmask 1040384   ;;  %s2010_s1 = inlined_call_operand.vmem [shape: bf16[128,128], index: 1, kind: input, shape index: {}]   ;;  %s2011_s2 = inlined_call_operand.vmem [shape: f32[1,128], index: 2, kind: input, shape index: {}]   ;;  %s2012_s3 = inlined_call_operand.vmem [shape: f32[1,128], index: 3, kind: input, shape index: {}]   ;;  %s2013_s0 = inlined_call_operand.vmem [shape: f32[512,128], index: 0, kind: input, shape index: {}]   ;;  %s2014_s4 = inlined_call_operand.vmem [shape: bf16[512,128], index: 4, kind: output, shape index: {0}]   ;;  %s2015_s5 = inlined_call_operand.vmem [shape: f32[1,2,128], index: 5, kind: output, shape index: {1}]  }
   0x1   :  { %v1465_v0 = vld [vmem:[%s2010_s1] sm:$0xff]   ;;  %v1466_v1 = vld [vmem:[%s2010_s1 + $0x8] sm:$0xff]   ;;  %v1467_v2 = vld [vmem:[%s2010_s1 + $0x10] sm:$0xff]  }
   0x2   :  { %1369 = vmatprep.subr.bf16.mxu0 %v1465_v0  ;;  %1449 = vmatprep.subr.bf16.mxu1 %v1465_v0  ;;  %v1468_v3 = vld [vmem:[%s2010_s1 + $0x18] sm:$0xff]   ;;  %v20_v4 = vld [vmem:[%s2013_s0] sm:$0xff]  ;;  %v21_v5 = vld [vmem:[%s2013_s0 + $0x8] sm:$0xff] }
   0x3   :  { %1370 = vmatpush3.bf16.msra.mxu0 %v1465_v0  ;;  %1457 = vmatpush3.bf16.msra.mxu1 %v1465_v0  ;;  %v84_v6 = vpack.c.bf16 %v21_v5, %v20_v4  ;;  %v1469_v7 = vld [vmem:[%s2010_s1 + $0x20] sm:$0xff]   ;;  %v1470_v8 = vld [vmem:[%s2010_s1 + $0x28] sm:$0xff]   ;;  %v1471_v11 = vld [vmem:[%s2010_s1 + $0x30] sm:$0xff]  }
   0x4   :  { %1371 = vmatprep.subr.bf16.mxu0 %v1466_v1  ;;  %1450 = vmatprep.subr.bf16.mxu1 %v1466_v1  ;;  %v52_v9 = vld [vmem:[%s2013_s0 + $0x100] sm:$0xff]  ;;  %v53_v10 = vld [vmem:[%s2013_s0 + $0x108] sm:$0xff]  ;;  %v1472_v13 = vld [vmem:[%s2010_s1 + $0x38] sm:$0xff]  }
   0x5   :  { %1385 = vmatprep.mubr.bf16.mxu0 %v84_v6  ;;  %v100_v12 = vpack.c.bf16 %v53_v10, %v52_v9  ;;  %v22_v14 = vld [vmem:[%s2013_s0 + $0x10] sm:$0xff]  ;;  %v23_v15 = vld [vmem:[%s2013_s0 + $0x18] sm:$0xff]  ;;  %v24_v16 = vld [vmem:[%s2013_s0 + $0x20] sm:$0xff] }
   0x6   :  { %v25_v17 = vld [vmem:[%s2013_s0 + $0x28] sm:$0xff]  ;;  %v54_v18 = vld [vmem:[%s2013_s0 + $0x110] sm:$0xff]  ;;  %v55_v19 = vld [vmem:[%s2013_s0 + $0x118] sm:$0xff]  ;;  %v85_v22 = vpack.c.bf16 %v23_v15, %v22_v14 }
   0x7   :  { %1372 = vmatpush3.bf16.msra.mxu0 %v1466_v1  ;;  %1458 = vmatpush3.bf16.msra.mxu1 %v1466_v1  ;;  %v56_v20 = vld [vmem:[%s2013_s0 + $0x120] sm:$0xff]  ;;  %v57_v21 = vld [vmem:[%s2013_s0 + $0x128] sm:$0xff]  ;;  %v86_v23 = vpack.c.bf16 %v25_v17, %v24_v16  ;;  %v101_v24 = vpack.c.bf16 %v55_v19, %v54_v18  ;;  %v26_v26 = vld [vmem:[%s2013_s0 + $0x30] sm:$0xff] }
   0x8   :  { %1373 = vmatprep.subr.bf16.mxu0 %v1467_v2  ;;  %1451 = vmatprep.subr.bf16.mxu1 %v1467_v2  ;;  %v102_v25 = vpack.c.bf16 %v57_v21, %v56_v20  ;;  %v27_v27 = vld [vmem:[%s2013_s0 + $0x38] sm:$0xff]  ;;  %v28_v28 = vld [vmem:[%s2013_s0 + $0x40] sm:$0xff]  ;;  %v29_v29 = vld [vmem:[%s2013_s0 + $0x48] sm:$0xff] }
   0x9   :  { %1417 = vmatprep.mubr.bf16.mxu1 %v100_v12  ;;  %v58_v30 = vld [vmem:[%s2013_s0 + $0x130] sm:$0xff]  ;;  %v59_v31 = vld [vmem:[%s2013_s0 + $0x138] sm:$0xff]  ;;  %v60_v32 = vld [vmem:[%s2013_s0 + $0x140] sm:$0xff]  ;;  %v87_v34 = vpack.c.bf16 %v27_v27, %v26_v26  ;;  %v88_v35 = vpack.c.bf16 %v29_v29, %v28_v28 }
   0xa   :  { %v61_v33 = vld [vmem:[%s2013_s0 + $0x148] sm:$0xff]  ;;  %v103_v36 = vpack.c.bf16 %v59_v31, %v58_v30  ;;  %v30_v38 = vld [vmem:[%s2013_s0 + $0x50] sm:$0xff]  ;;  %v31_v39 = vld [vmem:[%s2013_s0 + $0x58] sm:$0xff] }
   0xb   :  { %1374 = vmatpush3.bf16.msra.mxu0 %v1467_v2  ;;  %1459 = vmatpush3.bf16.msra.mxu1 %v1467_v2  ;;  %v104_v37 = vpack.c.bf16 %v61_v33, %v60_v32  ;;  %v32_v40 = vld [vmem:[%s2013_s0 + $0x60] sm:$0xff]  ;;  %v33_v41 = vld [vmem:[%s2013_s0 + $0x68] sm:$0xff]  ;;  %v62_v42 = vld [vmem:[%s2013_s0 + $0x150] sm:$0xff]  ;;  %v89_v46 = vpack.c.bf16 %v31_v39, %v30_v38 }
   0xc   :  { %1375 = vmatprep.subr.bf16.mxu0 %v1468_v3  ;;  %1452 = vmatprep.subr.bf16.mxu1 %v1468_v3  ;;  %v63_v43 = vld [vmem:[%s2013_s0 + $0x158] sm:$0xff]  ;;  %v64_v44 = vld [vmem:[%s2013_s0 + $0x160] sm:$0xff]  ;;  %v65_v45 = vld [vmem:[%s2013_s0 + $0x168] sm:$0xff]  ;;  %v90_v47 = vpack.c.bf16 %v33_v41, %v32_v40 }
   0xd   :  { %v105_v48 = vpack.c.bf16 %v63_v43, %v62_v42  ;;  %v106_v49 = vpack.c.bf16 %v65_v45, %v64_v44  ;;  %v34_v50 = vld [vmem:[%s2013_s0 + $0x70] sm:$0xff]  ;;  %v35_v51 = vld [vmem:[%s2013_s0 + $0x78] sm:$0xff]  ;;  %v36_v52 = vld [vmem:[%s2013_s0 + $0x80] sm:$0xff] }
   0xe   :  { %v37_v53 = vld [vmem:[%s2013_s0 + $0x88] sm:$0xff]  ;;  %v66_v54 = vld [vmem:[%s2013_s0 + $0x170] sm:$0xff]  ;;  %v67_v55 = vld [vmem:[%s2013_s0 + $0x178] sm:$0xff]  ;;  %v91_v58 = vpack.c.bf16 %v35_v51, %v34_v50 }
   0xf   :  { %1376 = vmatpush3.bf16.msra.mxu0 %v1468_v3  ;;  %1460 = vmatpush3.bf16.msra.mxu1 %v1468_v3  ;;  %v68_v56 = vld [vmem:[%s2013_s0 + $0x180] sm:$0xff]  ;;  %v69_v57 = vld [vmem:[%s2013_s0 + $0x188] sm:$0xff]  ;;  %v92_v59 = vpack.c.bf16 %v37_v53, %v36_v52  ;;  %v107_v60 = vpack.c.bf16 %v67_v55, %v66_v54  ;;  %v38_v62 = vld [vmem:[%s2013_s0 + $0x90] sm:$0xff] }
  0x10   :  { %1377 = vmatprep.subr.bf16.mxu0 %v1469_v7  ;;  %1453 = vmatprep.subr.bf16.mxu1 %v1469_v7  ;;  %v108_v61 = vpack.c.bf16 %v69_v57, %v68_v56  ;;  %v39_v63 = vld [vmem:[%s2013_s0 + $0x98] sm:$0xff]  ;;  %v40_v0 = vld [vmem:[%s2013_s0 + $0xa0] sm:$0xff]  ;;  %v41_v1 = vld [vmem:[%s2013_s0 + $0xa8] sm:$0xff] }
  0x11   :  { %v70_v2 = vld [vmem:[%s2013_s0 + $0x190] sm:$0xff]  ;;  %v71_v3 = vld [vmem:[%s2013_s0 + $0x198] sm:$0xff]  ;;  %v72_v4 = vld [vmem:[%s2013_s0 + $0x1a0] sm:$0xff]  ;;  %v93_v6 = vpack.c.bf16 %v39_v63, %v38_v62 }
  0x12   :  { %v73_v5 = vld [vmem:[%s2013_s0 + $0x1a8] sm:$0xff]  ;;  %v42_v10 = vld [vmem:[%s2013_s0 + $0xb0] sm:$0xff]  ;;  %v44_v12 = vld [vmem:[%s2013_s0 + $0xc0] sm:$0xff] }
  0x13   :  { %1378 = vmatpush3.bf16.msra.mxu0 %v1469_v7  ;;  %1461 = vmatpush3.bf16.msra.mxu1 %v1469_v7  ;;  %v94_v7 = vpack.c.bf16 %v41_v1, %v40_v0  ;;  %v110_v9 = vpack.c.bf16 %v73_v5, %v72_v4  ;;  %v74_v14 = vld [vmem:[%s2013_s0 + $0x1b0] sm:$0xff]  ;;  %v75_v15 = vld [vmem:[%s2013_s0 + $0x1b8] sm:$0xff]  ;;  %v76_v16 = vld [vmem:[%s2013_s0 + $0x1c0] sm:$0xff] }
  0x14   :  { %1379 = vmatprep.subr.bf16.mxu0 %v1470_v8  ;;  %1454 = vmatprep.subr.bf16.mxu1 %v1470_v8  ;;  %v77_v17 = vld [vmem:[%s2013_s0 + $0x1c8] sm:$0xff]  ;;  %v111_v20 = vpack.c.bf16 %v75_v15, %v74_v14  ;;  %v78_v26 = vld [vmem:[%s2013_s0 + $0x1d0] sm:$0xff]  ;;  %v79_v27 = vld [vmem:[%s2013_s0 + $0x1d8] sm:$0xff] }
  0x15   :  { %v112_v21 = vpack.c.bf16 %v77_v17, %v76_v16  ;;  %v80_v28 = vld [vmem:[%s2013_s0 + $0x1e0] sm:$0xff]  ;;  %v81_v29 = vld [vmem:[%s2013_s0 + $0x1e8] sm:$0xff]  ;;  %v113_v32 = vpack.c.bf16 %v79_v27, %v78_v26 }
  0x16   :  { %v114_v33 = vpack.c.bf16 %v81_v29, %v80_v28 }
  0x17   :  { %1380 = vmatpush3.bf16.msra.mxu0 %v1470_v8  ;;  %1462 = vmatpush3.bf16.msra.mxu1 %v1470_v8  ;;  %v109_v8 = vpack.c.bf16 %v71_v3, %v70_v2 }
  0x18   :  { %1381 = vmatprep.subr.bf16.mxu0 %v1471_v11  ;;  %1455 = vmatprep.subr.bf16.mxu1 %v1471_v11 }
  0x1b   :  { %1382 = vmatpush3.bf16.msra.mxu0 %v1471_v11  ;;  %1463 = vmatpush3.bf16.msra.mxu1 %v1471_v11  ;;  %v43_v11 = vld [vmem:[%s2013_s0 + $0xb8] sm:$0xff] }
  0x1c   :  { %1383 = vmatprep.subr.bf16.mxu0 %v1472_v13  ;;  %1456 = vmatprep.subr.bf16.mxu1 %v1472_v13  ;;  %v95_v18 = vpack.c.bf16 %v43_v11, %v42_v10 }
  0x1f   :  { %1384 = vmatpush3.bf16.msra.mxu0 %v1472_v13  ;;  %1464 = vmatpush3.bf16.msra.mxu1 %v1472_v13  ;;  %v45_v13 = vld [vmem:[%s2013_s0 + $0xc8] sm:$0xff] }
  0x20   :  { %v96_v19 = vpack.c.bf16 %v45_v13, %v44_v12 }
  0x22   :  { %1386 = vmatmul.mubr.bf16.vlgmr.msra.gmra.mrb[0].mxu0 %v85_v22  ;;  %1418 = vmatmul.mubr.bf16.vlgmr.msra.gmra.mrb[0].mxu1 %v101_v24  ;;  %v46_v22 = vld [vmem:[%s2013_s0 + $0xd0] sm:$0xff]  ;;  %v48_v24 = vld [vmem:[%s2013_s0 + $0xe0] sm:$0xff] }
  0x23   :  { %1389 = vmatprep.mubr.bf16.mxu0 %v86_v23  ;;  %1421 = vmatprep.mubr.bf16.mxu1 %v102_v25  ;;  %v47_v23 = vld [vmem:[%s2013_s0 + $0xd8] sm:$0xff]  ;;  %v49_v25 = vld [vmem:[%s2013_s0 + $0xe8] sm:$0xff] }
  0x24   :  { %v97_v30 = vpack.c.bf16 %v47_v23, %v46_v22  ;;  %v98_v31 = vpack.c.bf16 %v49_v25, %v48_v24 }
  0x2a   :  { %1390 = vmatmul.mubr.bf16.gmra.mrb[4].mxu0 %v87_v34  ;;  %1422 = vmatmul.mubr.bf16.gmra.mrb[4].mxu1 %v103_v36  ;;  %v50_v34 = vld [vmem:[%s2013_s0 + $0xf0] sm:$0xff] }
  0x2b   :  { %1393 = vmatprep.mubr.bf16.mxu0 %v88_v35  ;;  %1425 = vmatprep.mubr.bf16.mxu1 %v104_v37  ;;  %v51_v35 = vld [vmem:[%s2013_s0 + $0xf8] sm:$0xff]  ;;  %v82_v36 = vld [vmem:[%s2013_s0 + $0x1f0] sm:$0xff] }
  0x2c   :  { %v83_v37 = vld [vmem:[%s2013_s0 + $0x1f8] sm:$0xff]  ;;  %v99_v38 = vpack.c.bf16 %v51_v35, %v50_v34 }
  0x2d   :  { %v115_v39 = vpack.c.bf16 %v83_v37, %v82_v36 }
  0x32   :  { %1394 = vmatmul.mubr.bf16.gmra.mrb[8].mxu0 %v89_v46  ;;  %1426 = vmatmul.mubr.bf16.gmra.mrb[8].mxu1 %v105_v48 }
  0x33   :  { %1397 = vmatprep.mubr.bf16.mxu0 %v90_v47  ;;  %1429 = vmatprep.mubr.bf16.mxu1 %v106_v49 }
  0x3a   :  { %1398 = vmatmul.mubr.bf16.gmra.mrb[12].mxu0 %v91_v58  ;;  %1430 = vmatmul.mubr.bf16.gmra.mrb[12].mxu1 %v107_v60 }
  0x3b   :  { %1401 = vmatprep.mubr.bf16.mxu0 %v92_v59  ;;  %1433 = vmatprep.mubr.bf16.mxu1 %v108_v61 }
  0x42   :  { %1402 = vmatmul.mubr.bf16.gmra.mrb[16].mxu0 %v93_v6  ;;  %1434 = vmatmul.mubr.bf16.gmra.mrb[16].mxu1 %v109_v8 }
  0x43   :  { %1405 = vmatprep.mubr.bf16.mxu0 %v94_v7  ;;  %1437 = vmatprep.mubr.bf16.mxu1 %v110_v9 }
  0x4a   :  { %1406 = vmatmul.mubr.bf16.gmra.mrb[20].mxu0 %v95_v18  ;;  %1438 = vmatmul.mubr.bf16.gmra.mrb[20].mxu1 %v111_v20 }
  0x4b   :  { %1409 = vmatprep.mubr.bf16.mxu0 %v96_v19  ;;  %1441 = vmatprep.mubr.bf16.mxu1 %v112_v21 }
  0x52   :  { %1410 = vmatmul.mubr.bf16.gmra.mrb[24].mxu0 %v97_v30  ;;  %1442 = vmatmul.mubr.bf16.gmra.mrb[24].mxu1 %v113_v32 }
  0x53   :  { %1413 = vmatprep.mubr.bf16.mxu0 %v98_v31  ;;  %1445 = vmatprep.mubr.bf16.mxu1 %v114_v33 }
  0x5a   :  { %1414 = vmatmul.mubr.bf16.gmra.mrb[28].mxu0 %v99_v38  ;;  %1446 = vmatmul.mubr.bf16.gmra.mrb[28].mxu1 %v115_v39 }
  0xf5   :  { %v1387_v40 = vpop.f32.mrb[0].mxu0  ;;  %v1719_v42 = vpop.f32.mrb[0].mxu1 }
  0xf6   :  { %v214_v41 = vpop.f32.mrb[1].mxu0  ;;  %v1721_v44 = vpop.f32.mrb[1].mxu1  ;;  %v860_v55 = vmul.f32 %v1387_v40, %v1387_v40 }
  0xf7   :  { %v1388_v43 = vpop.f32.mrb[2].mxu0  ;;  %v858_v45 = vmul.f32 %v214_v41, %v214_v41  ;;  %v1723_v48 = vpop.f32.mrb[2].mxu1 }
  0xf8   :  { %v1146_v46 = vpack.c.bf16 %v1388_v43, %v1387_v40  ;;  %v217_v47 = vpop.f32.mrb[3].mxu0  ;;  %v1226_v52 = vpack.c.bf16 %v1723_v48, %v1719_v42  ;;  %v1727_v53 = vpop.f32.mrb[3].mxu1  ;;  %v861_v58 = vmul.f32 %v1388_v43, %v1388_v43 }
  0xf9   :  { %v1141_v49 = vpack.c.bf16 %v217_v47, %v214_v41  ;;  %v789_v50 = vadd.f32 %v217_v47, %v214_v41  ;;  %v859_v51 = vmul.f32 %v217_v47, %v217_v47  ;;  %v1221_v54 = vpack.c.bf16 %v1727_v53, %v1721_v44 }
  0xfa   :  { %1298 = vst [vmem:[%s2014_s4 + $0x8] sm:$0xff] %v1146_v46   ;;  %1314 = vst [vmem:[%s2014_s4 + $0x88] sm:$0xff] %v1226_v52  }
  0xfb   :  { %1142 = vst [vmem:[%s2014_s4] sm:$0xff] %v1141_v49   ;;  %v790_v56 = vadd.f32 %v1387_v40, %v789_v50  ;;  %v922_v57 = vadd.f32 %v859_v51, %v858_v45  ;;  %1313 = vst [vmem:[%s2014_s4 + $0x80] sm:$0xff] %v1221_v54  }
  0xfd   :  { %v923_v59 = vadd.f32 %v922_v57, %v860_v55  ;;  %v1391_v60 = vpop.f32.mrb[4].mxu0  ;;  %v791_v61 = vadd.f32 %v1388_v43, %v790_v56  ;;  %v1743_v63 = vpop.f32.mrb[4].mxu1 }
  0xfe   :  { %v230_v62 = vpop.f32.mrb[5].mxu0  ;;  %v1745_v4 = vpop.f32.mrb[5].mxu1  ;;  %v864_v15 = vmul.f32 %v1391_v60, %v1391_v60 }
  0xff   :  { %v792_v0 = vadd.f32 %v791_v61, %v230_v62  ;;  %v862_v1 = vmul.f32 %v230_v62, %v230_v62  ;;  %v924_v2 = vadd.f32 %v923_v59, %v861_v58  ;;  %v1392_v3 = vpop.f32.mrb[6].mxu0  ;;  %v1747_v7 = vpop.f32.mrb[6].mxu1 }
 0x100   :  { %v1156_v5 = vpack.c.bf16 %v1392_v3, %v1391_v60  ;;  %v233_v6 = vpop.f32.mrb[7].mxu0  ;;  %v1749_v12 = vpop.f32.mrb[7].mxu1  ;;  %v1236_v13 = vpack.c.bf16 %v1747_v7, %v1743_v63  ;;  %v865_v18 = vmul.f32 %v1392_v3, %v1392_v3 }
 0x101   :  { %v925_v8 = vadd.f32 %v924_v2, %v862_v1  ;;  %v1151_v9 = vpack.c.bf16 %v233_v6, %v230_v62  ;;  %v793_v10 = vadd.f32 %v792_v0, %v233_v6  ;;  %v863_v11 = vmul.f32 %v233_v6, %v233_v6 }
 0x102   :  { %1300 = vst [vmem:[%s2014_s4 + $0x18] sm:$0xff] %v1156_v5   ;;  %v1231_v14 = vpack.c.bf16 %v1749_v12, %v1745_v4  ;;  %1316 = vst [vmem:[%s2014_s4 + $0x98] sm:$0xff] %v1236_v13  }
 0x103   :  { %1299 = vst [vmem:[%s2014_s4 + $0x10] sm:$0xff] %v1151_v9   ;;  %v794_v16 = vadd.f32 %v1391_v60, %v793_v10  ;;  %v926_v17 = vadd.f32 %v925_v8, %v863_v11 }
 0x104   :  { %1315 = vst [vmem:[%s2014_s4 + $0x90] sm:$0xff] %v1231_v14  }
 0x105   :  { %v927_v19 = vadd.f32 %v926_v17, %v864_v15  ;;  %v1395_v20 = vpop.f32.mrb[8].mxu0  ;;  %v795_v21 = vadd.f32 %v1392_v3, %v794_v16  ;;  %v1767_v23 = vpop.f32.mrb[8].mxu1 }
 0x106   :  { %v246_v22 = vpop.f32.mrb[9].mxu0  ;;  %v1769_v28 = vpop.f32.mrb[9].mxu1  ;;  %v868_v39 = vmul.f32 %v1395_v20, %v1395_v20 }
 0x107   :  { %v796_v24 = vadd.f32 %v795_v21, %v246_v22  ;;  %v866_v25 = vmul.f32 %v246_v22, %v246_v22  ;;  %v928_v26 = vadd.f32 %v927_v19, %v865_v18  ;;  %v1396_v27 = vpop.f32.mrb[10].mxu0  ;;  %v1771_v31 = vpop.f32.mrb[10].mxu1 }
 0x108   :  { %v1166_v29 = vpack.c.bf16 %v1396_v27, %v1395_v20  ;;  %v249_v30 = vpop.f32.mrb[11].mxu0  ;;  %v1773_v36 = vpop.f32.mrb[11].mxu1  ;;  %v1246_v37 = vpack.c.bf16 %v1771_v31, %v1767_v23  ;;  %v869_v43 = vmul.f32 %v1396_v27, %v1396_v27 }
 0x109   :  { %v929_v32 = vadd.f32 %v928_v26, %v866_v25  ;;  %v1161_v33 = vpack.c.bf16 %v249_v30, %v246_v22  ;;  %v797_v34 = vadd.f32 %v796_v24, %v249_v30  ;;  %v867_v35 = vmul.f32 %v249_v30, %v249_v30 }
 0x10a   :  { %1302 = vst [vmem:[%s2014_s4 + $0x28] sm:$0xff] %v1166_v29   ;;  %v1241_v38 = vpack.c.bf16 %v1773_v36, %v1769_v28  ;;  %1318 = vst [vmem:[%s2014_s4 + $0xa8] sm:$0xff] %v1246_v37  }
 0x10b   :  { %1301 = vst [vmem:[%s2014_s4 + $0x20] sm:$0xff] %v1161_v33   ;;  %v798_v40 = vadd.f32 %v1395_v20, %v797_v34  ;;  %v930_v41 = vadd.f32 %v929_v32, %v867_v35 }
 0x10c   :  { %1317 = vst [vmem:[%s2014_s4 + $0xa0] sm:$0xff] %v1241_v38  }
 0x10d   :  { %v931_v45 = vadd.f32 %v930_v41, %v868_v39  ;;  %v1399_v46 = vpop.f32.mrb[12].mxu0  ;;  %v799_v47 = vadd.f32 %v1396_v27, %v798_v40  ;;  %v1791_v50 = vpop.f32.mrb[12].mxu1 }
 0x10e   :  { %v262_v49 = vpop.f32.mrb[13].mxu0  ;;  %v1793_v56 = vpop.f32.mrb[13].mxu1  ;;  %v872_v5 = vmul.f32 %v1399_v46, %v1399_v46 }
 0x10f   :  { %v800_v51 = vadd.f32 %v799_v47, %v262_v49  ;;  %v870_v52 = vmul.f32 %v262_v49, %v262_v49  ;;  %v932_v54 = vadd.f32 %v931_v45, %v869_v43  ;;  %v1400_v55 = vpop.f32.mrb[14].mxu0  ;;  %v1795_v59 = vpop.f32.mrb[14].mxu1 }
 0x110   :  { %v1176_v57 = vpack.c.bf16 %v1400_v55, %v1399_v46  ;;  %v265_v58 = vpop.f32.mrb[15].mxu0  ;;  %v1797_v1 = vpop.f32.mrb[15].mxu1  ;;  %v1256_v2 = vpack.c.bf16 %v1795_v59, %v1791_v50  ;;  %v873_v9 = vmul.f32 %v1400_v55, %v1400_v55 }
 0x111   :  { %v933_v60 = vadd.f32 %v932_v54, %v870_v52  ;;  %v1171_v61 = vpack.c.bf16 %v265_v58, %v262_v49  ;;  %v801_v62 = vadd.f32 %v800_v51, %v265_v58  ;;  %v871_v0 = vmul.f32 %v265_v58, %v265_v58 }
 0x112   :  { %1304 = vst [vmem:[%s2014_s4 + $0x38] sm:$0xff] %v1176_v57   ;;  %v1251_v3 = vpack.c.bf16 %v1797_v1, %v1793_v56  ;;  %1320 = vst [vmem:[%s2014_s4 + $0xb8] sm:$0xff] %v1256_v2  }
 0x113   :  { %1303 = vst [vmem:[%s2014_s4 + $0x30] sm:$0xff] %v1171_v61   ;;  %v802_v6 = vadd.f32 %v1399_v46, %v801_v62  ;;  %v934_v8 = vadd.f32 %v933_v60, %v871_v0 }
 0x114   :  { %1319 = vst [vmem:[%s2014_s4 + $0xb0] sm:$0xff] %v1251_v3  }
 0x115   :  { %v935_v10 = vadd.f32 %v934_v8, %v872_v5  ;;  %v1403_v11 = vpop.f32.mrb[16].mxu0  ;;  %v803_v13 = vadd.f32 %v1400_v55, %v802_v6  ;;  %v1815_v15 = vpop.f32.mrb[16].mxu1 }
 0x116   :  { %v278_v14 = vpop.f32.mrb[17].mxu0  ;;  %v1817_v20 = vpop.f32.mrb[17].mxu1  ;;  %v876_v34 = vmul.f32 %v1403_v11, %v1403_v11 }
 0x117   :  { %v804_v16 = vadd.f32 %v803_v13, %v278_v14  ;;  %v874_v17 = vmul.f32 %v278_v14, %v278_v14  ;;  %v936_v18 = vadd.f32 %v935_v10, %v873_v9  ;;  %v1404_v19 = vpop.f32.mrb[18].mxu0  ;;  %v1819_v24 = vpop.f32.mrb[18].mxu1 }
 0x118   :  { %v1186_v21 = vpack.c.bf16 %v1404_v19, %v1403_v11  ;;  %v281_v22 = vpop.f32.mrb[19].mxu0  ;;  %v1821_v30 = vpop.f32.mrb[19].mxu1  ;;  %v1266_v32 = vpack.c.bf16 %v1819_v24, %v1815_v15  ;;  %v877_v38 = vmul.f32 %v1404_v19, %v1404_v19 }
 0x119   :  { %v937_v25 = vadd.f32 %v936_v18, %v874_v17  ;;  %v1181_v26 = vpack.c.bf16 %v281_v22, %v278_v14  ;;  %v805_v27 = vadd.f32 %v804_v16, %v281_v22  ;;  %v875_v29 = vmul.f32 %v281_v22, %v281_v22 }
 0x11a   :  { %1306 = vst [vmem:[%s2014_s4 + $0x48] sm:$0xff] %v1186_v21   ;;  %v1261_v33 = vpack.c.bf16 %v1821_v30, %v1817_v20  ;;  %1322 = vst [vmem:[%s2014_s4 + $0xc8] sm:$0xff] %v1266_v32  }
 0x11b   :  { %1305 = vst [vmem:[%s2014_s4 + $0x40] sm:$0xff] %v1181_v26   ;;  %v806_v35 = vadd.f32 %v1403_v11, %v805_v27  ;;  %v938_v37 = vadd.f32 %v937_v25, %v875_v29 }
 0x11c   :  { %1321 = vst [vmem:[%s2014_s4 + $0xc0] sm:$0xff] %v1261_v33  }
 0x11d   :  { %v939_v39 = vadd.f32 %v938_v37, %v876_v34  ;;  %v1407_v40 = vpop.f32.mrb[20].mxu0  ;;  %v807_v41 = vadd.f32 %v1404_v19, %v806_v35  ;;  %v1839_v45 = vpop.f32.mrb[20].mxu1 }
 0x11e   :  { %v294_v43 = vpop.f32.mrb[21].mxu0  ;;  %v1841_v52 = vpop.f32.mrb[21].mxu1  ;;  %v880_v5 = vmul.f32 %v1407_v40, %v1407_v40 }
 0x11f   :  { %v808_v46 = vadd.f32 %v807_v41, %v294_v43  ;;  %v878_v47 = vmul.f32 %v294_v43, %v294_v43  ;;  %v940_v49 = vadd.f32 %v939_v39, %v877_v38  ;;  %v1408_v51 = vpop.f32.mrb[22].mxu0  ;;  %v1843_v57 = vpop.f32.mrb[22].mxu1 }
 0x120   :  { %v1196_v54 = vpack.c.bf16 %v1408_v51, %v1407_v40  ;;  %v297_v55 = vpop.f32.mrb[23].mxu0  ;;  %v1845_v0 = vpop.f32.mrb[23].mxu1  ;;  %v1276_v2 = vpack.c.bf16 %v1843_v57, %v1839_v45  ;;  %v881_v9 = vmul.f32 %v1408_v51, %v1408_v51 }
 0x121   :  { %v941_v58 = vadd.f32 %v940_v49, %v878_v47  ;;  %v1191_v60 = vpack.c.bf16 %v297_v55, %v294_v43  ;;  %v809_v61 = vadd.f32 %v808_v46, %v297_v55  ;;  %v879_v62 = vmul.f32 %v297_v55, %v297_v55 }
 0x122   :  { %1308 = vst [vmem:[%s2014_s4 + $0x58] sm:$0xff] %v1196_v54   ;;  %v1271_v3 = vpack.c.bf16 %v1845_v0, %v1841_v52  ;;  %1324 = vst [vmem:[%s2014_s4 + $0xd8] sm:$0xff] %v1276_v2  }
 0x123   :  { %1307 = vst [vmem:[%s2014_s4 + $0x50] sm:$0xff] %v1191_v60   ;;  %v810_v6 = vadd.f32 %v1407_v40, %v809_v61  ;;  %v942_v8 = vadd.f32 %v941_v58, %v879_v62 }
 0x124   :  { %1323 = vst [vmem:[%s2014_s4 + $0xd0] sm:$0xff] %v1271_v3  }
 0x125   :  { %v943_v10 = vadd.f32 %v942_v8, %v880_v5  ;;  %v1411_v11 = vpop.f32.mrb[24].mxu0  ;;  %v811_v13 = vadd.f32 %v1408_v51, %v810_v6  ;;  %v1863_v16 = vpop.f32.mrb[24].mxu1 }
 0x126   :  { %v310_v14 = vpop.f32.mrb[25].mxu0  ;;  %v1865_v22 = vpop.f32.mrb[25].mxu1  ;;  %v884_v39 = vmul.f32 %v1411_v11, %v1411_v11 }
 0x127   :  { %v812_v17 = vadd.f32 %v811_v13, %v310_v14  ;;  %v882_v18 = vmul.f32 %v310_v14, %v310_v14  ;;  %v944_v19 = vadd.f32 %v943_v10, %v881_v9  ;;  %v1412_v21 = vpop.f32.mrb[26].mxu0  ;;  %v1867_v27 = vpop.f32.mrb[26].mxu1 }
 0x128   :  { %v1206_v25 = vpack.c.bf16 %v1412_v21, %v1411_v11  ;;  %v313_v26 = vpop.f32.mrb[27].mxu0  ;;  %v1869_v35 = vpop.f32.mrb[27].mxu1  ;;  %v1286_v37 = vpack.c.bf16 %v1867_v27, %v1863_v16  ;;  %v885_v43 = vmul.f32 %v1412_v21, %v1412_v21 }
 0x129   :  { %v945_v29 = vadd.f32 %v944_v19, %v882_v18  ;;  %v1201_v32 = vpack.c.bf16 %v313_v26, %v310_v14  ;;  %v813_v33 = vadd.f32 %v812_v17, %v313_v26  ;;  %v883_v34 = vmul.f32 %v313_v26, %v313_v26 }
 0x12a   :  { %1310 = vst [vmem:[%s2014_s4 + $0x68] sm:$0xff] %v1206_v25   ;;  %v1281_v38 = vpack.c.bf16 %v1869_v35, %v1865_v22  ;;  %1326 = vst [vmem:[%s2014_s4 + $0xe8] sm:$0xff] %v1286_v37  }
 0x12b   :  { %1309 = vst [vmem:[%s2014_s4 + $0x60] sm:$0xff] %v1201_v32   ;;  %v814_v40 = vadd.f32 %v1411_v11, %v813_v33  ;;  %v946_v41 = vadd.f32 %v945_v29, %v883_v34  ;;  %v890_v29 = vmul.f32 %v1721_v44, %v1721_v44 }
 0x12c   :  { %1325 = vst [vmem:[%s2014_s4 + $0xe0] sm:$0xff] %v1281_v38   ;;  %v891_v38 = vmul.f32 %v1727_v53, %v1727_v53 }
 0x12d   :  { %v947_v46 = vadd.f32 %v946_v41, %v884_v39  ;;  %v1415_v47 = vpop.f32.mrb[28].mxu0  ;;  %v815_v49 = vadd.f32 %v1412_v21, %v814_v40  ;;  %v1887_v54 = vpop.f32.mrb[28].mxu1  ;;  %v892_v39 = vmul.f32 %v1719_v42, %v1719_v42 }
 0x12e   :  { %v326_v51 = vpop.f32.mrb[29].mxu0  ;;  %v1889_v62 = vpop.f32.mrb[29].mxu1  ;;  %v888_v17 = vmul.f32 %v1415_v47, %v1415_v47 }
 0x12f   :  { %v816_v55 = vadd.f32 %v815_v49, %v326_v51  ;;  %v886_v58 = vmul.f32 %v326_v51, %v326_v51  ;;  %v948_v60 = vadd.f32 %v947_v46, %v885_v43  ;;  %v1416_v61 = vpop.f32.mrb[30].mxu0  ;;  %v1891_v5 = vpop.f32.mrb[30].mxu1  ;;  %v893_v43 = vmul.f32 %v1723_v48, %v1723_v48 }
 0x130   :  { %v1216_v2 = vpack.c.bf16 %v1416_v61, %v1415_v47  ;;  %v329_v3 = vpop.f32.mrb[31].mxu0  ;;  %v1893_v11 = vpop.f32.mrb[31].mxu1  ;;  %v1296_v13 = vpack.c.bf16 %v1891_v5, %v1887_v54  ;;  %v889_v21 = vmul.f32 %v1416_v61, %v1416_v61 }
 0x131   :  { %v949_v6 = vadd.f32 %v948_v60, %v886_v58  ;;  %v1211_v8 = vpack.c.bf16 %v329_v3, %v326_v51  ;;  %v817_v9 = vadd.f32 %v816_v55, %v329_v3  ;;  %v887_v10 = vmul.f32 %v329_v3, %v329_v3 }
 0x132   :  { %1312 = vst [vmem:[%s2014_s4 + $0x78] sm:$0xff] %v1216_v2   ;;  %v1291_v14 = vpack.c.bf16 %v1893_v11, %v1889_v62  ;;  %1328 = vst [vmem:[%s2014_s4 + $0xf8] sm:$0xff] %v1296_v13   ;;  %v895_v58 = vmul.f32 %v1749_v12, %v1749_v12 }
 0x133   :  { %1311 = vst [vmem:[%s2014_s4 + $0x70] sm:$0xff] %v1211_v8   ;;  %v818_v18 = vadd.f32 %v1415_v47, %v817_v9  ;;  %v950_v19 = vadd.f32 %v949_v6, %v887_v10  ;;  %v899_v10 = vmul.f32 %v1773_v36, %v1773_v36 }
 0x134   :  { %1327 = vst [vmem:[%s2014_s4 + $0xf0] sm:$0xff] %v1291_v14  }
 0x135   :  { %v951_v25 = vadd.f32 %v950_v19, %v888_v17  ;;  %v819_v26 = vadd.f32 %v1416_v61, %v818_v18 }
 0x137   :  { %v820_v32 = vadd.f32 %v819_v26, %v1721_v44  ;;  %v952_v33 = vadd.f32 %v951_v25, %v889_v21  ;;  %v894_v44 = vmul.f32 %v1745_v4, %v1745_v4  ;;  %v903_v26 = vmul.f32 %v1797_v1, %v1797_v1 }
 0x139   :  { %v953_v34 = vadd.f32 %v952_v33, %v890_v29  ;;  %v821_v37 = vadd.f32 %v820_v32, %v1727_v53 }
 0x13b   :  { %v822_v40 = vadd.f32 %v1719_v42, %v821_v37  ;;  %v954_v41 = vadd.f32 %v953_v34, %v891_v38  ;;  %v896_v42 = vmul.f32 %v1743_v63, %v1743_v63 }
 0x13d   :  { %v955_v46 = vadd.f32 %v954_v41, %v892_v39  ;;  %v823_v47 = vadd.f32 %v1723_v48, %v822_v40  ;;  %v897_v48 = vmul.f32 %v1747_v7, %v1747_v7  ;;  %v907_v40 = vmul.f32 %v1821_v30, %v1821_v30 }
 0x13f   :  { %v824_v49 = vadd.f32 %v823_v47, %v1745_v4  ;;  %v956_v51 = vadd.f32 %v955_v46, %v893_v43  ;;  %v898_v4 = vmul.f32 %v1769_v28, %v1769_v28 }
 0x141   :  { %v957_v55 = vadd.f32 %v956_v51, %v894_v44  ;;  %v825_v53 = vadd.f32 %v824_v49, %v1749_v12 }
 0x143   :  { %v826_v60 = vadd.f32 %v1743_v63, %v825_v53  ;;  %v958_v61 = vadd.f32 %v957_v55, %v895_v58  ;;  %v900_v63 = vmul.f32 %v1767_v23, %v1767_v23  ;;  %v911_v55 = vmul.f32 %v1845_v0, %v1845_v0 }
 0x145   :  { %v959_v2 = vadd.f32 %v958_v61, %v896_v42  ;;  %v827_v3 = vadd.f32 %v1747_v7, %v826_v60  ;;  %v901_v7 = vmul.f32 %v1771_v31, %v1771_v31 }
 0x147   :  { %v828_v6 = vadd.f32 %v827_v3, %v1769_v28  ;;  %v960_v8 = vadd.f32 %v959_v2, %v897_v48  ;;  %v902_v28 = vmul.f32 %v1793_v56, %v1793_v56  ;;  %v915_v3 = vmul.f32 %v1869_v35, %v1869_v35 }
 0x149   :  { %v961_v9 = vadd.f32 %v960_v8, %v898_v4  ;;  %v829_v12 = vadd.f32 %v828_v6, %v1773_v36 }
 0x14b   :  { %v830_v13 = vadd.f32 %v1767_v23, %v829_v12  ;;  %v962_v14 = vadd.f32 %v961_v9, %v899_v10  ;;  %v904_v23 = vmul.f32 %v1791_v50, %v1791_v50 }
 0x14d   :  { %v963_v17 = vadd.f32 %v962_v14, %v900_v63  ;;  %v831_v18 = vadd.f32 %v1771_v31, %v830_v13  ;;  %v905_v31 = vmul.f32 %v1795_v59, %v1795_v59  ;;  %v919_v13 = vmul.f32 %v1893_v11, %v1893_v11 }
 0x14f   :  { %v832_v19 = vadd.f32 %v831_v18, %v1793_v56  ;;  %v964_v21 = vadd.f32 %v963_v17, %v901_v7  ;;  %v906_v56 = vmul.f32 %v1817_v20, %v1817_v20 }
 0x151   :  { %v965_v25 = vadd.f32 %v964_v21, %v902_v28  ;;  %v833_v36 = vadd.f32 %v832_v19, %v1797_v1 }
 0x153   :  { %v834_v29 = vadd.f32 %v1791_v50, %v833_v36  ;;  %v966_v32 = vadd.f32 %v965_v25, %v903_v26  ;;  %v908_v50 = vmul.f32 %v1815_v15, %v1815_v15 }
 0x155   :  { %v967_v33 = vadd.f32 %v966_v32, %v904_v23  ;;  %v835_v34 = vadd.f32 %v1795_v59, %v834_v29  ;;  %v909_v59 = vmul.f32 %v1819_v24, %v1819_v24 }
 0x157   :  { %v836_v37 = vadd.f32 %v835_v34, %v1817_v20  ;;  %v968_v38 = vadd.f32 %v967_v33, %v905_v31  ;;  %v910_v20 = vmul.f32 %v1841_v52, %v1841_v52 }
 0x159   :  { %v969_v39 = vadd.f32 %v968_v38, %v906_v56  ;;  %v837_v1 = vadd.f32 %v836_v37, %v1821_v30 }
 0x15b   :  { %v838_v41 = vadd.f32 %v1815_v15, %v837_v1  ;;  %v970_v43 = vadd.f32 %v969_v39, %v907_v40  ;;  %v912_v15 = vmul.f32 %v1839_v45, %v1839_v45 }
 0x15d   :  { %v971_v46 = vadd.f32 %v970_v43, %v908_v50  ;;  %v839_v47 = vadd.f32 %v1819_v24, %v838_v41  ;;  %v913_v24 = vmul.f32 %v1843_v57, %v1843_v57 }
 0x15f   :  { %v840_v44 = vadd.f32 %v839_v47, %v1841_v52  ;;  %v972_v49 = vadd.f32 %v971_v46, %v909_v59  ;;  %v914_v52 = vmul.f32 %v1865_v22, %v1865_v22 }
 0x161   :  { %v973_v51 = vadd.f32 %v972_v49, %v910_v20  ;;  %v841_v30 = vadd.f32 %v840_v44, %v1845_v0 }
 0x163   :  { %v842_v53 = vadd.f32 %v1839_v45, %v841_v30  ;;  %v974_v58 = vadd.f32 %v973_v51, %v911_v55  ;;  %v916_v45 = vmul.f32 %v1863_v16, %v1863_v16 }
 0x165   :  { %v975_v42 = vadd.f32 %v974_v58, %v912_v15  ;;  %v843_v60 = vadd.f32 %v1843_v57, %v842_v53  ;;  %v917_v57 = vmul.f32 %v1867_v27, %v1867_v27 }
 0x167   :  { %v844_v61 = vadd.f32 %v843_v60, %v1865_v22  ;;  %v976_v48 = vadd.f32 %v975_v42, %v913_v24  ;;  %v918_v22 = vmul.f32 %v1889_v62, %v1889_v62 }
 0x169   :  { %v977_v2 = vadd.f32 %v976_v48, %v914_v52  ;;  %v845_v0 = vadd.f32 %v844_v61, %v1869_v35 }
 0x16b   :  { %v846_v4 = vadd.f32 %v1863_v16, %v845_v0  ;;  %v978_v6 = vadd.f32 %v977_v2, %v915_v3  ;;  %v920_v16 = vmul.f32 %v1887_v54, %v1887_v54 }
 0x16d   :  { %v979_v8 = vadd.f32 %v978_v6, %v916_v45  ;;  %v847_v9 = vadd.f32 %v1867_v27, %v846_v4  ;;  %v921_v27 = vmul.f32 %v1891_v5, %v1891_v5 }
 0x16f   :  { %v848_v12 = vadd.f32 %v847_v9, %v1889_v62  ;;  %v980_v10 = vadd.f32 %v979_v8, %v917_v57 }
 0x171   :  { %v981_v63 = vadd.f32 %v980_v10, %v918_v22  ;;  %v849_v35 = vadd.f32 %v848_v12, %v1893_v11 }
 0x173   :  { %v850_v14 = vadd.f32 %v1887_v54, %v849_v35  ;;  %v982_v7 = vadd.f32 %v981_v63, %v919_v13 }
 0x175   :  { %v851_v17 = vadd.f32 %v1891_v5, %v850_v14  ;;  %v983_v18 = vadd.f32 %v982_v7, %v920_v16 }
 0x177   :  { %v852_v62 = vrot.slane %v851_v17, 4  ;;  %v984_v28 = vadd.f32 %v983_v18, %v921_v27 }
 0x179   :  { %v853_v19 = vadd.f32 %v852_v62, %v851_v17  ;;  %v985_v21 = vrot.slane %v984_v28, 4 }
 0x17b   :  { %v854_v25 = vrot.slane %v853_v19, 2  ;;  %v986_v36 = vadd.f32 %v985_v21, %v984_v28 }
 0x17d   :  { %v855_v26 = vadd.f32 %v854_v25, %v853_v19  ;;  %v987_v11 = vrot.slane %v986_v36, 2 }
 0x17f   :  { %v856_v23 = vrot.slane %v855_v26, 1  ;;  %v988_v29 = vadd.f32 %v987_v11, %v986_v36 }
 0x181   :  { %v989_v32 = vrot.slane %v988_v29, 1  ;;  %v857_v54 = vadd.f32 %v856_v23, %v855_v26 }
 0x183   :  { %v990_v31 = vadd.f32 %v989_v32, %v988_v29 }
 0x185   :  { %v992_v33 = vsel %vm991_vm0, %v857_v54, %v990_v31 }
 0x186   :  { %993 = vst [vmem:[%s2015_s5] sm:$0x3] %v992_v33 }

// kernel: bottleneck_forward_nchw.7
= control target key start
LH: loop header
LB: loop body
LE: loop exit
PB: predicated region body
PF: predicated region fallthrough
CT: control target
= control target key end

     0   :  { %s1351_s0 = inlined_call_operand.vmem [shape: bf16[512,128], index: 0, kind: input, shape index: {}]   ;;  %s1352_s2 = inlined_call_operand.vmem [shape: f32[1,128], index: 2, kind: input, shape index: {}]   ;;  %s1353_s3 = inlined_call_operand.vmem [shape: f32[1,128], index: 3, kind: input, shape index: {}]   ;;  %s1354_s1 = inlined_call_operand.vmem [shape: f32[512,128], index: 1, kind: input, shape index: {}]   ;;  %s1355_s4 = inlined_call_operand.vmem [shape: f32[512,128], index: 4, kind: output, shape index: {}]  }
   0x1   :  { %v550_v0 = vld [vmem:[%s1351_s0] sm:$0xff]   ;;  %v677_v4 = vld [vmem:[%s1351_s0 + $0x8] sm:$0xff]   ;;  %v678_v8 = vld [vmem:[%s1351_s0 + $0x10] sm:$0xff]  }
   0x2   :  { %v739_v1 = vld [vmem:[%s1352_s2] ss:$0 sm:$0xff]  ;;  %v551_v2 = vunpack.c.l.bf16 %v550_v0  ;;  %v552_v3 = vunpack.c.h.bf16 %v550_v0  ;;  %v555_v6 = vunpack.c.l.bf16 %v677_v4  ;;  %v556_v7 = vunpack.c.h.bf16 %v677_v4  ;;  %v679_v13 = vld [vmem:[%s1351_s0 + $0x18] sm:$0xff]   ;;  %v288_v15 = vld [vmem:[%s1354_s1 + $0x8] sm:$0xff] }
   0x3   :  { %v747_v5 = vld [vmem:[%s1353_s3] ss:$0 sm:$0xff]  ;;  %v559_v11 = vunpack.c.l.bf16 %v678_v8  ;;  %v560_v12 = vunpack.c.h.bf16 %v678_v8  ;;  %v563_v18 = vunpack.c.l.bf16 %v679_v13  ;;  %v564_v19 = vunpack.c.h.bf16 %v679_v13  ;;  %v289_v22 = vld [vmem:[%s1354_s1 + $0x10] sm:$0xff]  ;;  %v290_v23 = vld [vmem:[%s1354_s1 + $0x18] sm:$0xff] }
   0x4   :  { %v152_v9 = vmul.f32 %v551_v2, %v739_v1  ;;  %v153_v10 = vmul.f32 %v552_v3, %v739_v1  ;;  %v287_v14 = vld [vmem:[%s1354_s1] sm:$0xff]  ;;  %v154_v16 = vmul.f32 %v555_v6, %v739_v1  ;;  %v155_v17 = vmul.f32 %v556_v7, %v739_v1  ;;  %v292_v29 = vld [vmem:[%s1354_s1 + $0x28] sm:$0xff]  ;;  %v293_v36 = vld [vmem:[%s1354_s1 + $0x30] sm:$0xff] }
   0x5   :  { %v156_v24 = vmul.f32 %v559_v11, %v739_v1  ;;  %v157_v25 = vmul.f32 %v560_v12, %v739_v1  ;;  %v291_v28 = vld [vmem:[%s1354_s1 + $0x20] sm:$0xff]  ;;  %v158_v30 = vmul.f32 %v563_v18, %v739_v1  ;;  %v159_v31 = vmul.f32 %v564_v19, %v739_v1  ;;  %v294_v37 = vld [vmem:[%s1354_s1 + $0x38] sm:$0xff]  ;;  %v681_v47 = vld [vmem:[%s1351_s0 + $0x28] sm:$0xff]  }
   0x6   :  { %v223_v20 = vadd.f32 %v747_v5, %v152_v9  ;;  %v224_v21 = vadd.f32 %v747_v5, %v153_v10  ;;  %v225_v26 = vadd.f32 %v747_v5, %v154_v16  ;;  %v226_v27 = vadd.f32 %v747_v5, %v155_v17  ;;  %v680_v42 = vld [vmem:[%s1351_s0 + $0x20] sm:$0xff]   ;;  %v682_v52 = vld [vmem:[%s1351_s0 + $0x30] sm:$0xff]   ;;  %v683_v57 = vld [vmem:[%s1351_s0 + $0x38] sm:$0xff]  }
   0x7   :  { %v227_v34 = vadd.f32 %v747_v5, %v156_v24  ;;  %v228_v35 = vadd.f32 %v747_v5, %v157_v25  ;;  %v229_v40 = vadd.f32 %v747_v5, %v158_v30  ;;  %v230_v41 = vadd.f32 %v747_v5, %v159_v31  ;;  %v295_v3 = vld [vmem:[%s1354_s1 + $0x40] sm:$0xff]  ;;  %v296_v4 = vld [vmem:[%s1354_s1 + $0x48] sm:$0xff]  ;;  %v297_v12 = vld [vmem:[%s1354_s1 + $0x50] sm:$0xff] }
   0x8   :  { %v351_v32 = vadd.f32 %v287_v14, %v223_v20  ;;  %v352_v33 = vadd.f32 %v288_v15, %v224_v21  ;;  %v353_v38 = vadd.f32 %v289_v22, %v225_v26  ;;  %v354_v39 = vadd.f32 %v290_v23, %v226_v27  ;;  %v298_v13 = vld [vmem:[%s1354_s1 + $0x58] sm:$0xff]  ;;  %v299_v18 = vld [vmem:[%s1354_s1 + $0x60] sm:$0xff]  ;;  %v300_v19 = vld [vmem:[%s1354_s1 + $0x68] sm:$0xff] }
   0x9   :  { %v355_v45 = vadd.f32 %v291_v28, %v227_v34  ;;  %v356_v46 = vadd.f32 %v292_v29, %v228_v35  ;;  %v357_v50 = vadd.f32 %v293_v36, %v229_v40  ;;  %v358_v51 = vadd.f32 %v294_v37, %v230_v41  ;;  %v301_v26 = vld [vmem:[%s1354_s1 + $0x70] sm:$0xff]  ;;  %v302_v27 = vld [vmem:[%s1354_s1 + $0x78] sm:$0xff]  ;;  %v685_v37 = vld [vmem:[%s1351_s0 + $0x48] sm:$0xff]  }
   0xa   :  { %v415_v43 = vmax.f32 %v351_v32, 0.0  ;;  %v416_v44 = vmax.f32 %v352_v33, 0.0  ;;  %v417_v48 = vmax.f32 %v353_v38, 0.0  ;;  %v418_v49 = vmax.f32 %v354_v39, 0.0  ;;  %v684_v32 = vld [vmem:[%s1351_s0 + $0x40] sm:$0xff]  }
   0xb   :  { %v419_v53 = vmax.f32 %v355_v45, 0.0  ;;  %v420_v54 = vmax.f32 %v356_v46, 0.0  ;;  %v567_v55 = vunpack.c.l.bf16 %v680_v42  ;;  %v568_v56 = vunpack.c.h.bf16 %v680_v42  ;;  %v686_v42 = vld [vmem:[%s1351_s0 + $0x50] sm:$0xff]  }
   0xc   :  { %479 = vst [vmem:[%s1355_s4] sm:$0xff] %v415_v43  ;;  %480 = vst [vmem:[%s1355_s4 + $0x8] sm:$0xff] %v416_v44  ;;  %v421_v58 = vmax.f32 %v357_v50, 0.0  ;;  %v422_v59 = vmax.f32 %v358_v51, 0.0  ;;  %v571_v60 = vunpack.c.l.bf16 %v681_v47  ;;  %v572_v61 = vunpack.c.h.bf16 %v681_v47  ;;  %v687_v47 = vld [vmem:[%s1351_s0 + $0x58] sm:$0xff]  }
   0xd   :  { %481 = vst [vmem:[%s1355_s4 + $0x10] sm:$0xff] %v417_v48  ;;  %482 = vst [vmem:[%s1355_s4 + $0x18] sm:$0xff] %v418_v49  ;;  %v160_v62 = vmul.f32 %v567_v55, %v739_v1  ;;  %v161_v63 = vmul.f32 %v568_v56, %v739_v1  ;;  %v575_v0 = vunpack.c.l.bf16 %v682_v52  ;;  %v576_v2 = vunpack.c.h.bf16 %v682_v52  ;;  %v303_v56 = vld [vmem:[%s1354_s1 + $0x80] sm:$0xff] }
   0xe   :  { %483 = vst [vmem:[%s1355_s4 + $0x20] sm:$0xff] %v419_v53  ;;  %484 = vst [vmem:[%s1355_s4 + $0x28] sm:$0xff] %v420_v54  ;;  %v162_v6 = vmul.f32 %v571_v60, %v739_v1  ;;  %v163_v7 = vmul.f32 %v572_v61, %v739_v1  ;;  %v579_v8 = vunpack.c.l.bf16 %v683_v57  ;;  %v580_v9 = vunpack.c.h.bf16 %v683_v57  ;;  %v304_v57 = vld [vmem:[%s1354_s1 + $0x88] sm:$0xff] }
   0xf   :  { %485 = vst [vmem:[%s1355_s4 + $0x30] sm:$0xff] %v421_v58  ;;  %486 = vst [vmem:[%s1355_s4 + $0x38] sm:$0xff] %v422_v59  ;;  %v231_v10 = vadd.f32 %v747_v5, %v160_v62  ;;  %v232_v11 = vadd.f32 %v747_v5, %v161_v63  ;;  %v164_v14 = vmul.f32 %v575_v0, %v739_v1  ;;  %v583_v45 = vunpack.c.l.bf16 %v684_v32  ;;  %v305_v0 = vld [vmem:[%s1354_s1 + $0x90] sm:$0xff] }
  0x10   :  { %v165_v15 = vmul.f32 %v576_v2, %v739_v1  ;;  %v233_v16 = vadd.f32 %v747_v5, %v162_v6  ;;  %v234_v17 = vadd.f32 %v747_v5, %v163_v7  ;;  %v166_v20 = vmul.f32 %v579_v8, %v739_v1  ;;  %v306_v2 = vld [vmem:[%s1354_s1 + $0x98] sm:$0xff]  ;;  %v307_v8 = vld [vmem:[%s1354_s1 + $0xa0] sm:$0xff] }
  0x11   :  { %v167_v21 = vmul.f32 %v580_v9, %v739_v1  ;;  %v359_v22 = vadd.f32 %v295_v3, %v231_v10  ;;  %v360_v23 = vadd.f32 %v296_v4, %v232_v11  ;;  %v235_v24 = vadd.f32 %v747_v5, %v164_v14  ;;  %v308_v9 = vld [vmem:[%s1354_s1 + $0xa8] sm:$0xff] }
  0x12   :  { %v236_v25 = vadd.f32 %v747_v5, %v165_v15  ;;  %v361_v28 = vadd.f32 %v297_v12, %v233_v16  ;;  %v362_v29 = vadd.f32 %v298_v13, %v234_v17  ;;  %v237_v30 = vadd.f32 %v747_v5, %v166_v20  ;;  %v309_v16 = vld [vmem:[%s1354_s1 + $0xb0] sm:$0xff]  ;;  %v310_v17 = vld [vmem:[%s1354_s1 + $0xb8] sm:$0xff] }
  0x13   :  { %v238_v31 = vadd.f32 %v747_v5, %v167_v21  ;;  %v423_v33 = vmax.f32 %v359_v22, 0.0  ;;  %v424_v34 = vmax.f32 %v360_v23, 0.0  ;;  %v363_v35 = vadd.f32 %v299_v18, %v235_v24  ;;  %v688_v22 = vld [vmem:[%s1351_s0 + $0x60] sm:$0xff]  }
  0x14   :  { %v364_v36 = vadd.f32 %v300_v19, %v236_v25  ;;  %v425_v38 = vmax.f32 %v361_v28, 0.0  ;;  %v426_v39 = vmax.f32 %v362_v29, 0.0  ;;  %v365_v40 = vadd.f32 %v301_v26, %v237_v30 }
  0x15   :  { %v366_v41 = vadd.f32 %v302_v27, %v238_v31  ;;  %487 = vst [vmem:[%s1355_s4 + $0x40] sm:$0xff] %v423_v33  ;;  %488 = vst [vmem:[%s1355_s4 + $0x48] sm:$0xff] %v424_v34  ;;  %v427_v43 = vmax.f32 %v363_v35, 0.0  ;;  %v584_v46 = vunpack.c.h.bf16 %v684_v32  ;;  %v587_v50 = vunpack.c.l.bf16 %v685_v37  ;;  %v689_v27 = vld [vmem:[%s1351_s0 + $0x68] sm:$0xff]   ;;  %v690_v32 = vld [vmem:[%s1351_s0 + $0x70] sm:$0xff]  }
  0x16   :  { %v428_v44 = vmax.f32 %v364_v36, 0.0  ;;  %489 = vst [vmem:[%s1355_s4 + $0x50] sm:$0xff] %v425_v38  ;;  %490 = vst [vmem:[%s1355_s4 + $0x58] sm:$0xff] %v426_v39  ;;  %v429_v48 = vmax.f32 %v365_v40, 0.0  ;;  %v588_v51 = vunpack.c.h.bf16 %v685_v37  ;;  %v168_v52 = vmul.f32 %v583_v45, %v739_v1  ;;  %v691_v37 = vld [vmem:[%s1351_s0 + $0x78] sm:$0xff]  }
  0x17   :  { %v430_v49 = vmax.f32 %v366_v41, 0.0  ;;  %491 = vst [vmem:[%s1355_s4 + $0x60] sm:$0xff] %v427_v43  ;;  %v169_v53 = vmul.f32 %v584_v46, %v739_v1  ;;  %v591_v54 = vunpack.c.l.bf16 %v686_v42  ;;  %v592_v55 = vunpack.c.h.bf16 %v686_v42  ;;  %v311_v46 = vld [vmem:[%s1354_s1 + $0xc0] sm:$0xff] }
  0x18   :  { %492 = vst [vmem:[%s1355_s4 + $0x68] sm:$0xff] %v428_v44  ;;  %493 = vst [vmem:[%s1355_s4 + $0x70] sm:$0xff] %v429_v48  ;;  %v170_v58 = vmul.f32 %v587_v50, %v739_v1  ;;  %v171_v59 = vmul.f32 %v588_v51, %v739_v1  ;;  %v595_v60 = vunpack.c.l.bf16 %v687_v47  ;;  %v596_v61 = vunpack.c.h.bf16 %v687_v47  ;;  %v312_v47 = vld [vmem:[%s1354_s1 + $0xc8] sm:$0xff] }
  0x19   :  { %494 = vst [vmem:[%s1355_s4 + $0x78] sm:$0xff] %v430_v49  ;;  %v239_v62 = vadd.f32 %v747_v5, %v168_v52  ;;  %v240_v63 = vadd.f32 %v747_v5, %v169_v53  ;;  %v172_v3 = vmul.f32 %v591_v54, %v739_v1  ;;  %v173_v4 = vmul.f32 %v592_v55, %v739_v1  ;;  %v313_v54 = vld [vmem:[%s1354_s1 + $0xd0] sm:$0xff]  ;;  %v314_v55 = vld [vmem:[%s1354_s1 + $0xd8] sm:$0xff] }
  0x1a   :  { %v241_v6 = vadd.f32 %v747_v5, %v170_v58  ;;  %v242_v7 = vadd.f32 %v747_v5, %v171_v59  ;;  %v174_v10 = vmul.f32 %v595_v60, %v739_v1  ;;  %v175_v11 = vmul.f32 %v596_v61, %v739_v1  ;;  %v315_v60 = vld [vmem:[%s1354_s1 + $0xe0] sm:$0xff]  ;;  %v316_v61 = vld [vmem:[%s1354_s1 + $0xe8] sm:$0xff] }
  0x1b   :  { %v367_v12 = vadd.f32 %v303_v56, %v239_v62  ;;  %v368_v13 = vadd.f32 %v304_v57, %v240_v63  ;;  %v243_v14 = vadd.f32 %v747_v5, %v172_v3  ;;  %v244_v15 = vadd.f32 %v747_v5, %v173_v4 }
  0x1c   :  { %v369_v18 = vadd.f32 %v305_v0, %v241_v6  ;;  %v370_v19 = vadd.f32 %v306_v2, %v242_v7  ;;  %v245_v20 = vadd.f32 %v747_v5, %v174_v10  ;;  %v246_v21 = vadd.f32 %v747_v5, %v175_v11  ;;  %v317_v6 = vld [vmem:[%s1354_s1 + $0xf0] sm:$0xff]  ;;  %v318_v7 = vld [vmem:[%s1354_s1 + $0xf8] sm:$0xff] }
  0x1d   :  { %v431_v23 = vmax.f32 %v367_v12, 0.0  ;;  %v432_v24 = vmax.f32 %v368_v13, 0.0  ;;  %v371_v25 = vadd.f32 %v307_v8, %v243_v14  ;;  %v372_v26 = vadd.f32 %v308_v9, %v244_v15  ;;  %v692_v12 = vld [vmem:[%s1351_s0 + $0x80] sm:$0xff]  }
  0x1e   :  { %v433_v28 = vmax.f32 %v369_v18, 0.0  ;;  %v434_v29 = vmax.f32 %v370_v19, 0.0  ;;  %v373_v30 = vadd.f32 %v309_v16, %v245_v20  ;;  %v374_v31 = vadd.f32 %v310_v17, %v246_v21  ;;  %v693_v17 = vld [vmem:[%s1351_s0 + $0x88] sm:$0xff]  }
  0x1f   :  { %495 = vst [vmem:[%s1355_s4 + $0x80] sm:$0xff] %v431_v23  ;;  %496 = vst [vmem:[%s1355_s4 + $0x88] sm:$0xff] %v432_v24  ;;  %v435_v33 = vmax.f32 %v371_v25, 0.0  ;;  %v436_v34 = vmax.f32 %v372_v26, 0.0  ;;  %v599_v35 = vunpack.c.l.bf16 %v688_v22  ;;  %v600_v36 = vunpack.c.h.bf16 %v688_v22  ;;  %v694_v22 = vld [vmem:[%s1351_s0 + $0x90] sm:$0xff]  }
  0x20   :  { %497 = vst [vmem:[%s1355_s4 + $0x90] sm:$0xff] %v433_v28  ;;  %498 = vst [vmem:[%s1355_s4 + $0x98] sm:$0xff] %v434_v29  ;;  %v437_v38 = vmax.f32 %v373_v30, 0.0  ;;  %v438_v39 = vmax.f32 %v374_v31, 0.0  ;;  %v603_v40 = vunpack.c.l.bf16 %v689_v27  ;;  %v604_v41 = vunpack.c.h.bf16 %v689_v27  ;;  %v695_v27 = vld [vmem:[%s1351_s0 + $0x98] sm:$0xff]  }
  0x21   :  { %499 = vst [vmem:[%s1355_s4 + $0xa0] sm:$0xff] %v435_v33  ;;  %500 = vst [vmem:[%s1355_s4 + $0xa8] sm:$0xff] %v436_v34  ;;  %v176_v42 = vmul.f32 %v599_v35, %v739_v1  ;;  %v177_v43 = vmul.f32 %v600_v36, %v739_v1  ;;  %v607_v44 = vunpack.c.l.bf16 %v690_v32  ;;  %v608_v45 = vunpack.c.h.bf16 %v690_v32  ;;  %v319_v36 = vld [vmem:[%s1354_s1 + $0x100] sm:$0xff] }
  0x22   :  { %501 = vst [vmem:[%s1355_s4 + $0xb0] sm:$0xff] %v437_v38  ;;  %502 = vst [vmem:[%s1355_s4 + $0xb8] sm:$0xff] %v438_v39  ;;  %v178_v48 = vmul.f32 %v603_v40, %v739_v1  ;;  %v179_v49 = vmul.f32 %v604_v41, %v739_v1  ;;  %v611_v50 = vunpack.c.l.bf16 %v691_v37  ;;  %v612_v51 = vunpack.c.h.bf16 %v691_v37  ;;  %v320_v37 = vld [vmem:[%s1354_s1 + $0x108] sm:$0xff] }
  0x23   :  { %v247_v52 = vadd.f32 %v747_v5, %v176_v42  ;;  %v248_v53 = vadd.f32 %v747_v5, %v177_v43  ;;  %v180_v56 = vmul.f32 %v607_v44, %v739_v1  ;;  %v181_v57 = vmul.f32 %v608_v45, %v739_v1  ;;  %v321_v44 = vld [vmem:[%s1354_s1 + $0x110] sm:$0xff]  ;;  %v322_v45 = vld [vmem:[%s1354_s1 + $0x118] sm:$0xff] }
  0x24   :  { %v249_v58 = vadd.f32 %v747_v5, %v178_v48  ;;  %v250_v59 = vadd.f32 %v747_v5, %v179_v49  ;;  %v182_v62 = vmul.f32 %v611_v50, %v739_v1  ;;  %v183_v63 = vmul.f32 %v612_v51, %v739_v1  ;;  %v323_v50 = vld [vmem:[%s1354_s1 + $0x120] sm:$0xff]  ;;  %v324_v51 = vld [vmem:[%s1354_s1 + $0x128] sm:$0xff] }
  0x25   :  { %v375_v0 = vadd.f32 %v311_v46, %v247_v52  ;;  %v376_v2 = vadd.f32 %v312_v47, %v248_v53  ;;  %v251_v3 = vadd.f32 %v747_v5, %v180_v56  ;;  %v252_v4 = vadd.f32 %v747_v5, %v181_v57 }
  0x26   :  { %v377_v8 = vadd.f32 %v313_v54, %v249_v58  ;;  %v378_v9 = vadd.f32 %v314_v55, %v250_v59  ;;  %v253_v10 = vadd.f32 %v747_v5, %v182_v62  ;;  %v254_v11 = vadd.f32 %v747_v5, %v183_v63  ;;  %v325_v58 = vld [vmem:[%s1354_s1 + $0x130] sm:$0xff]  ;;  %v326_v59 = vld [vmem:[%s1354_s1 + $0x138] sm:$0xff] }
  0x27   :  { %v439_v13 = vmax.f32 %v375_v0, 0.0  ;;  %v440_v14 = vmax.f32 %v376_v2, 0.0  ;;  %v379_v15 = vadd.f32 %v315_v60, %v251_v3  ;;  %v380_v16 = vadd.f32 %v316_v61, %v252_v4  ;;  %v696_v0 = vld [vmem:[%s1351_s0 + $0xa0] sm:$0xff]  }
  0x28   :  { %v441_v18 = vmax.f32 %v377_v8, 0.0  ;;  %v442_v19 = vmax.f32 %v378_v9, 0.0  ;;  %v381_v20 = vadd.f32 %v317_v6, %v253_v10  ;;  %v382_v21 = vadd.f32 %v318_v7, %v254_v11  ;;  %v697_v7 = vld [vmem:[%s1351_s0 + $0xa8] sm:$0xff]  }
  0x29   :  { %503 = vst [vmem:[%s1355_s4 + $0xc0] sm:$0xff] %v439_v13  ;;  %504 = vst [vmem:[%s1355_s4 + $0xc8] sm:$0xff] %v440_v14  ;;  %v443_v23 = vmax.f32 %v379_v15, 0.0  ;;  %v444_v24 = vmax.f32 %v380_v16, 0.0  ;;  %v615_v25 = vunpack.c.l.bf16 %v692_v12  ;;  %v616_v26 = vunpack.c.h.bf16 %v692_v12  ;;  %v698_v12 = vld [vmem:[%s1351_s0 + $0xb0] sm:$0xff]  }
  0x2a   :  { %505 = vst [vmem:[%s1355_s4 + $0xd0] sm:$0xff] %v441_v18  ;;  %506 = vst [vmem:[%s1355_s4 + $0xd8] sm:$0xff] %v442_v19  ;;  %v445_v28 = vmax.f32 %v381_v20, 0.0  ;;  %v446_v29 = vmax.f32 %v382_v21, 0.0  ;;  %v619_v30 = vunpack.c.l.bf16 %v693_v17  ;;  %v620_v31 = vunpack.c.h.bf16 %v693_v17  ;;  %v699_v17 = vld [vmem:[%s1351_s0 + $0xb8] sm:$0xff]  }
  0x2b   :  { %507 = vst [vmem:[%s1355_s4 + $0xe0] sm:$0xff] %v443_v23  ;;  %508 = vst [vmem:[%s1355_s4 + $0xe8] sm:$0xff] %v444_v24  ;;  %v184_v32 = vmul.f32 %v615_v25, %v739_v1  ;;  %v185_v33 = vmul.f32 %v616_v26, %v739_v1  ;;  %v623_v34 = vunpack.c.l.bf16 %v694_v22  ;;  %v624_v35 = vunpack.c.h.bf16 %v694_v22  ;;  %v327_v26 = vld [vmem:[%s1354_s1 + $0x140] sm:$0xff] }
  0x2c   :  { %509 = vst [vmem:[%s1355_s4 + $0xf0] sm:$0xff] %v445_v28  ;;  %510 = vst [vmem:[%s1355_s4 + $0xf8] sm:$0xff] %v446_v29  ;;  %v186_v38 = vmul.f32 %v619_v30, %v739_v1  ;;  %v187_v39 = vmul.f32 %v620_v31, %v739_v1  ;;  %v627_v40 = vunpack.c.l.bf16 %v695_v27  ;;  %v628_v41 = vunpack.c.h.bf16 %v695_v27  ;;  %v328_v27 = vld [vmem:[%s1354_s1 + $0x148] sm:$0xff] }
  0x2d   :  { %v255_v42 = vadd.f32 %v747_v5, %v184_v32  ;;  %v256_v43 = vadd.f32 %v747_v5, %v185_v33  ;;  %v188_v46 = vmul.f32 %v623_v34, %v739_v1  ;;  %v189_v47 = vmul.f32 %v624_v35, %v739_v1  ;;  %v329_v34 = vld [vmem:[%s1354_s1 + $0x150] sm:$0xff]  ;;  %v330_v35 = vld [vmem:[%s1354_s1 + $0x158] sm:$0xff] }
  0x2e   :  { %v257_v48 = vadd.f32 %v747_v5, %v186_v38  ;;  %v258_v49 = vadd.f32 %v747_v5, %v187_v39  ;;  %v190_v52 = vmul.f32 %v627_v40, %v739_v1  ;;  %v191_v53 = vmul.f32 %v628_v41, %v739_v1  ;;  %v331_v40 = vld [vmem:[%s1354_s1 + $0x160] sm:$0xff]  ;;  %v332_v41 = vld [vmem:[%s1354_s1 + $0x168] sm:$0xff] }
  0x2f   :  { %v383_v54 = vadd.f32 %v319_v36, %v255_v42  ;;  %v384_v55 = vadd.f32 %v320_v37, %v256_v43  ;;  %v259_v56 = vadd.f32 %v747_v5, %v188_v46  ;;  %v260_v57 = vadd.f32 %v747_v5, %v189_v47 }
  0x30   :  { %v385_v60 = vadd.f32 %v321_v44, %v257_v48  ;;  %v386_v61 = vadd.f32 %v322_v45, %v258_v49  ;;  %v261_v62 = vadd.f32 %v747_v5, %v190_v52  ;;  %v262_v63 = vadd.f32 %v747_v5, %v191_v53  ;;  %v333_v48 = vld [vmem:[%s1354_s1 + $0x170] sm:$0xff]  ;;  %v334_v49 = vld [vmem:[%s1354_s1 + $0x178] sm:$0xff] }
  0x31   :  { %v447_v2 = vmax.f32 %v383_v54, 0.0  ;;  %v448_v3 = vmax.f32 %v384_v55, 0.0  ;;  %v387_v4 = vadd.f32 %v323_v50, %v259_v56  ;;  %v388_v6 = vadd.f32 %v324_v51, %v260_v57  ;;  %v700_v54 = vld [vmem:[%s1351_s0 + $0xc0] sm:$0xff]  }
  0x32   :  { %v449_v8 = vmax.f32 %v385_v60, 0.0  ;;  %v450_v9 = vmax.f32 %v386_v61, 0.0  ;;  %v389_v10 = vadd.f32 %v325_v58, %v261_v62  ;;  %v390_v11 = vadd.f32 %v326_v59, %v262_v63  ;;  %v701_v59 = vld [vmem:[%s1351_s0 + $0xc8] sm:$0xff]  }
  0x33   :  { %511 = vst [vmem:[%s1355_s4 + $0x100] sm:$0xff] %v447_v2  ;;  %512 = vst [vmem:[%s1355_s4 + $0x108] sm:$0xff] %v448_v3  ;;  %v451_v13 = vmax.f32 %v387_v4, 0.0  ;;  %v452_v14 = vmax.f32 %v388_v6, 0.0  ;;  %v631_v15 = vunpack.c.l.bf16 %v696_v0  ;;  %v632_v16 = vunpack.c.h.bf16 %v696_v0  ;;  %v702_v0 = vld [vmem:[%s1351_s0 + $0xd0] sm:$0xff]  }
  0x34   :  { %513 = vst [vmem:[%s1355_s4 + $0x110] sm:$0xff] %v449_v8  ;;  %514 = vst [vmem:[%s1355_s4 + $0x118] sm:$0xff] %v450_v9  ;;  %v453_v18 = vmax.f32 %v389_v10, 0.0  ;;  %v454_v19 = vmax.f32 %v390_v11, 0.0  ;;  %v635_v20 = vunpack.c.l.bf16 %v697_v7  ;;  %v636_v21 = vunpack.c.h.bf16 %v697_v7  ;;  %v703_v7 = vld [vmem:[%s1351_s0 + $0xd8] sm:$0xff]  }
  0x35   :  { %515 = vst [vmem:[%s1355_s4 + $0x120] sm:$0xff] %v451_v13  ;;  %516 = vst [vmem:[%s1355_s4 + $0x128] sm:$0xff] %v452_v14  ;;  %v192_v22 = vmul.f32 %v631_v15, %v739_v1  ;;  %v193_v23 = vmul.f32 %v632_v16, %v739_v1  ;;  %v639_v24 = vunpack.c.l.bf16 %v698_v12  ;;  %v640_v25 = vunpack.c.h.bf16 %v698_v12  ;;  %v335_v16 = vld [vmem:[%s1354_s1 + $0x180] sm:$0xff] }
  0x36   :  { %517 = vst [vmem:[%s1355_s4 + $0x130] sm:$0xff] %v453_v18  ;;  %518 = vst [vmem:[%s1355_s4 + $0x138] sm:$0xff] %v454_v19  ;;  %v194_v28 = vmul.f32 %v635_v20, %v739_v1  ;;  %v195_v29 = vmul.f32 %v636_v21, %v739_v1  ;;  %v643_v30 = vunpack.c.l.bf16 %v699_v17  ;;  %v644_v31 = vunpack.c.h.bf16 %v699_v17  ;;  %v336_v17 = vld [vmem:[%s1354_s1 + $0x188] sm:$0xff] }
  0x37   :  { %v263_v32 = vadd.f32 %v747_v5, %v192_v22  ;;  %v264_v33 = vadd.f32 %v747_v5, %v193_v23  ;;  %v196_v36 = vmul.f32 %v639_v24, %v739_v1  ;;  %v197_v37 = vmul.f32 %v640_v25, %v739_v1  ;;  %v337_v24 = vld [vmem:[%s1354_s1 + $0x190] sm:$0xff]  ;;  %v338_v25 = vld [vmem:[%s1354_s1 + $0x198] sm:$0xff] }
  0x38   :  { %v265_v38 = vadd.f32 %v747_v5, %v194_v28  ;;  %v266_v39 = vadd.f32 %v747_v5, %v195_v29  ;;  %v198_v42 = vmul.f32 %v643_v30, %v739_v1  ;;  %v199_v43 = vmul.f32 %v644_v31, %v739_v1  ;;  %v339_v30 = vld [vmem:[%s1354_s1 + $0x1a0] sm:$0xff]  ;;  %v340_v31 = vld [vmem:[%s1354_s1 + $0x1a8] sm:$0xff] }
  0x39   :  { %v391_v44 = vadd.f32 %v327_v26, %v263_v32  ;;  %v392_v45 = vadd.f32 %v328_v27, %v264_v33  ;;  %v267_v46 = vadd.f32 %v747_v5, %v196_v36  ;;  %v268_v47 = vadd.f32 %v747_v5, %v197_v37 }
  0x3a   :  { %v393_v50 = vadd.f32 %v329_v34, %v265_v38  ;;  %v394_v51 = vadd.f32 %v330_v35, %v266_v39  ;;  %v269_v52 = vadd.f32 %v747_v5, %v198_v42  ;;  %v270_v53 = vadd.f32 %v747_v5, %v199_v43  ;;  %v341_v38 = vld [vmem:[%s1354_s1 + $0x1b0] sm:$0xff]  ;;  %v342_v39 = vld [vmem:[%s1354_s1 + $0x1b8] sm:$0xff] }
  0x3b   :  { %v455_v55 = vmax.f32 %v391_v44, 0.0  ;;  %v456_v56 = vmax.f32 %v392_v45, 0.0  ;;  %v395_v57 = vadd.f32 %v331_v40, %v267_v46  ;;  %v396_v58 = vadd.f32 %v332_v41, %v268_v47  ;;  %v704_v44 = vld [vmem:[%s1351_s0 + $0xe0] sm:$0xff]  }
  0x3c   :  { %v457_v60 = vmax.f32 %v393_v50, 0.0  ;;  %v458_v61 = vmax.f32 %v394_v51, 0.0  ;;  %v397_v62 = vadd.f32 %v333_v48, %v269_v52  ;;  %v398_v63 = vadd.f32 %v334_v49, %v270_v53  ;;  %v705_v49 = vld [vmem:[%s1351_s0 + $0xe8] sm:$0xff]  }
  0x3d   :  { %519 = vst [vmem:[%s1355_s4 + $0x140] sm:$0xff] %v455_v55  ;;  %520 = vst [vmem:[%s1355_s4 + $0x148] sm:$0xff] %v456_v56  ;;  %v459_v2 = vmax.f32 %v395_v57, 0.0  ;;  %v460_v3 = vmax.f32 %v396_v58, 0.0  ;;  %v647_v4 = vunpack.c.l.bf16 %v700_v54  ;;  %v648_v6 = vunpack.c.h.bf16 %v700_v54  ;;  %v706_v54 = vld [vmem:[%s1351_s0 + $0xf0] sm:$0xff]  }
  0x3e   :  { %521 = vst [vmem:[%s1355_s4 + $0x150] sm:$0xff] %v457_v60  ;;  %522 = vst [vmem:[%s1355_s4 + $0x158] sm:$0xff] %v458_v61  ;;  %v461_v8 = vmax.f32 %v397_v62, 0.0  ;;  %v462_v9 = vmax.f32 %v398_v63, 0.0  ;;  %v651_v10 = vunpack.c.l.bf16 %v701_v59  ;;  %v652_v11 = vunpack.c.h.bf16 %v701_v59  ;;  %v707_v59 = vld [vmem:[%s1351_s0 + $0xf8] sm:$0xff]  }
  0x3f   :  { %523 = vst [vmem:[%s1355_s4 + $0x160] sm:$0xff] %v459_v2  ;;  %524 = vst [vmem:[%s1355_s4 + $0x168] sm:$0xff] %v460_v3  ;;  %v200_v12 = vmul.f32 %v647_v4, %v739_v1  ;;  %v201_v13 = vmul.f32 %v648_v6, %v739_v1  ;;  %v655_v14 = vunpack.c.l.bf16 %v702_v0  ;;  %v656_v15 = vunpack.c.h.bf16 %v702_v0  ;;  %v343_v6 = vld [vmem:[%s1354_s1 + $0x1c0] sm:$0xff] }
  0x40   :  { %525 = vst [vmem:[%s1355_s4 + $0x170] sm:$0xff] %v461_v8  ;;  %526 = vst [vmem:[%s1355_s4 + $0x178] sm:$0xff] %v462_v9  ;;  %v202_v18 = vmul.f32 %v651_v10, %v739_v1  ;;  %v203_v19 = vmul.f32 %v652_v11, %v739_v1  ;;  %v659_v20 = vunpack.c.l.bf16 %v703_v7  ;;  %v660_v21 = vunpack.c.h.bf16 %v703_v7  ;;  %v344_v7 = vld [vmem:[%s1354_s1 + $0x1c8] sm:$0xff] }
  0x41   :  { %v271_v22 = vadd.f32 %v747_v5, %v200_v12  ;;  %v272_v23 = vadd.f32 %v747_v5, %v201_v13  ;;  %v204_v26 = vmul.f32 %v655_v14, %v739_v1  ;;  %v205_v27 = vmul.f32 %v656_v15, %v739_v1  ;;  %v345_v14 = vld [vmem:[%s1354_s1 + $0x1d0] sm:$0xff]  ;;  %v346_v15 = vld [vmem:[%s1354_s1 + $0x1d8] sm:$0xff] }
  0x42   :  { %v273_v28 = vadd.f32 %v747_v5, %v202_v18  ;;  %v274_v29 = vadd.f32 %v747_v5, %v203_v19  ;;  %v206_v32 = vmul.f32 %v659_v20, %v739_v1  ;;  %v207_v33 = vmul.f32 %v660_v21, %v739_v1  ;;  %v347_v20 = vld [vmem:[%s1354_s1 + $0x1e0] sm:$0xff]  ;;  %v348_v21 = vld [vmem:[%s1354_s1 + $0x1e8] sm:$0xff] }
  0x43   :  { %v399_v34 = vadd.f32 %v335_v16, %v271_v22  ;;  %v400_v35 = vadd.f32 %v336_v17, %v272_v23  ;;  %v275_v36 = vadd.f32 %v747_v5, %v204_v26  ;;  %v276_v37 = vadd.f32 %v747_v5, %v205_v27 }
  0x44   :  { %v401_v40 = vadd.f32 %v337_v24, %v273_v28  ;;  %v402_v41 = vadd.f32 %v338_v25, %v274_v29  ;;  %v277_v42 = vadd.f32 %v747_v5, %v206_v32  ;;  %v278_v43 = vadd.f32 %v747_v5, %v207_v33  ;;  %v349_v28 = vld [vmem:[%s1354_s1 + $0x1f0] sm:$0xff]  ;;  %v350_v29 = vld [vmem:[%s1354_s1 + $0x1f8] sm:$0xff] }
  0x45   :  { %v463_v45 = vmax.f32 %v399_v34, 0.0  ;;  %v464_v46 = vmax.f32 %v400_v35, 0.0  ;;  %v403_v47 = vadd.f32 %v339_v30, %v275_v36  ;;  %v404_v48 = vadd.f32 %v340_v31, %v276_v37 }
  0x46   :  { %v465_v50 = vmax.f32 %v401_v40, 0.0  ;;  %v466_v51 = vmax.f32 %v402_v41, 0.0  ;;  %v405_v52 = vadd.f32 %v341_v38, %v277_v42  ;;  %v406_v53 = vadd.f32 %v342_v39, %v278_v43 }
  0x47   :  { %527 = vst [vmem:[%s1355_s4 + $0x180] sm:$0xff] %v463_v45  ;;  %528 = vst [vmem:[%s1355_s4 + $0x188] sm:$0xff] %v464_v46  ;;  %v467_v55 = vmax.f32 %v403_v47, 0.0  ;;  %v468_v56 = vmax.f32 %v404_v48, 0.0  ;;  %v663_v57 = vunpack.c.l.bf16 %v704_v44  ;;  %v664_v58 = vunpack.c.h.bf16 %v704_v44 }
  0x48   :  { %529 = vst [vmem:[%s1355_s4 + $0x190] sm:$0xff] %v465_v50  ;;  %530 = vst [vmem:[%s1355_s4 + $0x198] sm:$0xff] %v466_v51  ;;  %v469_v60 = vmax.f32 %v405_v52, 0.0  ;;  %v470_v61 = vmax.f32 %v406_v53, 0.0  ;;  %v667_v62 = vunpack.c.l.bf16 %v705_v49  ;;  %v668_v63 = vunpack.c.h.bf16 %v705_v49 }
  0x49   :  { %531 = vst [vmem:[%s1355_s4 + $0x1a0] sm:$0xff] %v467_v55  ;;  %532 = vst [vmem:[%s1355_s4 + $0x1a8] sm:$0xff] %v468_v56  ;;  %v208_v0 = vmul.f32 %v663_v57, %v739_v1  ;;  %v209_v2 = vmul.f32 %v664_v58, %v739_v1  ;;  %v671_v3 = vunpack.c.l.bf16 %v706_v54  ;;  %v672_v4 = vunpack.c.h.bf16 %v706_v54 }
  0x4a   :  { %533 = vst [vmem:[%s1355_s4 + $0x1b0] sm:$0xff] %v469_v60  ;;  %534 = vst [vmem:[%s1355_s4 + $0x1b8] sm:$0xff] %v470_v61  ;;  %v210_v8 = vmul.f32 %v667_v62, %v739_v1  ;;  %v211_v9 = vmul.f32 %v668_v63, %v739_v1  ;;  %v675_v10 = vunpack.c.l.bf16 %v707_v59  ;;  %v676_v11 = vunpack.c.h.bf16 %v707_v59 }
  0x4b   :  { %v279_v12 = vadd.f32 %v747_v5, %v208_v0  ;;  %v280_v13 = vadd.f32 %v747_v5, %v209_v2  ;;  %v212_v16 = vmul.f32 %v671_v3, %v739_v1  ;;  %v213_v17 = vmul.f32 %v672_v4, %v739_v1 }
  0x4c   :  { %v281_v18 = vadd.f32 %v747_v5, %v210_v8  ;;  %v282_v19 = vadd.f32 %v747_v5, %v211_v9  ;;  %v214_v22 = vmul.f32 %v675_v10, %v739_v1  ;;  %v215_v23 = vmul.f32 %v676_v11, %v739_v1 }
  0x4d   :  { %v407_v24 = vadd.f32 %v343_v6, %v279_v12  ;;  %v408_v25 = vadd.f32 %v344_v7, %v280_v13  ;;  %v283_v26 = vadd.f32 %v747_v5, %v212_v16  ;;  %v284_v27 = vadd.f32 %v747_v5, %v213_v17 }
  0x4e   :  { %v409_v30 = vadd.f32 %v345_v14, %v281_v18  ;;  %v410_v31 = vadd.f32 %v346_v15, %v282_v19  ;;  %v285_v32 = vadd.f32 %v747_v5, %v214_v22  ;;  %v286_v1 = vadd.f32 %v747_v5, %v215_v23 }
  0x4f   :  { %v471_v33 = vmax.f32 %v407_v24, 0.0  ;;  %v472_v34 = vmax.f32 %v408_v25, 0.0  ;;  %v411_v35 = vadd.f32 %v347_v20, %v283_v26  ;;  %v412_v36 = vadd.f32 %v348_v21, %v284_v27 }
  0x50   :  { %v473_v37 = vmax.f32 %v409_v30, 0.0  ;;  %v474_v38 = vmax.f32 %v410_v31, 0.0  ;;  %v413_v39 = vadd.f32 %v349_v28, %v285_v32  ;;  %v414_v40 = vadd.f32 %v350_v29, %v286_v1 }
  0x51   :  { %535 = vst [vmem:[%s1355_s4 + $0x1c0] sm:$0xff] %v471_v33  ;;  %536 = vst [vmem:[%s1355_s4 + $0x1c8] sm:$0xff] %v472_v34  ;;  %v475_v41 = vmax.f32 %v411_v35, 0.0  ;;  %v476_v42 = vmax.f32 %v412_v36, 0.0 }
  0x52   :  { %537 = vst [vmem:[%s1355_s4 + $0x1d0] sm:$0xff] %v473_v37  ;;  %538 = vst [vmem:[%s1355_s4 + $0x1d8] sm:$0xff] %v474_v38  ;;  %v477_v5 = vmax.f32 %v413_v39, 0.0  ;;  %v478_v43 = vmax.f32 %v414_v40, 0.0 }
  0x53   :  { %539 = vst [vmem:[%s1355_s4 + $0x1e0] sm:$0xff] %v475_v41  ;;  %540 = vst [vmem:[%s1355_s4 + $0x1e8] sm:$0xff] %v476_v42 }
  0x54   :  { %541 = vst [vmem:[%s1355_s4 + $0x1f0] sm:$0xff] %v477_v5  ;;  %542 = vst [vmem:[%s1355_s4 + $0x1f8] sm:$0xff] %v478_v43 }

// kernel: bottleneck_forward_nchw.6
= control target key start
LH: loop header
LB: loop body
LE: loop exit
PB: predicated region body
PF: predicated region fallthrough
CT: control target
= control target key end

     0   :  { %vm1261_vm0 = vcmask 1040384   ;;  %s2517_s1 = inlined_call_operand.vmem [shape: bf16[128,128], index: 1, kind: input, shape index: {}]   ;;  %s2518_s0 = inlined_call_operand.vmem [shape: bf16[512,128], index: 0, kind: input, shape index: {}]   ;;  %s2519_s2 = inlined_call_operand.vmem [shape: f32[1,128], index: 2, kind: input, shape index: {}]   ;;  %s2520_s3 = inlined_call_operand.vmem [shape: f32[1,128], index: 3, kind: input, shape index: {}]   ;;  %s2521_s4 = inlined_call_operand.vmem [shape: bf16[512,128], index: 4, kind: output, shape index: {0}]   ;;  %s2522_s5 = inlined_call_operand.vmem [shape: f32[1,2,128], index: 5, kind: output, shape index: {1}]  }
   0x1   :  { %v1896_v0 = vld [vmem:[%s2517_s1] sm:$0xff]   ;;  %v1897_v1 = vld [vmem:[%s2517_s1 + $0x8] sm:$0xff]   ;;  %v1898_v2 = vld [vmem:[%s2517_s1 + $0x10] sm:$0xff]  }
   0x2   :  { %1800 = vmatprep.subr.bf16.mxu0 %v1896_v0  ;;  %1880 = vmatprep.subr.bf16.mxu1 %v1896_v0  ;;  %v1899_v3 = vld [vmem:[%s2517_s1 + $0x18] sm:$0xff]   ;;  %v1411_v4 = vld [vmem:[%s2518_s0] sm:$0xff]   ;;  %v1698_v8 = vld [vmem:[%s2518_s0 + $0x8] sm:$0xff]  }
   0x3   :  { %1801 = vmatpush3.bf16.msra.mxu0 %v1896_v0  ;;  %1888 = vmatpush3.bf16.msra.mxu1 %v1896_v0  ;;  %v1952_v5 = vld [vmem:[%s2519_s2] ss:$0 sm:$0xff]  ;;  %v1412_v6 = vunpack.c.l.bf16 %v1411_v4  ;;  %v1413_v7 = vunpack.c.h.bf16 %v1411_v4  ;;  %v1699_v9 = vld [vmem:[%s2518_s0 + $0x10] sm:$0xff]   ;;  %v1416_v14 = vunpack.c.l.bf16 %v1698_v8  ;;  %v1417_v15 = vunpack.c.h.bf16 %v1698_v8  ;;  %v1901_v22 = vld [vmem:[%s2517_s1 + $0x28] sm:$0xff]  }
   0x4   :  { %1802 = vmatprep.subr.bf16.mxu0 %v1897_v1  ;;  %1881 = vmatprep.subr.bf16.mxu1 %v1897_v1  ;;  %v1963_v10 = vld [vmem:[%s2520_s3] ss:$0 sm:$0xff]  ;;  %v1420_v16 = vunpack.c.l.bf16 %v1699_v9  ;;  %v1421_v19 = vunpack.c.h.bf16 %v1699_v9  ;;  %v1700_v26 = vld [vmem:[%s2518_s0 + $0x18] sm:$0xff]   ;;  %v1902_v31 = vld [vmem:[%s2517_s1 + $0x30] sm:$0xff]  }
   0x5   :  { %v155_v11 = vmul.f32 %v1412_v6, %v1952_v5  ;;  %v156_v12 = vmul.f32 %v1413_v7, %v1952_v5  ;;  %v1900_v13 = vld [vmem:[%s2517_s1 + $0x20] sm:$0xff]   ;;  %v157_v23 = vmul.f32 %v1416_v14, %v1952_v5  ;;  %v158_v24 = vmul.f32 %v1417_v15, %v1952_v5  ;;  %v1702_v38 = vld [vmem:[%s2518_s0 + $0x28] sm:$0xff]   ;;  %v1703_v41 = vld [vmem:[%s2518_s0 + $0x30] sm:$0xff]  }
   0x6   :  { %v159_v25 = vmul.f32 %v1420_v16, %v1952_v5  ;;  %v160_v28 = vmul.f32 %v1421_v19, %v1952_v5  ;;  %v1701_v29 = vld [vmem:[%s2518_s0 + $0x20] sm:$0xff]   ;;  %v1424_v30 = vunpack.c.l.bf16 %v1700_v26  ;;  %v1425_v35 = vunpack.c.h.bf16 %v1700_v26  ;;  %v1704_v42 = vld [vmem:[%s2518_s0 + $0x38] sm:$0xff]   ;;  %v1706_v63 = vld [vmem:[%s2518_s0 + $0x48] sm:$0xff]  }
   0x7   :  { %1803 = vmatpush3.bf16.msra.mxu0 %v1897_v1  ;;  %1889 = vmatpush3.bf16.msra.mxu1 %v1897_v1  ;;  %v226_v17 = vadd.f32 %v1963_v10, %v155_v11  ;;  %v227_v18 = vadd.f32 %v1963_v10, %v156_v12  ;;  %v228_v32 = vadd.f32 %v1963_v10, %v157_v23  ;;  %v1428_v37 = vunpack.c.l.bf16 %v1701_v29  ;;  %v1903_v43 = vld [vmem:[%s2517_s1 + $0x38] sm:$0xff]   ;;  %v1705_v48 = vld [vmem:[%s2518_s0 + $0x40] sm:$0xff]   ;;  %v1707_v4 = vld [vmem:[%s2518_s0 + $0x50] sm:$0xff]  }
   0x8   :  { %1804 = vmatprep.subr.bf16.mxu0 %v1898_v2  ;;  %1882 = vmatprep.subr.bf16.mxu1 %v1898_v2  ;;  %v229_v33 = vadd.f32 %v1963_v10, %v158_v24  ;;  %v230_v34 = vadd.f32 %v1963_v10, %v159_v25  ;;  %v231_v36 = vadd.f32 %v1963_v10, %v160_v28  ;;  %v1429_v40 = vunpack.c.h.bf16 %v1701_v29  ;;  %v1708_v23 = vld [vmem:[%s2518_s0 + $0x58] sm:$0xff]  }
   0x9   :  { %v290_v20 = vmax.f32 %v226_v17, 0.0  ;;  %v291_v21 = vmax.f32 %v227_v18, 0.0  ;;  %v161_v39 = vmul.f32 %v1424_v30, %v1952_v5  ;;  %v292_v44 = vmax.f32 %v228_v32, 0.0 }
   0xa   :  { %v293_v45 = vmax.f32 %v229_v33, 0.0  ;;  %v294_v46 = vmax.f32 %v230_v34, 0.0  ;;  %v162_v47 = vmul.f32 %v1425_v35, %v1952_v5  ;;  %v295_v49 = vmax.f32 %v231_v36, 0.0 }
   0xb   :  { %1805 = vmatpush3.bf16.msra.mxu0 %v1898_v2  ;;  %1890 = vmatpush3.bf16.msra.mxu1 %v1898_v2  ;;  %v354_v27 = vpack.c.bf16 %v291_v21, %v290_v20  ;;  %v163_v50 = vmul.f32 %v1428_v37, %v1952_v5  ;;  %v1432_v51 = vunpack.c.l.bf16 %v1702_v38  ;;  %v1433_v52 = vunpack.c.h.bf16 %v1702_v38 }
   0xc   :  { %1806 = vmatprep.subr.bf16.mxu0 %v1899_v3  ;;  %1883 = vmatprep.subr.bf16.mxu1 %v1899_v3  ;;  %v1436_v53 = vunpack.c.l.bf16 %v1703_v41  ;;  %v1437_v54 = vunpack.c.h.bf16 %v1703_v41  ;;  %v1440_v55 = vunpack.c.l.bf16 %v1704_v42  ;;  %v1441_v56 = vunpack.c.h.bf16 %v1704_v42 }
   0xd   :  { %1816 = vmatprep.mubr.bf16.mxu0 %v354_v27  ;;  %v164_v57 = vmul.f32 %v1429_v40, %v1952_v5  ;;  %v1444_v58 = vunpack.c.l.bf16 %v1705_v48  ;;  %v1445_v59 = vunpack.c.h.bf16 %v1705_v48  ;;  %v355_v60 = vpack.c.bf16 %v293_v45, %v292_v44  ;;  %v1713_v44 = vld [vmem:[%s2518_s0 + $0x80] sm:$0xff]  }
   0xe   :  { %v232_v61 = vadd.f32 %v1963_v10, %v161_v39  ;;  %v233_v62 = vadd.f32 %v1963_v10, %v162_v47  ;;  %v356_v0 = vpack.c.bf16 %v295_v49, %v294_v46  ;;  %v234_v1 = vadd.f32 %v1963_v10, %v163_v50 }
   0xf   :  { %1807 = vmatpush3.bf16.msra.mxu0 %v1899_v3  ;;  %1891 = vmatpush3.bf16.msra.mxu1 %v1899_v3  ;;  %v165_v2 = vmul.f32 %v1432_v51, %v1952_v5  ;;  %v166_v3 = vmul.f32 %v1433_v52, %v1952_v5  ;;  %v167_v6 = vmul.f32 %v1436_v53, %v1952_v5  ;;  %v1448_v14 = vunpack.c.l.bf16 %v1706_v63  ;;  %v2056_v52 = vld [vmem:[%s2518_s0 + $0x60] sm:$0xff]  }
  0x10   :  { %1808 = vmatprep.subr.bf16.mxu0 %v1900_v13  ;;  %1884 = vmatprep.subr.bf16.mxu1 %v1900_v13  ;;  %v168_v7 = vmul.f32 %v1437_v54, %v1952_v5  ;;  %v169_v8 = vmul.f32 %v1440_v55, %v1952_v5  ;;  %v170_v9 = vmul.f32 %v1441_v56, %v1952_v5  ;;  %v296_v15 = vmax.f32 %v232_v61, 0.0 }
  0x11   :  { %v235_v11 = vadd.f32 %v1963_v10, %v164_v57  ;;  %v171_v12 = vmul.f32 %v1444_v58, %v1952_v5  ;;  %v297_v16 = vmax.f32 %v233_v62, 0.0  ;;  %v1449_v17 = vunpack.c.h.bf16 %v1706_v63 }
  0x12   :  { %v1452_v18 = vunpack.c.l.bf16 %v1707_v4  ;;  %v298_v19 = vmax.f32 %v234_v1, 0.0  ;;  %v236_v20 = vadd.f32 %v1963_v10, %v165_v2  ;;  %v237_v21 = vadd.f32 %v1963_v10, %v166_v3 }
  0x13   :  { %1809 = vmatpush3.bf16.msra.mxu0 %v1900_v13  ;;  %1892 = vmatpush3.bf16.msra.mxu1 %v1900_v13  ;;  %v172_v13 = vmul.f32 %v1445_v59, %v1952_v5  ;;  %v238_v24 = vadd.f32 %v1963_v10, %v167_v6  ;;  %v239_v25 = vadd.f32 %v1963_v10, %v168_v7  ;;  %v299_v28 = vmax.f32 %v235_v11, 0.0  ;;  %v1714_v59 = vld [vmem:[%s2518_s0 + $0x88] sm:$0xff]   ;;  %v1716_v11 = vld [vmem:[%s2518_s0 + $0x98] sm:$0xff]  }
  0x14   :  { %1810 = vmatprep.subr.bf16.mxu0 %v1901_v22  ;;  %1885 = vmatprep.subr.bf16.mxu1 %v1901_v22  ;;  %v240_v26 = vadd.f32 %v1963_v10, %v169_v8  ;;  %v241_v27 = vadd.f32 %v1963_v10, %v170_v9  ;;  %v242_v29 = vadd.f32 %v1963_v10, %v171_v12  ;;  %v1456_v35 = vunpack.c.l.bf16 %v1708_v23 }
  0x15   :  { %v243_v30 = vadd.f32 %v1963_v10, %v172_v13  ;;  %v357_v32 = vpack.c.bf16 %v297_v16, %v296_v15  ;;  %v174_v33 = vmul.f32 %v1449_v17, %v1952_v5  ;;  %v175_v34 = vmul.f32 %v1452_v18, %v1952_v5 }
  0x16   :  { %v300_v36 = vmax.f32 %v236_v20, 0.0  ;;  %v301_v37 = vmax.f32 %v237_v21, 0.0  ;;  %v1457_v39 = vunpack.c.h.bf16 %v1708_v23  ;;  %v302_v40 = vmax.f32 %v238_v24, 0.0  ;;  %v1717_v24 = vld [vmem:[%s2518_s0 + $0xa0] sm:$0xff]  }
  0x17   :  { %1811 = vmatpush3.bf16.msra.mxu0 %v1901_v22  ;;  %1893 = vmatpush3.bf16.msra.mxu1 %v1901_v22  ;;  %v1453_v22 = vunpack.c.h.bf16 %v1707_v4  ;;  %v303_v41 = vmax.f32 %v239_v25, 0.0  ;;  %v304_v42 = vmax.f32 %v240_v26, 0.0  ;;  %v358_v45 = vpack.c.bf16 %v299_v28, %v298_v19 }
  0x18   :  { %1812 = vmatprep.subr.bf16.mxu0 %v1902_v31  ;;  %1886 = vmatprep.subr.bf16.mxu1 %v1902_v31  ;;  %v306_v46 = vmax.f32 %v242_v29, 0.0  ;;  %v307_v47 = vmax.f32 %v243_v30, 0.0  ;;  %v245_v49 = vadd.f32 %v1963_v10, %v174_v33  ;;  %v2050_v50 = vadd.f32 %v1963_v10, %v175_v34  ;;  %v1718_v33 = vld [vmem:[%s2518_s0 + $0xa8] sm:$0xff]  }
  0x19   :  { %v176_v38 = vmul.f32 %v1453_v22, %v1952_v5  ;;  %v177_v51 = vmul.f32 %v1456_v35, %v1952_v5  ;;  %v178_v54 = vmul.f32 %v1457_v39, %v1952_v5  ;;  %v1476_v55 = vunpack.c.l.bf16 %v1713_v44 }
  0x1a   :  { %v359_v56 = vpack.c.bf16 %v301_v37, %v300_v36  ;;  %v360_v57 = vpack.c.bf16 %v303_v41, %v302_v40  ;;  %v1460_v62 = vunpack.c.l.bf16 %v2056_v52  ;;  %v1477_v63 = vunpack.c.h.bf16 %v1713_v44 }
  0x1b   :  { %1813 = vmatpush3.bf16.msra.mxu0 %v1902_v31  ;;  %1894 = vmatpush3.bf16.msra.mxu1 %v1902_v31  ;;  %v173_v31 = vmul.f32 %v1448_v14, %v1952_v5  ;;  %v2059_v53 = vadd.f32 %v1963_v10, %v176_v38  ;;  %v309_v1 = vmax.f32 %v245_v49, 0.0  ;;  %v310_v2 = vmax.f32 %v2050_v50, 0.0 }
  0x1c   :  { %1814 = vmatprep.subr.bf16.mxu0 %v1903_v43  ;;  %1887 = vmatprep.subr.bf16.mxu1 %v1903_v43  ;;  %v2075_v3 = vadd.f32 %v1963_v10, %v177_v51  ;;  %v187_v4 = vmul.f32 %v1476_v55, %v1952_v5  ;;  %v2080_v7 = vadd.f32 %v1963_v10, %v178_v54  ;;  %v1480_v9 = vunpack.c.l.bf16 %v1714_v59 }
  0x1d   :  { %v244_v48 = vadd.f32 %v1963_v10, %v173_v31  ;;  %v311_v6 = vmax.f32 %v2059_v53, 0.0  ;;  %v188_v8 = vmul.f32 %v1477_v63, %v1952_v5  ;;  %v1461_v12 = vunpack.c.h.bf16 %v2056_v52 }
  0x1e   :  { %v258_v13 = vadd.f32 %v1963_v10, %v187_v4  ;;  %v1481_v14 = vunpack.c.h.bf16 %v1714_v59  ;;  %v2089_v16 = vmul.f32 %v1460_v62, %v1952_v5  ;;  %v189_v18 = vmul.f32 %v1480_v9, %v1952_v5 }
  0x1f   :  { %1815 = vmatpush3.bf16.msra.mxu0 %v1903_v43  ;;  %1895 = vmatpush3.bf16.msra.mxu1 %v1903_v43  ;;  %v305_v43 = vmax.f32 %v241_v27, 0.0  ;;  %v308_v61 = vmax.f32 %v244_v48, 0.0  ;;  %v259_v17 = vadd.f32 %v1963_v10, %v188_v8  ;;  %v1488_v23 = vunpack.c.l.bf16 %v1716_v11 }
  0x20   :  { %v322_v20 = vmax.f32 %v258_v13, 0.0  ;;  %v190_v21 = vmul.f32 %v1481_v14, %v1952_v5  ;;  %v260_v27 = vadd.f32 %v1963_v10, %v189_v18  ;;  %v1489_v31 = vunpack.c.h.bf16 %v1716_v11  ;;  %v1721_v18 = vld [vmem:[%s2518_s0 + $0xc0] sm:$0xff]  }
  0x21   :  { %v2062_v58 = vpack.c.bf16 %v305_v43, %v304_v42  ;;  %v2098_v25 = vpack.c.bf16 %v309_v1, %v308_v61  ;;  %v323_v26 = vmax.f32 %v259_v17, 0.0  ;;  %v1492_v37 = vunpack.c.l.bf16 %v1717_v24  ;;  %v1720_v1 = vld [vmem:[%s2518_s0 + $0xb8] sm:$0xff]  }
  0x22   :  { %1817 = vmatmul.mubr.bf16.vlgmr.msra.gmra.mrb[0].mxu0 %v355_v60  ;;  %v2067_v60 = vpack.c.bf16 %v307_v47, %v306_v46  ;;  %v261_v29 = vadd.f32 %v1963_v10, %v190_v21  ;;  %v324_v35 = vmax.f32 %v260_v27, 0.0  ;;  %v194_v40 = vmul.f32 %v1489_v31, %v1952_v5  ;;  %v1719_v46 = vld [vmem:[%s2518_s0 + $0xb0] sm:$0xff]   ;;  %v1710_v47 = vld [vmem:[%s2518_s0 + $0x68] sm:$0xff]  }
  0x23   :  { %1820 = vmatprep.mubr.bf16.mxu0 %v356_v0  ;;  %v1715_v0 = vld [vmem:[%s2518_s0 + $0x90] sm:$0xff]   ;;  %v370_v34 = vpack.c.bf16 %v323_v26, %v322_v20  ;;  %v1493_v43 = vunpack.c.h.bf16 %v1717_v24  ;;  %v195_v44 = vmul.f32 %v1492_v37, %v1952_v5  ;;  %v1497_v54 = vunpack.c.h.bf16 %v1718_v33 }
  0x24   :  { %v1484_v15 = vunpack.c.l.bf16 %v1715_v0  ;;  %v1485_v19 = vunpack.c.h.bf16 %v1715_v0  ;;  %v325_v38 = vmax.f32 %v261_v29, 0.0  ;;  %v265_v49 = vadd.f32 %v1963_v10, %v194_v40  ;;  %v1723_v40 = vld [vmem:[%s2518_s0 + $0xd0] sm:$0xff]  }
  0x25   :  { %1848 = vmatprep.mubr.bf16.mxu1 %v370_v34  ;;  %v198_v62 = vmul.f32 %v1497_v54, %v1952_v5  ;;  %v1500_v63 = vunpack.c.l.bf16 %v1719_v46  ;;  %v1501_v0 = vunpack.c.h.bf16 %v1719_v46  ;;  %v312_v4 = vmax.f32 %v2075_v3, 0.0 }
  0x26   :  { %v191_v22 = vmul.f32 %v1484_v15, %v1952_v5  ;;  %v192_v28 = vmul.f32 %v1485_v19, %v1952_v5  ;;  %v371_v48 = vpack.c.bf16 %v325_v38, %v324_v35  ;;  %v329_v61 = vmax.f32 %v265_v49, 0.0 }
  0x27   :  { %v1464_v8 = vunpack.c.l.bf16 %v1710_v47  ;;  %v313_v13 = vmax.f32 %v2080_v7, 0.0  ;;  %v1465_v14 = vunpack.c.h.bf16 %v1710_v47  ;;  %v199_v15 = vmul.f32 %v1500_v63, %v1952_v5 }
  0x28   :  { %v262_v30 = vadd.f32 %v1963_v10, %v191_v22  ;;  %v263_v36 = vadd.f32 %v1963_v10, %v192_v28  ;;  %1849 = vmatmul.mubr.bf16.vlgmr.msra.gmra.mrb[0].mxu1 %v371_v48  ;;  %v200_v17 = vmul.f32 %v1501_v0, %v1952_v5  ;;  %v180_v3 = vmul.f32 %v1461_v12, %v1952_v5 }
  0x29   :  { %v1504_v19 = vunpack.c.l.bf16 %v1720_v1  ;;  %v1505_v20 = vunpack.c.h.bf16 %v1720_v1  ;;  %v270_v24 = vadd.f32 %v1963_v10, %v199_v15  ;;  %v1508_v27 = vunpack.c.l.bf16 %v1721_v18  ;;  %v1724_v15 = vld [vmem:[%s2518_s0 + $0xd8] sm:$0xff]  }
  0x2a   :  { %1821 = vmatmul.mubr.bf16.gmra.mrb[4].mxu0 %v357_v32  ;;  %v193_v32 = vmul.f32 %v1488_v23, %v1952_v5  ;;  %v326_v39 = vmax.f32 %v262_v30, 0.0  ;;  %v327_v42 = vmax.f32 %v263_v36, 0.0  ;;  %v269_v23 = vadd.f32 %v1963_v10, %v198_v62 }
  0x2b   :  { %1824 = vmatprep.mubr.bf16.mxu0 %v358_v45  ;;  %v1496_v45 = vunpack.c.l.bf16 %v1718_v33  ;;  %v1509_v52 = vunpack.c.h.bf16 %v1721_v18  ;;  %v364_v12 = vpack.c.bf16 %v311_v6, %v310_v2  ;;  %v250_v28 = vadd.f32 %v1963_v10, %v2089_v16  ;;  %v1712_v33 = vld [vmem:[%s2518_s0 + $0x78] sm:$0xff]   ;;  %v1722_v16 = vld [vmem:[%s2518_s0 + $0xc8] sm:$0xff]  }
  0x2c   :  { %v264_v41 = vadd.f32 %v1963_v10, %v193_v32  ;;  %v372_v55 = vpack.c.bf16 %v327_v42, %v326_v39  ;;  %v251_v31 = vadd.f32 %v1963_v10, %v180_v3  ;;  %v181_v32 = vmul.f32 %v1464_v8, %v1952_v5 }
  0x2d   :  { %v197_v59 = vmul.f32 %v1496_v45, %v1952_v5  ;;  %v201_v34 = vmul.f32 %v1504_v19, %v1952_v5  ;;  %v202_v50 = vmul.f32 %v1505_v20, %v1952_v5  ;;  %v365_v35 = vpack.c.bf16 %v313_v13, %v312_v4 }
  0x2e   :  { %v328_v51 = vmax.f32 %v264_v41, 0.0  ;;  %1852 = vmatprep.mubr.bf16.mxu1 %v372_v55  ;;  %v182_v53 = vmul.f32 %v1465_v14, %v1952_v5  ;;  %v333_v6 = vmax.f32 %v269_v23, 0.0  ;;  %v334_v36 = vmax.f32 %v270_v24, 0.0 }
  0x2f   :  { %v268_v22 = vadd.f32 %v1963_v10, %v197_v59  ;;  %v203_v38 = vmul.f32 %v1508_v27, %v1952_v5  ;;  %v204_v39 = vmul.f32 %v1509_v52, %v1952_v5  ;;  %v314_v41 = vmax.f32 %v250_v28, 0.0 }
  0x30   :  { %v373_v21 = vpack.c.bf16 %v329_v61, %v328_v51  ;;  %v315_v45 = vmax.f32 %v251_v31, 0.0  ;;  %v272_v46 = vadd.f32 %v1963_v10, %v201_v34  ;;  %v273_v47 = vadd.f32 %v1963_v10, %v202_v50 }
  0x31   :  { %v332_v2 = vmax.f32 %v268_v22, 0.0  ;;  %v1512_v48 = vunpack.c.l.bf16 %v1722_v16  ;;  %v1513_v51 = vunpack.c.h.bf16 %v1722_v16  ;;  %v1516_v54 = vunpack.c.l.bf16 %v1723_v40 }
  0x32   :  { %1825 = vmatmul.mubr.bf16.gmra.mrb[8].mxu0 %v359_v56  ;;  %v196_v56 = vmul.f32 %v1493_v43, %v1952_v5  ;;  %1853 = vmatmul.mubr.bf16.gmra.mrb[4].mxu1 %v373_v21  ;;  %v1517_v55 = vunpack.c.h.bf16 %v1723_v40  ;;  %v275_v59 = vadd.f32 %v1963_v10, %v204_v39  ;;  %v253_v61 = vadd.f32 %v1963_v10, %v182_v53  ;;  %v1725_v21 = vld [vmem:[%s2518_s0 + $0xe0] sm:$0xff]  }
  0x33   :  { %1828 = vmatprep.mubr.bf16.mxu0 %v360_v57  ;;  %v266_v57 = vadd.f32 %v1963_v10, %v195_v44  ;;  %v1472_v44 = vunpack.c.l.bf16 %v1712_v33  ;;  %v375_v49 = vpack.c.bf16 %v333_v6, %v332_v2  ;;  %v1473_v0 = vunpack.c.h.bf16 %v1712_v33 }
  0x34   :  { %v267_v9 = vadd.f32 %v1963_v10, %v196_v56  ;;  %v252_v56 = vadd.f32 %v1963_v10, %v181_v32  ;;  %v366_v1 = vpack.c.bf16 %v315_v45, %v314_v41  ;;  %v336_v4 = vmax.f32 %v272_v46, 0.0  ;;  %v1727_v41 = vld [vmem:[%s2518_s0 + $0xf0] sm:$0xff]  }
  0x35   :  { %v330_v11 = vmax.f32 %v266_v57, 0.0  ;;  %v274_v57 = vadd.f32 %v1963_v10, %v203_v38  ;;  %v337_v8 = vmax.f32 %v273_v47, 0.0  ;;  %v207_v13 = vmul.f32 %v1516_v54, %v1952_v5 }
  0x36   :  { %v331_v7 = vmax.f32 %v267_v9, 0.0  ;;  %v205_v9 = vmul.f32 %v1512_v48, %v1952_v5  ;;  %v208_v14 = vmul.f32 %v1517_v55, %v1952_v5  ;;  %v339_v3 = vmax.f32 %v275_v59, 0.0 }
  0x37   :  { %v338_v18 = vmax.f32 %v274_v57, 0.0  ;;  %v186_v20 = vmul.f32 %v1473_v0, %v1952_v5  ;;  %v377_v23 = vpack.c.bf16 %v337_v8, %v336_v4  ;;  %v278_v27 = vadd.f32 %v1963_v10, %v207_v13 }
  0x38   :  { %v374_v26 = vpack.c.bf16 %v331_v7, %v330_v11  ;;  %v206_v11 = vmul.f32 %v1513_v51, %v1952_v5  ;;  %v317_v7 = vmax.f32 %v253_v61, 0.0  ;;  %v276_v24 = vadd.f32 %v1963_v10, %v205_v9 }
  0x39   :  { %v279_v52 = vadd.f32 %v1963_v10, %v208_v14  ;;  %v378_v28 = vpack.c.bf16 %v339_v3, %v338_v18  ;;  %v257_v33 = vadd.f32 %v1963_v10, %v186_v20  ;;  %v342_v2 = vmax.f32 %v278_v27, 0.0 }
  0x3a   :  { %1829 = vmatmul.mubr.bf16.gmra.mrb[12].mxu0 %v2062_v58  ;;  %v1711_v58 = vld [vmem:[%s2518_s0 + $0x70] sm:$0xff]   ;;  %1856 = vmatprep.mubr.bf16.mxu1 %v374_v26  ;;  %v1520_v26 = vunpack.c.l.bf16 %v1724_v15  ;;  %v340_v50 = vmax.f32 %v276_v24, 0.0  ;;  %v1532_v51 = vunpack.c.l.bf16 %v1727_v41  ;;  %v1533_v54 = vunpack.c.h.bf16 %v1727_v41 }
  0x3b   :  { %1832 = vmatprep.mubr.bf16.mxu0 %v2067_v60  ;;  %v271_v60 = vadd.f32 %v1963_v10, %v200_v17  ;;  %v1468_v29 = vunpack.c.l.bf16 %v1711_v58  ;;  %v1469_v30 = vunpack.c.h.bf16 %v1711_v58  ;;  %1857 = vmatmul.mubr.bf16.gmra.mrb[8].mxu1 %v375_v49  ;;  %v185_v17 = vmul.f32 %v1472_v44, %v1952_v5 }
  0x3c   :  { %v316_v58 = vmax.f32 %v252_v56, 0.0  ;;  %v343_v6 = vmax.f32 %v279_v52, 0.0  ;;  %v321_v40 = vmax.f32 %v257_v33, 0.0  ;;  %v216_v0 = vmul.f32 %v1533_v54, %v1952_v5 }
  0x3d   :  { %v335_v37 = vmax.f32 %v271_v60, 0.0  ;;  %v183_v42 = vmul.f32 %v1468_v29, %v1952_v5  ;;  %v184_v43 = vmul.f32 %v1469_v30, %v1952_v5  ;;  %v277_v60 = vadd.f32 %v1963_v10, %v206_v11 }
  0x3e   :  { %v1524_v29 = vunpack.c.l.bf16 %v1725_v21  ;;  %v1525_v30 = vunpack.c.h.bf16 %v1725_v21  ;;  %v367_v31 = vpack.c.bf16 %v317_v7, %v316_v58  ;;  %v256_v32 = vadd.f32 %v1963_v10, %v185_v17 }
  0x3f   :  { %v254_v62 = vadd.f32 %v1963_v10, %v183_v42  ;;  %v255_v63 = vadd.f32 %v1963_v10, %v184_v43  ;;  %v341_v53 = vmax.f32 %v277_v60, 0.0  ;;  %v380_v45 = vpack.c.bf16 %v343_v6, %v342_v2 }
  0x40   :  { %v212_v38 = vmul.f32 %v1525_v30, %v1952_v5  ;;  %v320_v39 = vmax.f32 %v256_v32, 0.0  ;;  %v287_v17 = vadd.f32 %v1963_v10, %v216_v0 }
  0x41   :  { %v318_v19 = vmax.f32 %v254_v62, 0.0  ;;  %v319_v22 = vmax.f32 %v255_v63, 0.0  ;;  %v379_v44 = vpack.c.bf16 %v341_v53, %v340_v50  ;;  %v215_v63 = vmul.f32 %v1532_v51, %v1952_v5 }
  0x42   :  { %1833 = vmatmul.mubr.bf16.gmra.mrb[16].mxu0 %v2098_v25  ;;  %v376_v25 = vpack.c.bf16 %v335_v37, %v334_v36  ;;  %v1726_v36 = vld [vmem:[%s2518_s0 + $0xe8] sm:$0xff]   ;;  %v211_v37 = vmul.f32 %v1524_v29, %v1952_v5  ;;  %v283_v49 = vadd.f32 %v1963_v10, %v212_v38  ;;  %v369_v55 = vpack.c.bf16 %v321_v40, %v320_v39 }
  0x43   :  { %1836 = vmatprep.mubr.bf16.mxu0 %v364_v12  ;;  %v1521_v12 = vunpack.c.h.bf16 %v1724_v15  ;;  %v368_v34 = vpack.c.bf16 %v319_v22, %v318_v19  ;;  %v1528_v43 = vunpack.c.l.bf16 %v1726_v36  ;;  %v1529_v47 = vunpack.c.h.bf16 %v1726_v36 }
  0x44   :  { %1860 = vmatprep.mubr.bf16.mxu1 %v376_v25  ;;  %v282_v48 = vadd.f32 %v1963_v10, %v211_v37  ;;  %v347_v62 = vmax.f32 %v283_v49, 0.0  ;;  %v286_v15 = vadd.f32 %v1963_v10, %v215_v63  ;;  %v351_v20 = vmax.f32 %v287_v17, 0.0 }
  0x45   :  { %1861 = vmatmul.mubr.bf16.gmra.mrb[12].mxu1 %v377_v23  ;;  %v210_v16 = vmul.f32 %v1521_v12, %v1952_v5  ;;  %v213_v56 = vmul.f32 %v1528_v43, %v1952_v5  ;;  %v214_v59 = vmul.f32 %v1529_v47, %v1952_v5 }
  0x46   :  { %1864 = vmatprep.mubr.bf16.mxu1 %v378_v28  ;;  %v346_v61 = vmax.f32 %v282_v48, 0.0  ;;  %v350_v19 = vmax.f32 %v286_v15, 0.0 }
  0x47   :  { %v281_v46 = vadd.f32 %v1963_v10, %v210_v16  ;;  %v284_v4 = vadd.f32 %v1963_v10, %v213_v56  ;;  %v285_v9 = vadd.f32 %v1963_v10, %v214_v59 }
  0x48   :  { %v382_v14 = vpack.c.bf16 %v347_v62, %v346_v61  ;;  %v384_v24 = vpack.c.bf16 %v351_v20, %v350_v19 }
  0x49   :  { %v345_v57 = vmax.f32 %v281_v46, 0.0  ;;  %v348_v18 = vmax.f32 %v284_v4, 0.0  ;;  %v349_v3 = vmax.f32 %v285_v9, 0.0 }
  0x4a   :  { %1837 = vmatmul.mubr.bf16.gmra.mrb[20].mxu0 %v365_v35  ;;  %v209_v35 = vmul.f32 %v1520_v26, %v1952_v5 }
  0x4b   :  { %1840 = vmatprep.mubr.bf16.mxu0 %v366_v1  ;;  %v1728_v1 = vld [vmem:[%s2518_s0 + $0xf8] sm:$0xff]   ;;  %v383_v21 = vpack.c.bf16 %v349_v3, %v348_v18 }
  0x4c   :  { %v280_v42 = vadd.f32 %v1963_v10, %v209_v35  ;;  %v1536_v11 = vunpack.c.l.bf16 %v1728_v1  ;;  %v1537_v13 = vunpack.c.h.bf16 %v1728_v1 }
  0x4d   :  { %1865 = vmatmul.mubr.bf16.gmra.mrb[16].mxu1 %v379_v44 }
  0x4e   :  { %v344_v25 = vmax.f32 %v280_v42, 0.0  ;;  %1868 = vmatprep.mubr.bf16.mxu1 %v380_v45  ;;  %v217_v58 = vmul.f32 %v1536_v11, %v1952_v5  ;;  %v218_v7 = vmul.f32 %v1537_v13, %v1952_v5 }
  0x50   :  { %v381_v8 = vpack.c.bf16 %v345_v57, %v344_v25  ;;  %v288_v22 = vadd.f32 %v1963_v10, %v217_v58  ;;  %v289_v23 = vadd.f32 %v1963_v10, %v218_v7 }
  0x52   :  { %1841 = vmatmul.mubr.bf16.gmra.mrb[24].mxu0 %v367_v31  ;;  %v352_v26 = vmax.f32 %v288_v22, 0.0  ;;  %v353_v60 = vmax.f32 %v289_v23, 0.0 }
  0x53   :  { %1844 = vmatprep.mubr.bf16.mxu0 %v368_v34 }
  0x54   :  { %v385_v27 = vpack.c.bf16 %v353_v60, %v352_v26 }
  0x55   :  { %1869 = vmatmul.mubr.bf16.gmra.mrb[20].mxu1 %v381_v8 }
  0x56   :  { %1872 = vmatprep.mubr.bf16.mxu1 %v382_v14 }
  0x5a   :  { %1845 = vmatmul.mubr.bf16.gmra.mrb[28].mxu0 %v369_v55 }
  0x5d   :  { %1873 = vmatmul.mubr.bf16.gmra.mrb[24].mxu1 %v383_v21 }
  0x5e   :  { %1876 = vmatprep.mubr.bf16.mxu1 %v384_v24 }
  0x65   :  { %1877 = vmatmul.mubr.bf16.gmra.mrb[28].mxu1 %v385_v27 }
  0xf5   :  { %v1818_v52 = vpop.f32.mrb[0].mxu0 }
  0xf6   :  { %v484_v12 = vpop.f32.mrb[1].mxu0  ;;  %v1130_v10 = vmul.f32 %v1818_v52, %v1818_v52 }
  0xf7   :  { %v1819_v28 = vpop.f32.mrb[2].mxu0  ;;  %v1128_v30 = vmul.f32 %v484_v12, %v484_v12 }
  0xf8   :  { %v1546_v29 = vpack.c.bf16 %v1819_v28, %v1818_v52  ;;  %v487_v5 = vpop.f32.mrb[3].mxu0  ;;  %v1131_v35 = vmul.f32 %v1819_v28, %v1819_v28 }
  0xf9   :  { %v1541_v31 = vpack.c.bf16 %v487_v5, %v484_v12  ;;  %v1059_v32 = vadd.f32 %v487_v5, %v484_v12  ;;  %v1129_v33 = vmul.f32 %v487_v5, %v487_v5 }
  0xfa   :  { %1729 = vst [vmem:[%s2521_s4 + $0x8] sm:$0xff] %v1546_v29  }
  0xfb   :  { %1542 = vst [vmem:[%s2521_s4] sm:$0xff] %v1541_v31   ;;  %v1060_v34 = vadd.f32 %v1818_v52, %v1059_v32  ;;  %v1192_v50 = vadd.f32 %v1129_v33, %v1128_v30  ;;  %v2244_v14 = vpop.f32.mrb[0].mxu1 }
  0xfc   :  { %v2246_v15 = vpop.f32.mrb[1].mxu1 }
  0xfd   :  { %v1193_v53 = vadd.f32 %v1192_v50, %v1130_v10  ;;  %v1822_v2 = vpop.f32.mrb[4].mxu0  ;;  %v1061_v6 = vadd.f32 %v1819_v28, %v1060_v34  ;;  %v2248_v7 = vpop.f32.mrb[2].mxu1 }
  0xfe   :  { %v500_v16 = vpop.f32.mrb[5].mxu0  ;;  %v1134_v46 = vmul.f32 %v1822_v2, %v1822_v2  ;;  %v1626_v20 = vpack.c.bf16 %v2248_v7, %v2244_v14  ;;  %v2252_v21 = vpop.f32.mrb[3].mxu1 }
  0xff   :  { %v1062_v36 = vadd.f32 %v1061_v6, %v500_v16  ;;  %v1132_v37 = vmul.f32 %v500_v16, %v500_v16  ;;  %v1194_v38 = vadd.f32 %v1193_v53, %v1131_v35  ;;  %v1823_v39 = vpop.f32.mrb[6].mxu0  ;;  %v1621_v60 = vpack.c.bf16 %v2252_v21, %v2246_v15 }
 0x100   :  { %v1556_v40 = vpack.c.bf16 %v1823_v39, %v1822_v2  ;;  %v503_v41 = vpop.f32.mrb[7].mxu0  ;;  %v1135_v49 = vmul.f32 %v1823_v39, %v1823_v39  ;;  %1745 = vst [vmem:[%s2521_s4 + $0x88] sm:$0xff] %v1626_v20  }
 0x101   :  { %v1195_v42 = vadd.f32 %v1194_v38, %v1132_v37  ;;  %v1551_v43 = vpack.c.bf16 %v503_v41, %v500_v16  ;;  %v1063_v44 = vadd.f32 %v1062_v36, %v503_v41  ;;  %v1133_v45 = vmul.f32 %v503_v41, %v503_v41  ;;  %1744 = vst [vmem:[%s2521_s4 + $0x80] sm:$0xff] %v1621_v60  }
 0x102   :  { %1731 = vst [vmem:[%s2521_s4 + $0x18] sm:$0xff] %v1556_v40  }
 0x103   :  { %1730 = vst [vmem:[%s2521_s4 + $0x10] sm:$0xff] %v1551_v43   ;;  %v1064_v47 = vadd.f32 %v1822_v2, %v1063_v44  ;;  %v1196_v48 = vadd.f32 %v1195_v42, %v1133_v45 }
 0x105   :  { %v1197_v51 = vadd.f32 %v1196_v48, %v1134_v46  ;;  %v1826_v54 = vpop.f32.mrb[8].mxu0  ;;  %v1065_v55 = vadd.f32 %v1823_v39, %v1064_v47  ;;  %v2268_v33 = vpop.f32.mrb[4].mxu1 }
 0x106   :  { %v516_v56 = vpop.f32.mrb[9].mxu0  ;;  %v1138_v9 = vmul.f32 %v1826_v54, %v1826_v54  ;;  %v2270_v10 = vpop.f32.mrb[5].mxu1 }
 0x107   :  { %v1066_v25 = vadd.f32 %v1065_v55, %v516_v56  ;;  %v1136_v57 = vmul.f32 %v516_v56, %v516_v56  ;;  %v1198_v59 = vadd.f32 %v1197_v51, %v1135_v49  ;;  %v1827_v61 = vpop.f32.mrb[10].mxu0  ;;  %v2272_v2 = vpop.f32.mrb[6].mxu1 }
 0x108   :  { %v1566_v62 = vpack.c.bf16 %v1827_v61, %v1826_v54  ;;  %v519_v63 = vpop.f32.mrb[11].mxu0  ;;  %v1139_v17 = vmul.f32 %v1827_v61, %v1827_v61  ;;  %v1636_v16 = vpack.c.bf16 %v2272_v2, %v2268_v33  ;;  %v2276_v36 = vpop.f32.mrb[7].mxu1 }
 0x109   :  { %v1199_v0 = vadd.f32 %v1198_v59, %v1136_v57  ;;  %v1561_v1 = vpack.c.bf16 %v519_v63, %v516_v56  ;;  %v1067_v4 = vadd.f32 %v1066_v25, %v519_v63  ;;  %v1137_v8 = vmul.f32 %v519_v63, %v519_v63 }
 0x10a   :  { %1733 = vst [vmem:[%s2521_s4 + $0x28] sm:$0xff] %v1566_v62   ;;  %v1631_v41 = vpack.c.bf16 %v2276_v36, %v2270_v10  ;;  %1747 = vst [vmem:[%s2521_s4 + $0x98] sm:$0xff] %v1636_v16  }
 0x10b   :  { %1732 = vst [vmem:[%s2521_s4 + $0x20] sm:$0xff] %v1561_v1   ;;  %v1068_v11 = vadd.f32 %v1826_v54, %v1067_v4  ;;  %v1200_v13 = vadd.f32 %v1199_v0, %v1137_v8 }
 0x10c   :  { %1746 = vst [vmem:[%s2521_s4 + $0x90] sm:$0xff] %v1631_v41  }
 0x10d   :  { %v1201_v18 = vadd.f32 %v1200_v13, %v1138_v9  ;;  %v1830_v3 = vpop.f32.mrb[12].mxu0  ;;  %v1069_v58 = vadd.f32 %v1827_v61, %v1068_v11 }
 0x10e   :  { %v532_v19 = vpop.f32.mrb[13].mxu0  ;;  %v1142_v30 = vmul.f32 %v1830_v3, %v1830_v3  ;;  %v2292_v54 = vpop.f32.mrb[8].mxu1 }
 0x10f   :  { %v1070_v22 = vadd.f32 %v1069_v58, %v532_v19  ;;  %v1140_v23 = vmul.f32 %v532_v19, %v532_v19  ;;  %v1202_v24 = vadd.f32 %v1201_v18, %v1139_v17  ;;  %v1831_v26 = vpop.f32.mrb[14].mxu0  ;;  %v2294_v55 = vpop.f32.mrb[9].mxu1 }
 0x110   :  { %v1576_v27 = vpack.c.bf16 %v1831_v26, %v1830_v3  ;;  %v535_v52 = vpop.f32.mrb[15].mxu0  ;;  %v1143_v34 = vmul.f32 %v1831_v26, %v1831_v26  ;;  %v2296_v61 = vpop.f32.mrb[10].mxu1 }
 0x111   :  { %v1203_v12 = vadd.f32 %v1202_v24, %v1140_v23  ;;  %v1571_v28 = vpack.c.bf16 %v535_v52, %v532_v19  ;;  %v1071_v29 = vadd.f32 %v1070_v22, %v535_v52  ;;  %v1141_v5 = vmul.f32 %v535_v52, %v535_v52  ;;  %v2300_v0 = vpop.f32.mrb[11].mxu1 }
 0x112   :  { %1735 = vst [vmem:[%s2521_s4 + $0x38] sm:$0xff] %v1576_v27   ;;  %v1646_v63 = vpack.c.bf16 %v2296_v61, %v2292_v54  ;;  %v1641_v11 = vpack.c.bf16 %v2300_v0, %v2294_v55 }
 0x113   :  { %1734 = vst [vmem:[%s2521_s4 + $0x30] sm:$0xff] %v1571_v28   ;;  %v1072_v31 = vadd.f32 %v1830_v3, %v1071_v29  ;;  %v1204_v32 = vadd.f32 %v1203_v12, %v1141_v5 }
 0x114   :  { %1749 = vst [vmem:[%s2521_s4 + $0xa8] sm:$0xff] %v1646_v63   ;;  %1748 = vst [vmem:[%s2521_s4 + $0xa0] sm:$0xff] %v1641_v11  }
 0x115   :  { %v1205_v50 = vadd.f32 %v1204_v32, %v1142_v30  ;;  %v1834_v35 = vpop.f32.mrb[16].mxu0  ;;  %v1073_v53 = vadd.f32 %v1831_v26, %v1072_v31 }
 0x116   :  { %v548_v6 = vpop.f32.mrb[17].mxu0  ;;  %v1146_v48 = vmul.f32 %v1834_v35, %v1834_v35 }
 0x117   :  { %v1074_v37 = vadd.f32 %v1073_v53, %v548_v6  ;;  %v1144_v38 = vmul.f32 %v548_v6, %v548_v6  ;;  %v1206_v39 = vadd.f32 %v1205_v50, %v1143_v34  ;;  %v1835_v40 = vpop.f32.mrb[18].mxu0 }
 0x118   :  { %v1586_v42 = vpack.c.bf16 %v1835_v40, %v1834_v35  ;;  %v551_v43 = vpop.f32.mrb[19].mxu0  ;;  %v1147_v56 = vmul.f32 %v1835_v40, %v1835_v40  ;;  %v2316_v24 = vpop.f32.mrb[12].mxu1 }
 0x119   :  { %v1207_v44 = vadd.f32 %v1206_v39, %v1144_v38  ;;  %v1581_v45 = vpack.c.bf16 %v551_v43, %v548_v6  ;;  %v1075_v46 = vadd.f32 %v1074_v37, %v551_v43  ;;  %v1145_v47 = vmul.f32 %v551_v43, %v551_v43  ;;  %v2318_v26 = vpop.f32.mrb[13].mxu1 }
 0x11a   :  { %1737 = vst [vmem:[%s2521_s4 + $0x48] sm:$0xff] %v1586_v42   ;;  %v2320_v28 = vpop.f32.mrb[14].mxu1 }
 0x11b   :  { %1736 = vst [vmem:[%s2521_s4 + $0x40] sm:$0xff] %v1581_v45   ;;  %v1076_v49 = vadd.f32 %v1834_v35, %v1075_v46  ;;  %v1208_v51 = vadd.f32 %v1207_v44, %v1145_v47  ;;  %v1656_v5 = vpack.c.bf16 %v2320_v28, %v2316_v24  ;;  %v2324_v30 = vpop.f32.mrb[15].mxu1 }
 0x11c   :  { %v1651_v35 = vpack.c.bf16 %v2324_v30, %v2318_v26 }
 0x11d   :  { %v1209_v25 = vadd.f32 %v1208_v51, %v1146_v48  ;;  %v1838_v57 = vpop.f32.mrb[20].mxu0  ;;  %v1077_v59 = vadd.f32 %v1835_v40, %v1076_v49  ;;  %1751 = vst [vmem:[%s2521_s4 + $0xb8] sm:$0xff] %v1656_v5  }
 0x11e   :  { %v564_v62 = vpop.f32.mrb[21].mxu0  ;;  %v1150_v20 = vmul.f32 %v1838_v57, %v1838_v57  ;;  %1750 = vst [vmem:[%s2521_s4 + $0xb0] sm:$0xff] %v1651_v35   ;;  %v1161_v35 = vmul.f32 %v2252_v21, %v2252_v21 }
 0x11f   :  { %v1078_v1 = vadd.f32 %v1077_v59, %v564_v62  ;;  %v1148_v4 = vmul.f32 %v564_v62, %v564_v62  ;;  %v1210_v8 = vadd.f32 %v1209_v25, %v1147_v56  ;;  %v1839_v9 = vpop.f32.mrb[22].mxu0 }
 0x120   :  { %v1596_v13 = vpack.c.bf16 %v1839_v9, %v1838_v57  ;;  %v567_v17 = vpop.f32.mrb[23].mxu0  ;;  %v1151_v60 = vmul.f32 %v1839_v9, %v1839_v9  ;;  %v2340_v43 = vpop.f32.mrb[16].mxu1 }
 0x121   :  { %v1211_v18 = vadd.f32 %v1210_v8, %v1148_v4  ;;  %v1591_v3 = vpack.c.bf16 %v567_v17, %v564_v62  ;;  %v1079_v58 = vadd.f32 %v1078_v1, %v567_v17  ;;  %v1149_v19 = vmul.f32 %v567_v17, %v567_v17  ;;  %v2342_v44 = vpop.f32.mrb[17].mxu1 }
 0x122   :  { %1739 = vst [vmem:[%s2521_s4 + $0x58] sm:$0xff] %v1596_v13   ;;  %v2344_v49 = vpop.f32.mrb[18].mxu1 }
 0x123   :  { %1738 = vst [vmem:[%s2521_s4 + $0x50] sm:$0xff] %v1591_v3   ;;  %v1080_v22 = vadd.f32 %v1838_v57, %v1079_v58  ;;  %v1212_v23 = vadd.f32 %v1211_v18, %v1149_v19  ;;  %v1666_v56 = vpack.c.bf16 %v2344_v49, %v2340_v43  ;;  %v2348_v25 = vpop.f32.mrb[19].mxu1 }
 0x124   :  { %v1661_v1 = vpack.c.bf16 %v2348_v25, %v2342_v44 }
 0x125   :  { %v1213_v27 = vadd.f32 %v1212_v23, %v1150_v20  ;;  %v1842_v52 = vpop.f32.mrb[24].mxu0  ;;  %v1081_v12 = vadd.f32 %v1839_v9, %v1080_v22  ;;  %1753 = vst [vmem:[%s2521_s4 + $0xc8] sm:$0xff] %v1666_v56  }
 0x126   :  { %v580_v29 = vpop.f32.mrb[25].mxu0  ;;  %v1154_v40 = vmul.f32 %v1842_v52, %v1842_v52  ;;  %1752 = vst [vmem:[%s2521_s4 + $0xc0] sm:$0xff] %v1661_v1  }
 0x127   :  { %v1082_v31 = vadd.f32 %v1081_v12, %v580_v29  ;;  %v1152_v32 = vmul.f32 %v580_v29, %v580_v29  ;;  %v1214_v34 = vadd.f32 %v1213_v27, %v1151_v60  ;;  %v1843_v50 = vpop.f32.mrb[26].mxu0  ;;  %v1160_v27 = vmul.f32 %v2246_v15, %v2246_v15 }
 0x128   :  { %v1606_v53 = vpack.c.bf16 %v1843_v50, %v1842_v52  ;;  %v583_v6 = vpop.f32.mrb[27].mxu0  ;;  %v1155_v45 = vmul.f32 %v1843_v50, %v1843_v50  ;;  %v2364_v19 = vpop.f32.mrb[20].mxu1 }
 0x129   :  { %v1215_v16 = vadd.f32 %v1214_v34, %v1152_v32  ;;  %v1601_v37 = vpack.c.bf16 %v583_v6, %v580_v29  ;;  %v1083_v38 = vadd.f32 %v1082_v31, %v583_v6  ;;  %v1153_v39 = vmul.f32 %v583_v6, %v583_v6  ;;  %v2366_v20 = vpop.f32.mrb[21].mxu1 }
 0x12a   :  { %1741 = vst [vmem:[%s2521_s4 + $0x68] sm:$0xff] %v1606_v53  }
 0x12b   :  { %1740 = vst [vmem:[%s2521_s4 + $0x60] sm:$0xff] %v1601_v37   ;;  %v1084_v41 = vadd.f32 %v1842_v52, %v1083_v38  ;;  %v1216_v42 = vadd.f32 %v1215_v16, %v1153_v39  ;;  %v2370_v52 = vpop.f32.mrb[22].mxu1  ;;  %v1163_v38 = vmul.f32 %v2248_v7, %v2248_v7 }
 0x12c   :  { %v1676_v12 = vpack.c.bf16 %v2370_v52, %v2364_v19  ;;  %v2374_v29 = vpop.f32.mrb[23].mxu1 }
 0x12d   :  { %v1217_v46 = vadd.f32 %v1216_v42, %v1154_v40  ;;  %v1846_v47 = vpop.f32.mrb[28].mxu0  ;;  %v1085_v48 = vadd.f32 %v1843_v50, %v1084_v41  ;;  %v1671_v32 = vpack.c.bf16 %v2374_v29, %v2366_v20  ;;  %v1164_v40 = vmul.f32 %v2270_v10, %v2270_v10 }
 0x12e   :  { %v596_v51 = vpop.f32.mrb[29].mxu0  ;;  %v1158_v18 = vmul.f32 %v1846_v47, %v1846_v47  ;;  %1755 = vst [vmem:[%s2521_s4 + $0xd8] sm:$0xff] %v1676_v12   ;;  %v1172_v12 = vmul.f32 %v2318_v26, %v2318_v26 }
 0x12f   :  { %v1086_v57 = vadd.f32 %v1085_v48, %v596_v51  ;;  %v1156_v59 = vmul.f32 %v596_v51, %v596_v51  ;;  %v1218_v62 = vadd.f32 %v1217_v46, %v1155_v45  ;;  %v1847_v63 = vpop.f32.mrb[30].mxu0  ;;  %1754 = vst [vmem:[%s2521_s4 + $0xd0] sm:$0xff] %v1671_v32  }
 0x130   :  { %v1616_v4 = vpack.c.bf16 %v1847_v63, %v1846_v47  ;;  %v599_v8 = vpop.f32.mrb[31].mxu0  ;;  %v1159_v22 = vmul.f32 %v1847_v63, %v1847_v63  ;;  %v2391_v16 = vpop.f32.mrb[24].mxu1 }
 0x131   :  { %v1219_v9 = vadd.f32 %v1218_v62, %v1156_v59  ;;  %v1611_v11 = vpack.c.bf16 %v599_v8, %v596_v51  ;;  %v1087_v13 = vadd.f32 %v1086_v57, %v599_v8  ;;  %v1157_v17 = vmul.f32 %v599_v8, %v599_v8  ;;  %v2393_v37 = vpop.f32.mrb[25].mxu1 }
 0x132   :  { %1743 = vst [vmem:[%s2521_s4 + $0x78] sm:$0xff] %v1616_v4   ;;  %v2400_v41 = vpop.f32.mrb[26].mxu1  ;;  %v1165_v51 = vmul.f32 %v2276_v36, %v2276_v36  ;;  %v1168_v4 = vmul.f32 %v2294_v55, %v2294_v55 }
 0x133   :  { %1742 = vst [vmem:[%s2521_s4 + $0x70] sm:$0xff] %v1611_v11   ;;  %v1088_v3 = vadd.f32 %v1846_v47, %v1087_v13  ;;  %v1220_v58 = vadd.f32 %v1219_v9, %v1157_v17  ;;  %v1686_v42 = vpack.c.bf16 %v2400_v41, %v2391_v16 }
 0x135   :  { %v1221_v23 = vadd.f32 %v1220_v58, %v1158_v18  ;;  %v1089_v60 = vadd.f32 %v1847_v63, %v1088_v3  ;;  %1757 = vst [vmem:[%s2521_s4 + $0xe8] sm:$0xff] %v1686_v42   ;;  %v1167_v63 = vmul.f32 %v2272_v2, %v2272_v2  ;;  %v1169_v3 = vmul.f32 %v2300_v0, %v2300_v0 }
 0x137   :  { %v1090_v5 = vadd.f32 %v1089_v60, %v2246_v15  ;;  %v1222_v31 = vadd.f32 %v1221_v23, %v1159_v22  ;;  %v1162_v15 = vmul.f32 %v2244_v14, %v2244_v14  ;;  %v1171_v23 = vmul.f32 %v2296_v61, %v2296_v61 }
 0x139   :  { %v1223_v34 = vadd.f32 %v1222_v31, %v1160_v27  ;;  %v1091_v50 = vadd.f32 %v1090_v5, %v2252_v21 }
 0x13b   :  { %v1092_v53 = vadd.f32 %v2244_v14, %v1091_v50  ;;  %v1224_v6 = vadd.f32 %v1223_v34, %v1161_v35  ;;  %v2404_v14 = vpop.f32.mrb[27].mxu1  ;;  %v1173_v34 = vmul.f32 %v2324_v30, %v2324_v30 }
 0x13c   :  { %v1681_v47 = vpack.c.bf16 %v2404_v14, %v2393_v37  ;;  %v2421_v59 = vpop.f32.mrb[28].mxu1 }
 0x13d   :  { %v1225_v39 = vadd.f32 %v1224_v6, %v1162_v15  ;;  %v1093_v21 = vadd.f32 %v2248_v7, %v1092_v53  ;;  %v2423_v62 = vpop.f32.mrb[29].mxu1 }
 0x13e   :  { %1756 = vst [vmem:[%s2521_s4 + $0xe0] sm:$0xff] %v1681_v47   ;;  %v2430_v8 = vpop.f32.mrb[30].mxu1 }
 0x13f   :  { %v1094_v45 = vadd.f32 %v1093_v21, %v2270_v10  ;;  %v1226_v46 = vadd.f32 %v1225_v39, %v1163_v38  ;;  %v1166_v10 = vmul.f32 %v2268_v33, %v2268_v33  ;;  %v1696_v9 = vpack.c.bf16 %v2430_v8, %v2421_v59 }
 0x140   :  { %v1177_v21 = vmul.f32 %v2348_v25, %v2348_v25 }
 0x141   :  { %v1227_v7 = vadd.f32 %v1226_v46, %v1164_v40  ;;  %v1095_v48 = vadd.f32 %v1094_v45, %v2276_v36  ;;  %1759 = vst [vmem:[%s2521_s4 + $0xf8] sm:$0xff] %v1696_v9   ;;  %v1185_v9 = vmul.f32 %v2404_v14, %v2404_v14 }
 0x143   :  { %v1096_v56 = vadd.f32 %v2268_v33, %v1095_v48  ;;  %v1228_v57 = vadd.f32 %v1227_v7, %v1165_v51  ;;  %v2434_v33 = vpop.f32.mrb[31].mxu1  ;;  %v1181_v51 = vmul.f32 %v2374_v29, %v2374_v29 }
 0x144   :  { %v1691_v17 = vpack.c.bf16 %v2434_v33, %v2423_v62 }
 0x145   :  { %v1229_v1 = vadd.f32 %v1228_v57, %v1166_v10  ;;  %v1097_v36 = vadd.f32 %v2272_v2, %v1096_v56 }
 0x146   :  { %1758 = vst [vmem:[%s2521_s4 + $0xf0] sm:$0xff] %v1691_v17  }
 0x147   :  { %v1098_v11 = vadd.f32 %v1097_v36, %v2294_v55  ;;  %v1230_v13 = vadd.f32 %v1229_v1, %v1167_v63  ;;  %v1170_v55 = vmul.f32 %v2292_v54, %v2292_v54 }
 0x149   :  { %v1231_v2 = vadd.f32 %v1230_v13, %v1168_v4  ;;  %v1099_v18 = vadd.f32 %v1098_v11, %v2300_v0 }
 0x14b   :  { %v1100_v58 = vadd.f32 %v2292_v54, %v1099_v18  ;;  %v1232_v22 = vadd.f32 %v1231_v2, %v1169_v3  ;;  %v1174_v54 = vmul.f32 %v2316_v24, %v2316_v24 }
 0x14d   :  { %v1233_v60 = vadd.f32 %v1232_v22, %v1170_v55  ;;  %v1101_v27 = vadd.f32 %v2296_v61, %v1100_v58  ;;  %v1175_v61 = vmul.f32 %v2320_v28, %v2320_v28  ;;  %v1189_v58 = vmul.f32 %v2434_v33, %v2434_v33 }
 0x14f   :  { %v1102_v0 = vadd.f32 %v1101_v27, %v2318_v26  ;;  %v1234_v5 = vadd.f32 %v1233_v60, %v1171_v23  ;;  %v1176_v26 = vmul.f32 %v2342_v44, %v2342_v44 }
 0x151   :  { %v1235_v31 = vadd.f32 %v1234_v5, %v1172_v12  ;;  %v1103_v32 = vadd.f32 %v1102_v0, %v2324_v30 }
 0x153   :  { %v1104_v50 = vadd.f32 %v2316_v24, %v1103_v32  ;;  %v1236_v35 = vadd.f32 %v1235_v31, %v1173_v34  ;;  %v1178_v24 = vmul.f32 %v2340_v43, %v2340_v43 }
 0x155   :  { %v1237_v15 = vadd.f32 %v1236_v35, %v1174_v54  ;;  %v1105_v53 = vadd.f32 %v2320_v28, %v1104_v50  ;;  %v1179_v28 = vmul.f32 %v2344_v49, %v2344_v49 }
 0x157   :  { %v1106_v6 = vadd.f32 %v1105_v53, %v2342_v44  ;;  %v1238_v38 = vadd.f32 %v1237_v15, %v1175_v61  ;;  %v1180_v44 = vmul.f32 %v2366_v20, %v2366_v20 }
 0x159   :  { %v1239_v39 = vadd.f32 %v1238_v38, %v1176_v26  ;;  %v1107_v30 = vadd.f32 %v1106_v6, %v2348_v25 }
 0x15b   :  { %v1108_v40 = vadd.f32 %v2340_v43, %v1107_v30  ;;  %v1240_v42 = vadd.f32 %v1239_v39, %v1177_v21  ;;  %v1182_v43 = vmul.f32 %v2364_v19, %v2364_v19 }
 0x15d   :  { %v1241_v45 = vadd.f32 %v1240_v42, %v1178_v24  ;;  %v1109_v46 = vadd.f32 %v2344_v49, %v1108_v40  ;;  %v1183_v49 = vmul.f32 %v2370_v52, %v2370_v52 }
 0x15f   :  { %v1110_v47 = vadd.f32 %v1109_v46, %v2366_v20  ;;  %v1242_v7 = vadd.f32 %v1241_v45, %v1179_v28  ;;  %v1184_v20 = vmul.f32 %v2393_v37, %v2393_v37 }
 0x161   :  { %v1243_v48 = vadd.f32 %v1242_v7, %v1180_v44  ;;  %v1111_v25 = vadd.f32 %v1110_v47, %v2374_v29 }
 0x163   :  { %v1112_v10 = vadd.f32 %v2364_v19, %v1111_v25  ;;  %v1244_v56 = vadd.f32 %v1243_v48, %v1181_v51  ;;  %v1186_v19 = vmul.f32 %v2391_v16, %v2391_v16 }
 0x165   :  { %v1245_v57 = vadd.f32 %v1244_v56, %v1182_v43  ;;  %v1113_v63 = vadd.f32 %v2370_v52, %v1112_v10  ;;  %v1187_v52 = vmul.f32 %v2400_v41, %v2400_v41 }
 0x167   :  { %v1114_v1 = vadd.f32 %v1113_v63, %v2393_v37  ;;  %v1246_v36 = vadd.f32 %v1245_v57, %v1183_v49  ;;  %v1188_v37 = vmul.f32 %v2423_v62, %v2423_v62 }
 0x169   :  { %v1247_v4 = vadd.f32 %v1246_v36, %v1184_v20  ;;  %v1115_v29 = vadd.f32 %v1114_v1, %v2404_v14 }
 0x16b   :  { %v1116_v11 = vadd.f32 %v2391_v16, %v1115_v29  ;;  %v1248_v13 = vadd.f32 %v1247_v4, %v1185_v9  ;;  %v1190_v16 = vmul.f32 %v2421_v59, %v2421_v59 }
 0x16d   :  { %v1249_v17 = vadd.f32 %v1248_v13, %v1186_v19  ;;  %v1117_v2 = vadd.f32 %v2400_v41, %v1116_v11  ;;  %v1191_v41 = vmul.f32 %v2430_v8, %v2430_v8 }
 0x16f   :  { %v1118_v18 = vadd.f32 %v1117_v2, %v2423_v62  ;;  %v1250_v3 = vadd.f32 %v1249_v17, %v1187_v52 }
 0x171   :  { %v1251_v55 = vadd.f32 %v1250_v3, %v1188_v37  ;;  %v1119_v14 = vadd.f32 %v1118_v18, %v2434_v33 }
 0x173   :  { %v1120_v22 = vadd.f32 %v2421_v59, %v1119_v14  ;;  %v1252_v23 = vadd.f32 %v1251_v55, %v1189_v58 }
 0x175   :  { %v1121_v60 = vadd.f32 %v2430_v8, %v1120_v22  ;;  %v1253_v27 = vadd.f32 %v1252_v23, %v1190_v16 }
 0x177   :  { %v1122_v62 = vrot.slane %v1121_v60, 4  ;;  %v1254_v12 = vadd.f32 %v1253_v27, %v1191_v41 }
 0x179   :  { %v1123_v0 = vadd.f32 %v1122_v62, %v1121_v60  ;;  %v1255_v5 = vrot.slane %v1254_v12, 4 }
 0x17b   :  { %v1124_v31 = vrot.slane %v1123_v0, 2  ;;  %v1256_v32 = vadd.f32 %v1255_v5, %v1254_v12 }
 0x17d   :  { %v1125_v34 = vadd.f32 %v1124_v31, %v1123_v0  ;;  %v1257_v33 = vrot.slane %v1256_v32, 2 }
 0x17f   :  { %v1126_v54 = vrot.slane %v1125_v34, 1  ;;  %v1258_v50 = vadd.f32 %v1257_v33, %v1256_v32 }
 0x181   :  { %v1259_v35 = vrot.slane %v1258_v50, 1  ;;  %v1127_v59 = vadd.f32 %v1126_v54, %v1125_v34 }
 0x183   :  { %v1260_v61 = vadd.f32 %v1259_v35, %v1258_v50 }
 0x185   :  { %v1262_v15 = vsel %vm1261_vm0, %v1127_v59, %v1260_v61 }
 0x186   :  { %1263 = vst [vmem:[%s2522_s5] sm:$0x3] %v1262_v15 }

// kernel: bottleneck_forward_nchw.5
= control target key start
LH: loop header
LB: loop body
LE: loop exit
PB: predicated region body
PF: predicated region fallthrough
CT: control target
= control target key end

     0   :  { %s4342_s18 = smov 0   ;;  %s5787_s0 = inlined_call_operand.vmem [shape: bf16[2,16,16,128], index: 0, kind: input, shape index: {}]   ;;  %s5788_s1 = inlined_call_operand.vmem [shape: bf16[3,384,128], index: 1, kind: input, shape index: {}]   ;;  %s5789_s2 = inlined_call_operand.vmem [shape: f32[1,128], index: 2, kind: input, shape index: {}]   ;;  %s5790_s3 = inlined_call_operand.vmem [shape: f32[1,128], index: 3, kind: input, shape index: {}]   ;;  %s5791_s4 = inlined_call_operand.vmem [shape: bf16[2,16,16,128], index: 4, kind: output, shape index: {0}]   ;;  %s5792_s5 = inlined_call_operand.vmem [shape: f32[2,2,128], index: 5, kind: output, shape index: {1}]  }
   0x1 LB: > { %s2794_s19 = sadd.s32 4294967295, %s4308_s18   ;;  %p2798_p0 = scmp.ge.s32.totalorder %s4308_s18, 1  ;;  %s4308_s18 = sphi %s4342_s18, %s16_s18  }
   0x2   : > { %p190_p1 = scmp.lt.s32.totalorder %s4308_s18, 3 }
   0x4   : > { %p191_p2 = pnand %p2798_p0, %p190_p1 }
   0x6   : > { %194 = sbr.rel (%p191_p2) target bundleno = 576 (0x240), region = 36 }
   0xd   : > { %v4230_v0 = vld [vmem:[%s5788_s1 + $0x100] sm:$0xff]   ;;  %v4233_v3 = vld [vmem:[%s5788_s1 + $0x108] sm:$0xff]   ;;  %v4236_v6 = vld [vmem:[%s5788_s1 + $0x110] sm:$0xff]   ;;  %p222_p3 = scmp.lt.s32.totalorder %s2794_s19, 1  ;;  %v411_v15 = vlaneseq  ;;  %vm4310_vm4 = vmmov 1   ;;  %vm2705_vm7 = vcmask 1040384  }
   0xe   : > { %v4356_v1 = vld [vmem:[%s5788_s1 + $0x140] sm:$0xff]   ;;  %3492 = vmatprep.subr.bf16.mxu0 %v4230_v0  ;;  %v4369_v4 = vld [vmem:[%s5788_s1 + $0x148] sm:$0xff]   ;;  %v4381_v7 = vld [vmem:[%s5788_s1 + $0x150] sm:$0xff]  }
   0xf   : > { %v4232_v2 = vld [vmem:[%s5788_s1 + $0xc0] sm:$0xff]   ;;  %4044 = vmatprep.subr.bf16.mxu1 %v4356_v1  ;;  %v4235_v5 = vld [vmem:[%s5788_s1 + $0xc8] sm:$0xff]   ;;  %v4238_v8 = vld [vmem:[%s5788_s1 + $0xd0] sm:$0xff]   ;;  %s5836_s19 = smov (!%p222_p3, %s2794_s19), 1  ;;  %v4432_v19 = vshrl.u32 %v411_v15, 7 }
  0x10   : > { %3493 = vmatpush3.bf16.msra.mxu0 %v4232_v2  ;;  %4052 = vmatpush3.bf16.msra.mxu1 %v4356_v1  ;;  %v4239_v9 = vld [vmem:[%s5788_s1 + $0x118] sm:$0xff]   ;;  %v4242_v12 = vld [vmem:[%s5788_s1 + $0x120] sm:$0xff]   ;;  %v4245_v16 = vld [vmem:[%s5788_s1 + $0x128] sm:$0xff]   ;;  %s3008_s6 = sshll.u32 %s5836_s19, 7 }
  0x11   : > { %3494 = vmatprep.subr.bf16.mxu0 %v4233_v3  ;;  %4045 = vmatprep.subr.bf16.mxu1 %v4369_v4  ;;  %v4394_v10 = vld [vmem:[%s5788_s1 + $0x158] sm:$0xff]   ;;  %v4409_v13 = vld [vmem:[%s5788_s1 + $0x160] sm:$0xff]   ;;  %v4426_v17 = vld [vmem:[%s5788_s1 + $0x168] sm:$0xff]   ;;  %s4449_s15 = scalar_lea.vmem %s5787_s0, %s3008_s6  ;;  %v4455_v23 = vadd.s32 8, %v4432_v19  ;;  %vm414_vm0 = vcmp.ge.s32.totalorder %v4432_v19, 1  ;;  %vm547_vm2 = vcmp.lt.s32.totalorder %v4432_v19, 7  ;;  %s5709_s20 = scalar_lea.vmem %s5791_s4, %s3008_s6 }
  0x12   : > { %v4241_v11 = vld [vmem:[%s5788_s1 + $0xd8] sm:$0xff]   ;;  %v4244_v14 = vld [vmem:[%s5788_s1 + $0xe0] sm:$0xff]   ;;  %v4247_v18 = vld [vmem:[%s5788_s1 + $0xe8] sm:$0xff]   ;;  %vm448_vm3 = vcmp.lt.s32.totalorder %v4432_v19, 1  ;;  %s2803_s6 = sshll.u32 %s5836_s19, 1 }
  0x13   : > { %v4248_v20 = vld [vmem:[%s5788_s1 + $0x130] sm:$0xff]   ;;  %v4251_v24 = vld [vmem:[%s5788_s1 + $0x138] sm:$0xff]   ;;  %v4464_v25 = vld [vmem:[%s5789_s2] ss:$0 sm:$0xff]  ;;  %vm514_vm1 = vcmp.le.s32.totalorder %v4455_v23, 14  ;;  %s235_s23 = scalar_lea.vmem %s5792_s5, %s2803_s6 }
  0x14   : > { %3495 = vmatpush3.bf16.msra.mxu0 %v4235_v5  ;;  %4053 = vmatpush3.bf16.msra.mxu1 %v4369_v4  ;;  %v4442_v21 = vld [vmem:[%s5788_s1 + $0x170] sm:$0xff]   ;;  %v3043_v26 = vld [vmem:[%s4449_s15] sm:$0xff]   ;;  %v4471_v27 = vld [vmem:[%s5788_s1 + $0x178] sm:$0xff]  }
  0x15   : > { %3496 = vmatprep.subr.bf16.mxu0 %v4236_v6  ;;  %4046 = vmatprep.subr.bf16.mxu1 %v4381_v7  ;;  %v4250_v22 = vld [vmem:[%s5788_s1 + $0xf0] sm:$0xff]   ;;  %v3044_v28 = vunpack.c.l.bf16 %v3043_v26  ;;  %v3045_v29 = vunpack.c.h.bf16 %v3043_v26  ;;  %v3193_v30 = vld [vmem:[%s4449_s15 + $0x40] sm:$0xff]   ;;  %v3194_v31 = vld [vmem:[%s4449_s15 + $0x48] sm:$0xff]  }
  0x16   : > { %v4478_v32 = vld [vmem:[%s5790_s3] ss:$0 sm:$0xff]  ;;  %v3076_v33 = vunpack.c.l.bf16 %v3193_v30  ;;  %v3077_v34 = vunpack.c.h.bf16 %v3193_v30  ;;  %v3080_v35 = vunpack.c.l.bf16 %v3194_v31  ;;  %v3081_v36 = vunpack.c.h.bf16 %v3194_v31  ;;  %v4253_v39 = vld [vmem:[%s5788_s1 + $0xf8] sm:$0xff]   ;;  %v3186_v50 = vld [vmem:[%s4449_s15 + $0x8] sm:$0xff]  }
  0x17   : > { %v309_v37 = vmul.f32 %v3044_v28, %v4464_v25  ;;  %v310_v38 = vmul.f32 %v3045_v29, %v4464_v25  ;;  %v4254_v46 = vld [vmem:[%s5788_s1 + $0x40] sm:$0xff]   ;;  %v3048_v54 = vunpack.c.l.bf16 %v3186_v50  ;;  %v3049_v58 = vunpack.c.h.bf16 %v3186_v50  ;;  %vm4529_vm5 = vmpackc.low %vm4310_vm4, %vm414_vm0  ;;  %v3195_v6 = vld [vmem:[%s4449_s15 + $0x50] sm:$0xff]  }
  0x18   : > { %3497 = vmatpush3.bf16.msra.mxu0 %v4238_v8  ;;  %4054 = vmatpush3.bf16.msra.mxu1 %v4381_v7  ;;  %v325_v40 = vmul.f32 %v3076_v33, %v4464_v25  ;;  %v326_v41 = vmul.f32 %v3077_v34, %v4464_v25  ;;  %v327_v42 = vmul.f32 %v3080_v35, %v4464_v25  ;;  %vm4550_vm6 = vmpackc.low %vm514_vm1, %vm4310_vm4  ;;  %v3084_v29 = vunpack.c.l.bf16 %v3195_v6  ;;  %v3187_v30 = vld [vmem:[%s4449_s15 + $0x10] sm:$0xff]   ;;  %v4255_v33 = vld [vmem:[%s5788_s1] sm:$0xff]  }
  0x19   : > { %3498 = vmatprep.subr.bf16.mxu0 %v4239_v9  ;;  %4047 = vmatprep.subr.bf16.mxu1 %v4394_v10  ;;  %v347_v43 = vadd.f32 %v4478_v32, %v309_v37  ;;  %v348_v44 = vadd.f32 %v4478_v32, %v310_v38  ;;  %v328_v45 = vmul.f32 %v3081_v36, %v4464_v25  ;;  %v3085_v34 = vunpack.c.h.bf16 %v3195_v6  ;;  %v4256_v37 = vld [vmem:[%s5788_s1 + $0x48] sm:$0xff]   ;;  %v3197_v6 = vld [vmem:[%s4449_s15 + $0x60] sm:$0xff]  }
  0x1a   : > { %v363_v47 = vadd.f32 %v4478_v32, %v325_v40  ;;  %v364_v48 = vadd.f32 %v4478_v32, %v326_v41  ;;  %v365_v49 = vadd.f32 %v4478_v32, %v327_v42  ;;  %v312_v26 = vmul.f32 %v3049_v58, %v4464_v25  ;;  %v5137_v19 = vld [vmem:[%s5788_s1 + $0x200] sm:$0xff]  }
  0x1b   : > { %v4504_v51 = vmax.f32 %v347_v43, 0.0  ;;  %v4506_v52 = vmax.f32 %v348_v44, 0.0  ;;  %v366_v53 = vadd.f32 %v4478_v32, %v328_v45  ;;  %v329_v40 = vmul.f32 %v3084_v29, %v4464_v25 }
  0x1c   : > { %3499 = vmatpush3.bf16.msra.mxu0 %v4241_v11  ;;  %4055 = vmatpush3.bf16.msra.mxu1 %v4394_v10  ;;  %v4510_v55 = vmax.f32 %v363_v47, 0.0  ;;  %v4512_v56 = vmax.f32 %v364_v48, 0.0  ;;  %v4514_v57 = vmax.f32 %v365_v49, 0.0  ;;  %v350_v38 = vadd.f32 %v4478_v32, %v312_v26  ;;  %v4257_v48 = vld [vmem:[%s5788_s1 + $0x8] sm:$0xff]  }
  0x1d   : > { %3500 = vmatprep.subr.bf16.mxu0 %v4242_v12  ;;  %4048 = vmatprep.subr.bf16.mxu1 %v4409_v13  ;;  %v416_v59 = vrot.slane %v4504_v51, 7  ;;  %v432_v60 = vrot.slane %v4506_v52, 7  ;;  %v4523_v63 = vpack.c.bf16 %v4506_v52, %v4504_v51  ;;  %v4533_v5 = vmax.f32 %v366_v53, 0.0 }
  0x1e   : > { %v523_v0 = vrot.slane %v4510_v55, 1  ;;  %v539_v2 = vrot.slane %v4512_v56, 1  ;;  %v524_v11 = vrot.slane %v4514_v57, 1  ;;  %v311_v12 = vmul.f32 %v3048_v54, %v4464_v25  ;;  %v4258_v54 = vld [vmem:[%s5788_s1 + $0x50] sm:$0xff]  }
  0x1f   : > { %v449_v8 = vsel %vm448_vm3, %v416_v59, %v432_v60  ;;  %v465_v9 = vsel %vm448_vm3, %v432_v60, %v416_v59  ;;  %1085 = vmatprep.mubr.bf16.mxu0 %v4523_v63  ;;  %v330_v41 = vmul.f32 %v3085_v34, %v4464_v25  ;;  %v3052_v44 = vunpack.c.l.bf16 %v3187_v30 }
  0x20   : > { %3501 = vmatpush3.bf16.msra.mxu0 %v4244_v14  ;;  %4056 = vmatpush3.bf16.msra.mxu1 %v4409_v13  ;;  %v3196_v14 = vld [vmem:[%s4449_s15 + $0x58] sm:$0xff]   ;;  %v556_v15 = vsel %vm547_vm2, %v523_v0, %v539_v2  ;;  %v349_v28 = vadd.f32 %v4478_v32, %v311_v12  ;;  %v3053_v58 = vunpack.c.h.bf16 %v3187_v30 }
  0x21   : > { %3502 = vmatprep.subr.bf16.mxu0 %v4245_v16  ;;  %4049 = vmatprep.subr.bf16.mxu1 %v4426_v17  ;;  %v572_v16 = vsel %vm547_vm2, %v539_v2, %v523_v0  ;;  %v3088_v35 = vunpack.c.l.bf16 %v3196_v14  ;;  %v3089_v42 = vunpack.c.h.bf16 %v3196_v14  ;;  %v368_v49 = vadd.f32 %v4478_v32, %v330_v41 }
  0x22   : > { %v313_v12 = vmul.f32 %v3052_v44, %v4464_v25  ;;  %v3093_v41 = vunpack.c.h.bf16 %v3197_v6 }
  0x23   : > { %v331_v43 = vmul.f32 %v3088_v35, %v4464_v25  ;;  %v332_v50 = vmul.f32 %v3089_v42, %v4464_v25  ;;  %v3092_v35 = vunpack.c.l.bf16 %v3197_v6 }
  0x24   : > { %3503 = vmatpush3.bf16.msra.mxu0 %v4247_v18  ;;  %4057 = vmatpush3.bf16.msra.mxu1 %v4426_v17  ;;  %v351_v34 = vadd.f32 %v4478_v32, %v313_v12 }
  0x25   : > { %3504 = vmatprep.subr.bf16.mxu0 %v4248_v20  ;;  %4050 = vmatprep.subr.bf16.mxu1 %v4442_v21  ;;  %v4554_v20 = vpack.c.bf16 %v449_v8, %v465_v9  ;;  %v369_v53 = vadd.f32 %v4478_v32, %v331_v43  ;;  %v4605_v8 = vmax.f32 %v368_v49, 0.0  ;;  %v370_v9 = vadd.f32 %v4478_v32, %v332_v50 }
  0x26   : > { %v333_v44 = vmul.f32 %v3092_v35, %v4464_v25 }
  0x27   : > { %v541_v26 = vrot.slane %v4605_v8, 1  ;;  %v4630_v29 = vmax.f32 %v370_v9, 0.0 }
  0x28   : > { %3505 = vmatpush3.bf16.msra.mxu0 %v4250_v22  ;;  %4058 = vmatpush3.bf16.msra.mxu1 %v4442_v21  ;;  %v540_v22 = vrot.slane %v4533_v5, 1 }
  0x29   : > { %3506 = vmatprep.subr.bf16.mxu0 %v4251_v24  ;;  %4051 = vmatprep.subr.bf16.mxu1 %v4471_v27  ;;  %v4557_v24 = vpack.c.bf16 %v572_v16, %v556_v15 }
  0x2a   : > { %v557_v23 = vsel %vm547_vm2, %v524_v11, %v540_v22  ;;  %v573_v31 = vsel %vm547_vm2, %v540_v22, %v524_v11  ;;  %v4608_v11 = vmax.f32 %v369_v53, 0.0  ;;  %v4259_v22 = vld [vmem:[%s5788_s1 + $0x10] sm:$0xff]  }
  0x2b   : > { %5814 = vst [vmem:[#allocation3_spill] sm:$0xff] %v4557_v24  ;;  %3932 = vmatprep.mubr.msk.bf16.mxu1 %vm4550_vm6, %v4557_v24  ;;  %v4575_v36 = vpack.c.bf16 %v573_v31, %v557_v23  ;;  %v4260_v23 = vld [vmem:[%s5788_s1 + $0x58] sm:$0xff]  }
  0x2c   : > { %3507 = vmatpush3.bf16.msra.mxu0 %v4253_v39  ;;  %4059 = vmatpush3.bf16.msra.mxu1 %v4471_v27  ;;  %v381_v39 = vmax.f32 %v349_v28, 0.0  ;;  %v526_v30 = vrot.slane %v4608_v11, 1 }
  0x2d   : > { %3900 = vmatprep.subr.bf16.mxu0 %v4356_v1  ;;  %3628 = vmatprep.subr.bf16.mxu1 %v4254_v46  ;;  %5815 = vst [vmem:[#allocation4_spill] sm:$0xff] %v4575_v36  ;;  %v367_v46 = vadd.f32 %v4478_v32, %v329_v40  ;;  %v542_v40 = vrot.slane %v4630_v29, 1 }
  0x2e   : > { %v516_v45 = vrot.slane %v381_v39, 1  ;;  %v417_v47 = vrot.slane %v381_v39, 7 }
  0x2f   : > { %3218 = vmatmul.mubr.msk.bf16.vlgmr.msra.gmra.mrb[0].mxu0 %vm4529_vm5, %v4554_v20  ;;  %3933 = vmatmul.mubr.msk.bf16.vlgmr.msra.gmra.mrb[0].mxu1 %vm4550_vm6, %v4575_v36  ;;  %v4601_v0 = vmax.f32 %v367_v46, 0.0  ;;  %v575_v46 = vsel %vm547_vm2, %v542_v40, %v526_v30  ;;  %v5822_v36 = vmov 0  }
  0x30   : > { %3901 = vmatpush3.bf16.msra.mxu0 %v4356_v1  ;;  %v382_v1 = vmax.f32 %v350_v38, 0.0  ;;  %3629 = vmatpush3.bf16.msra.mxu1 %v4255_v33  ;;  %v314_v33 = vmul.f32 %v3053_v58, %v4464_v25 }
  0x31   : > { %3902 = vmatprep.subr.bf16.mxu0 %v4369_v4  ;;  %3630 = vmatprep.subr.bf16.mxu1 %v4256_v37  ;;  %v3198_v37 = vld [vmem:[%s4449_s15 + $0x68] sm:$0xff]  }
  0x32   : > { %v532_v59 = vrot.slane %v382_v1, 1  ;;  %v4599_v60 = vpack.c.bf16 %v382_v1, %v381_v39  ;;  %v433_v2 = vrot.slane %v382_v1, 7  ;;  %v352_v43 = vadd.f32 %v4478_v32, %v314_v33  ;;  %v3188_v1 = vld [vmem:[%s4449_s15 + $0x18] sm:$0xff]  }
  0x33   : > { %v3096_v49 = vunpack.c.l.bf16 %v3198_v37  ;;  %v3097_v6 = vunpack.c.h.bf16 %v3198_v37  ;;  %v3056_v12 = vunpack.c.l.bf16 %v3188_v1 }
  0x34   : > { %3903 = vmatpush3.bf16.msra.mxu0 %v4369_v4  ;;  %v4614_v14 = vsel %vm547_vm2, %v516_v45, %v532_v59  ;;  %v4618_v15 = vsel %vm547_vm2, %v532_v59, %v516_v45  ;;  %1093 = vmatprep.mubr.bf16.mxu0 %v4599_v60  ;;  %v525_v4 = vrot.slane %v4601_v0, 1  ;;  %v450_v16 = vsel %vm448_vm3, %v417_v47, %v433_v2  ;;  %v4262_v59 = vld [vmem:[%s5788_s1 + $0x60] sm:$0xff]  }
  0x35   : > { %3904 = vmatprep.subr.bf16.mxu0 %v4381_v7  ;;  %3631 = vmatpush3.bf16.msra.mxu1 %v4257_v48  ;;  %v466_v28 = vsel %vm448_vm3, %v433_v2, %v417_v47  ;;  %v559_v45 = vsel %vm547_vm2, %v526_v30, %v542_v40  ;;  %v4261_v47 = vld [vmem:[%s5788_s1 + $0x18] sm:$0xff]   ;;  %v334_v48 = vmul.f32 %v3093_v41, %v4464_v25  ;;  %v4671_v53 = vmax.f32 %v352_v43, 0.0 }
  0x36   : > { %v4636_v31 = vpack.c.bf16 %v450_v16, %v466_v28  ;;  %3632 = vmatprep.subr.bf16.mxu1 %v4258_v54  ;;  %v558_v38 = vsel %vm547_vm2, %v525_v4, %v541_v26  ;;  %v574_v39 = vsel %vm547_vm2, %v541_v26, %v525_v4  ;;  %v4669_v50 = vpack.c.bf16 %v575_v46, %v559_v45  ;;  %v4263_v26 = vld [vmem:[%s5788_s1 + $0x20] sm:$0xff]  }
  0x37   : > { %v4648_v42 = vpack.c.bf16 %v574_v39, %v558_v38  ;;  %v371_v54 = vadd.f32 %v4478_v32, %v333_v44  ;;  %v372_v2 = vadd.f32 %v4478_v32, %v334_v48  ;;  %v335_v9 = vmul.f32 %v3096_v49, %v4464_v25  ;;  %v4264_v39 = vld [vmem:[%s5788_s1 + $0x68] sm:$0xff]   ;;  %v3200_v49 = vld [vmem:[%s4449_s15 + $0x78] sm:$0xff]  }
  0x38   : > { %3905 = vmatpush3.bf16.msra.mxu0 %v4381_v7  ;;  %v4654_v7 = vmax.f32 %v351_v34, 0.0  ;;  %5817 = vst [vmem:[#allocation6_spill] sm:$0xff] %v4669_v50  ;;  %v3057_v28 = vunpack.c.h.bf16 %v3188_v1  ;;  %v336_v30 = vmul.f32 %v3097_v6, %v4464_v25  ;;  %v315_v33 = vmul.f32 %v3056_v12, %v4464_v25  ;;  %v3199_v34 = vld [vmem:[%s4449_s15 + $0x70] sm:$0xff]  }
  0x39   : > { %3906 = vmatprep.subr.bf16.mxu0 %v4394_v10  ;;  %5816 = vst [vmem:[#allocation5_spill] sm:$0xff] %v4648_v42  ;;  %3221 = vmatmul.mubr.msk.bf16.gmra.mrb[4].mxu0 %vm4529_vm5, %v4636_v31  ;;  %v4688_v16 = vmax.f32 %v371_v54, 0.0  ;;  %v3101_v48 = vunpack.c.h.bf16 %v3199_v34  ;;  %v4266_v6 = vld [vmem:[%s5788_s1 + $0x70] sm:$0xff]  }
  0x3a   : > { %3633 = vmatpush3.bf16.msra.mxu1 %v4259_v22  ;;  %3936 = vmatprep.mubr.msk.bf16.mxu1 %vm4550_vm6, %v4648_v42  ;;  %v418_v58 = vrot.slane %v4654_v7, 7  ;;  %v4686_v4 = vpack.c.bf16 %v4671_v53, %v4654_v7  ;;  %v434_v22 = vrot.slane %v4671_v53, 7  ;;  %v316_v40 = vmul.f32 %v3057_v28, %v4464_v25 }
  0x3b   : > { %3634 = vmatprep.subr.bf16.mxu1 %v4260_v23  ;;  %3937 = vmatmul.mubr.msk.bf16.gmra.mrb[4].mxu1 %vm4550_vm6, %v4669_v50  ;;  %v373_v23 = vadd.f32 %v4478_v32, %v335_v9  ;;  %v527_v35 = vrot.slane %v4688_v16, 1  ;;  %v374_v44 = vadd.f32 %v4478_v32, %v336_v30  ;;  %v353_v45 = vadd.f32 %v4478_v32, %v315_v33 }
  0x3c   : > { %3907 = vmatpush3.bf16.msra.mxu0 %v4394_v10  ;;  %v4695_v10 = vmax.f32 %v372_v2, 0.0  ;;  %1101 = vmatprep.mubr.bf16.mxu0 %v4686_v4  ;;  %v451_v37 = vsel %vm448_vm3, %v418_v58, %v434_v22  ;;  %v467_v38 = vsel %vm448_vm3, %v434_v22, %v418_v58  ;;  %v354_v46 = vadd.f32 %v4478_v32, %v316_v40  ;;  %v4265_v2 = vld [vmem:[%s5788_s1 + $0x28] sm:$0xff]  }
  0x3d   : > { %3908 = vmatprep.subr.bf16.mxu0 %v4409_v13  ;;  %v4712_v43 = vpack.c.bf16 %v451_v37, %v467_v38  ;;  %v4715_v1 = vmax.f32 %v373_v23, 0.0  ;;  %v4740_v12 = vmax.f32 %v353_v45, 0.0  ;;  %v3104_v23 = vunpack.c.l.bf16 %v3200_v49 }
  0x3e   : > { %3635 = vmatpush3.bf16.msra.mxu1 %v4261_v47  ;;  %v543_v41 = vrot.slane %v4695_v10, 1  ;;  %v3100_v47 = vunpack.c.l.bf16 %v3199_v34  ;;  %v4742_v22 = vmax.f32 %v354_v46, 0.0  ;;  %v3105_v33 = vunpack.c.h.bf16 %v3200_v49  ;;  %v4267_v34 = vld [vmem:[%s5788_s1 + $0x30] sm:$0xff]   ;;  %v3190_v46 = vld [vmem:[%s4449_s15 + $0x28] sm:$0xff]  }
  0x3f   : > { %3636 = vmatprep.subr.bf16.mxu1 %v4262_v59  ;;  %v528_v59 = vrot.slane %v4715_v1, 1  ;;  %v339_v45 = vmul.f32 %v3104_v23, %v4464_v25  ;;  %v3191_v23 = vld [vmem:[%s4449_s15 + $0x30] sm:$0xff]   ;;  %v441_v50 = vrot.slane %v4533_v5, 7 }
  0x40   : > { %3909 = vmatpush3.bf16.msra.mxu0 %v4409_v13  ;;  %v560_v54 = vsel %vm547_vm2, %v527_v35, %v543_v41  ;;  %v576_v58 = vsel %vm547_vm2, %v543_v41, %v527_v35  ;;  %v4729_v13 = vmax.f32 %v374_v44, 0.0  ;;  %v337_v28 = vmul.f32 %v3100_v47, %v4464_v25  ;;  %v3189_v35 = vld [vmem:[%s4449_s15 + $0x20] sm:$0xff]  }
  0x41   : > { %3910 = vmatprep.subr.bf16.mxu0 %v4426_v17  ;;  %3224 = vmatmul.mubr.msk.bf16.gmra.mrb[8].mxu0 %vm4529_vm5, %v4712_v43  ;;  %v4738_v9 = vpack.c.bf16 %v576_v58, %v560_v54  ;;  %v4757_v37 = vpack.c.bf16 %v4742_v22, %v4740_v12  ;;  %v435_v40 = vrot.slane %v4742_v22, 7  ;;  %v4268_v58 = vld [vmem:[%s5788_s1 + $0x78] sm:$0xff]   ;;  %v3068_v61 = vunpack.c.l.bf16 %v3191_v23 }
  0x42   : > { %3637 = vmatpush3.bf16.msra.mxu1 %v4263_v26  ;;  %v544_v30 = vrot.slane %v4729_v13, 1  ;;  %v338_v26 = vmul.f32 %v3101_v48, %v4464_v25  ;;  %v375_v38 = vadd.f32 %v4478_v32, %v337_v28  ;;  %v340_v28 = vmul.f32 %v3105_v33, %v4464_v25  ;;  %v4277_v33 = vld [vmem:[%s5788_s1 + $0x1c0] sm:$0xff]  }
  0x43   : > { %5818 = vst [vmem:[#allocation7_spill] sm:$0xff] %v4738_v9  ;;  %3638 = vmatprep.subr.bf16.mxu1 %v4264_v39  ;;  %3940 = vmatprep.mubr.msk.bf16.mxu1 %vm4550_vm6, %v4738_v9  ;;  %v419_v39 = vrot.slane %v4740_v12, 7 }
  0x44   : > { %3911 = vmatpush3.bf16.msra.mxu0 %v4426_v17  ;;  %v561_v41 = vsel %vm547_vm2, %v528_v59, %v544_v30  ;;  %v577_v17 = vsel %vm547_vm2, %v544_v30, %v528_v59  ;;  %v376_v44 = vadd.f32 %v4478_v32, %v338_v26  ;;  %1109 = vmatprep.mubr.bf16.mxu0 %v4757_v37  ;;  %v4773_v48 = vmax.f32 %v375_v38, 0.0  ;;  %v4269_v26 = vld [vmem:[%s5788_s1 + $0x38] sm:$0xff]  }
  0x45   : > { %3912 = vmatprep.subr.bf16.mxu0 %v4442_v21  ;;  %v4770_v47 = vpack.c.bf16 %v577_v17, %v561_v41  ;;  %v452_v49 = vsel %vm448_vm3, %v419_v39, %v435_v40  ;;  %v468_v54 = vsel %vm448_vm3, %v435_v40, %v419_v39  ;;  %v377_v30 = vadd.f32 %v4478_v32, %v339_v45 }
  0x46   : > { %3639 = vmatpush3.bf16.msra.mxu1 %v4265_v2  ;;  %v4782_v59 = vmax.f32 %v376_v44, 0.0  ;;  %v4784_v2 = vpack.c.bf16 %v452_v49, %v468_v54  ;;  %v3060_v38 = vunpack.c.l.bf16 %v3189_v35  ;;  %v3061_v39 = vunpack.c.h.bf16 %v3189_v35  ;;  %v4813_v49 = vld [vmem:[%s5788_s1 + $0x80] sm:$0xff]  }
  0x47   : > { %5819 = vst [vmem:[#allocation8_spill] sm:$0xff] %v4770_v47  ;;  %3640 = vmatprep.subr.bf16.mxu1 %v4266_v6  ;;  %3941 = vmatmul.mubr.msk.bf16.gmra.mrb[8].mxu1 %vm4550_vm6, %v4770_v47  ;;  %v529_v6 = vrot.slane %v4773_v48, 1  ;;  %v3064_v40 = vunpack.c.l.bf16 %v3190_v46  ;;  %v4806_v17 = vmax.f32 %v377_v30, 0.0  ;;  %v3065_v35 = vunpack.c.h.bf16 %v3190_v46  ;;  %v3192_v30 = vld [vmem:[%s4449_s15 + $0x38] sm:$0xff]  }
  0x48   : > { %3913 = vmatpush3.bf16.msra.mxu0 %v4442_v21  ;;  %v545_v41 = vrot.slane %v4782_v59, 1  ;;  %v378_v21 = vadd.f32 %v4478_v32, %v340_v28  ;;  %v317_v44 = vmul.f32 %v3060_v38, %v4464_v25  ;;  %v318_v45 = vmul.f32 %v3061_v39, %v4464_v25 }
  0x49   : > { %3914 = vmatprep.subr.bf16.mxu0 %v4471_v27  ;;  %3227 = vmatmul.mubr.msk.bf16.gmra.mrb[12].mxu0 %vm4529_vm5, %v4784_v2  ;;  %v319_v54 = vmul.f32 %v3064_v40, %v4464_v25  ;;  %v320_v62 = vmul.f32 %v3065_v35, %v4464_v25  ;;  %v3072_v35 = vunpack.c.l.bf16 %v3192_v30 }
  0x4a   : > { %3641 = vmatpush3.bf16.msra.mxu1 %v4267_v34  ;;  %v562_v28 = vsel %vm547_vm2, %v529_v6, %v545_v41  ;;  %v578_v34 = vsel %vm547_vm2, %v545_v41, %v529_v6  ;;  %v4820_v46 = vmax.f32 %v378_v21, 0.0  ;;  %v355_v39 = vadd.f32 %v4478_v32, %v317_v44 }
  0x4b   : > { %3642 = vmatprep.subr.bf16.mxu1 %v4268_v58  ;;  %v530_v58 = vrot.slane %v4806_v17, 1  ;;  %v4825_v38 = vpack.c.bf16 %v578_v34, %v562_v28  ;;  %v356_v40 = vadd.f32 %v4478_v32, %v318_v45  ;;  %v357_v6 = vadd.f32 %v4478_v32, %v319_v54 }
  0x4c   : > { %3915 = vmatpush3.bf16.msra.mxu0 %v4471_v27  ;;  %v546_v47 = vrot.slane %v4820_v46, 1  ;;  %v3069_v41 = vunpack.c.h.bf16 %v3191_v23  ;;  %v321_v21 = vmul.f32 %v3068_v61, %v4464_v25  ;;  %v4836_v27 = vmax.f32 %v355_v39, 0.0 }
  0x4d   : > { %5820 = vst [vmem:[#allocation9_spill] sm:$0xff] %v4825_v38  ;;  %3764 = vmatprep.subr.bf16.mxu0 %v4277_v33  ;;  %3944 = vmatprep.mubr.msk.bf16.mxu1 %vm4550_vm6, %v4825_v38  ;;  %v4838_v44 = vmax.f32 %v356_v40, 0.0  ;;  %v358_v33 = vadd.f32 %v4478_v32, %v320_v62  ;;  %v4846_v61 = vmax.f32 %v357_v6, 0.0 }
  0x4e   : > { %3643 = vmatpush3.bf16.msra.mxu1 %v4269_v26  ;;  %v563_v26 = vsel %vm547_vm2, %v530_v58, %v546_v47  ;;  %v579_v23 = vsel %vm547_vm2, %v546_v47, %v530_v58  ;;  %v322_v45 = vmul.f32 %v3069_v41, %v4464_v25  ;;  %v420_v34 = vrot.slane %v4836_v27, 7 }
  0x4f   : > { %3948 = vmatprep.subr.bf16.mxu1 %v4813_v49  ;;  %v4849_v54 = vpack.c.bf16 %v579_v23, %v563_v26  ;;  %v4853_v28 = vpack.c.bf16 %v4838_v44, %v4836_v27  ;;  %v436_v62 = vrot.slane %v4838_v44, 7  ;;  %v4857_v39 = vmax.f32 %v358_v33, 0.0 }
  0x50   : > { %v421_v40 = vrot.slane %v4846_v61, 7  ;;  %v359_v47 = vadd.f32 %v4478_v32, %v321_v21  ;;  %v360_v58 = vadd.f32 %v4478_v32, %v322_v45  ;;  %v3073_v33 = vunpack.c.h.bf16 %v3192_v30 }
  0x51   : > { %5821 = vst [vmem:[#allocation10_spill] sm:$0xff] %v4849_v54  ;;  %3945 = vmatmul.mubr.msk.bf16.gmra.mrb[12].mxu1 %vm4550_vm6, %v4849_v54  ;;  %1117 = vmatprep.mubr.bf16.mxu0 %v4853_v28  ;;  %v453_v6 = vsel %vm448_vm3, %v420_v34, %v436_v62  ;;  %v469_v41 = vsel %vm448_vm3, %v436_v62, %v420_v34  ;;  %v5800_v23 = vmov 0   ;;  %v437_v54 = vrot.slane %v4857_v39, 7 }
  0x52   : > { %v323_v26 = vmul.f32 %v3072_v35, %v4464_v25  ;;  %1551 = vmatprep.mubr.bf16.mxu1 %v5800_v23  ;;  %v4872_v21 = vpack.c.bf16 %v453_v6, %v469_v41  ;;  %v4876_v45 = vpack.c.bf16 %v4857_v39, %v4846_v61  ;;  %v4879_v38 = vmax.f32 %v359_v47, 0.0 }
  0x53   : > { %v4881_v9 = vmax.f32 %v360_v58, 0.0  ;;  %v324_v34 = vmul.f32 %v3073_v33, %v4464_v25  ;;  %v4887_v35 = vpack.c.bf16 %v4512_v56, %v4510_v55  ;;  %v454_v62 = vsel %vm448_vm3, %v421_v40, %v437_v54 }
  0x54   : > { %v361_v30 = vadd.f32 %v4478_v32, %v323_v26  ;;  %3230 = vmatmul.mubr.msk.bf16.gmra.mrb[16].mxu0 %vm4529_vm5, %v4872_v21  ;;  %v470_v47 = vsel %vm448_vm3, %v437_v54, %v421_v40  ;;  %v422_v58 = vrot.slane %v4879_v38, 7  ;;  %v424_v25 = vrot.slane %v4510_v55, 7  ;;  %v4271_v54 = vld [vmem:[%s5788_s1 + $0x88] sm:$0xff]  }
  0x55   : > { %1125 = vmatprep.mubr.bf16.mxu0 %v4876_v45  ;;  %v4899_v6 = vpack.c.bf16 %v454_v62, %v470_v47  ;;  %v4903_v41 = vpack.c.bf16 %v4881_v9, %v4879_v38  ;;  %v438_v33 = vrot.slane %v4881_v9, 7  ;;  %v362_v26 = vadd.f32 %v4478_v32, %v324_v34 }
  0x56   : > { %v4910_v40 = vmax.f32 %v361_v30, 0.0  ;;  %v440_v55 = vrot.slane %v4512_v56, 7  ;;  %v4915_v62 = vpack.c.bf16 %v4533_v5, %v4514_v57  ;;  %v425_v47 = vrot.slane %v4514_v57, 7 }
  0x57   : > { %v455_v23 = vsel %vm448_vm3, %v422_v58, %v438_v33  ;;  %v471_v32 = vsel %vm448_vm3, %v438_v33, %v422_v58  ;;  %v4922_v34 = vmax.f32 %v362_v26, 0.0  ;;  %v426_v26 = vrot.slane %v4601_v0, 7 }
  0x58   : > { %v4925_v30 = vpack.c.bf16 %v455_v23, %v471_v32  ;;  %v423_v56 = vrot.slane %v4910_v40, 7  ;;  %v457_v42 = vsel %vm448_vm3, %v424_v25, %v440_v55  ;;  %v473_v57 = vsel %vm448_vm3, %v440_v55, %v424_v25  ;;  %v5834_v3 = vld [vmem:[#allocation10_spill] sm:$0xff] }
  0x59   : > { %1552 = vmatmul.mubr.bf16.vlgmr.msra.gmra.mrb[16].mxu1 %v5822_v36  ;;  %v4935_v24 = vpack.c.bf16 %v4922_v34, %v4910_v40  ;;  %v439_v58 = vrot.slane %v4922_v34, 7  ;;  %v4938_v33 = vpack.c.bf16 %v457_v42, %v473_v57  ;;  %v458_v5 = vsel %vm448_vm3, %v425_v47, %v441_v50 }
  0x5a   : > { %3949 = vmatpush3.bf16.msra.mxu1 %v4813_v49  ;;  %1559 = vmatprep.mubr.bf16.mxu1 %v4523_v63  ;;  %v474_v23 = vsel %vm448_vm3, %v441_v50, %v425_v47  ;;  %v4948_v25 = vpack.c.bf16 %v4605_v8, %v4601_v0  ;;  %v442_v55 = vrot.slane %v4605_v8, 7  ;;  %v4272_v63 = vld [vmem:[%s5788_s1 + $0x90] sm:$0xff]   ;;  %v4963_v47 = vpack.c.bf16 %v4630_v29, %v4608_v11 }
  0x5b   : > { %3950 = vmatprep.subr.bf16.mxu1 %v4271_v54  ;;  %v456_v42 = vsel %vm448_vm3, %v423_v56, %v439_v58  ;;  %v472_v49 = vsel %vm448_vm3, %v439_v58, %v423_v56  ;;  %v4959_v50 = vpack.c.bf16 %v458_v5, %v474_v23  ;;  %v427_v56 = vrot.slane %v4608_v11, 7 }
  0x5c   : > { %3233 = vmatmul.mubr.msk.bf16.gmra.mrb[20].mxu0 %vm4529_vm5, %v4899_v6  ;;  %v4968_v0 = vpack.c.bf16 %v456_v42, %v472_v49  ;;  %v459_v8 = vsel %vm448_vm3, %v426_v26, %v442_v55  ;;  %v475_v32 = vsel %vm448_vm3, %v442_v55, %v426_v26  ;;  %v443_v58 = vrot.slane %v4630_v29, 7  ;;  %v4273_v29 = vld [vmem:[%s5788_s1 + $0x98] sm:$0xff]  }
  0x5d   : > { %1133 = vmatprep.mubr.bf16.mxu0 %v4903_v41  ;;  %v4976_v57 = vpack.c.bf16 %v459_v8, %v475_v32  ;;  %v4981_v5 = vpack.c.bf16 %v4695_v10, %v4688_v16  ;;  %v428_v23 = vrot.slane %v4688_v16, 7  ;;  %v444_v42 = vrot.slane %v4695_v10, 7 }
  0x5e   : > { %3951 = vmatpush3.bf16.msra.mxu1 %v4271_v54  ;;  %v4987_v26 = vpack.c.bf16 %v4729_v13, %v4715_v1  ;;  %v429_v11 = vrot.slane %v4715_v1, 7  ;;  %v445_v55 = vrot.slane %v4729_v13, 7  ;;  %v460_v49 = vsel %vm448_vm3, %v427_v56, %v443_v58 }
  0x5f   : > { %3952 = vmatprep.subr.bf16.mxu1 %v4272_v63  ;;  %v476_v16 = vsel %vm448_vm3, %v443_v58, %v427_v56  ;;  %v5000_v10 = vpack.c.bf16 %v4782_v59, %v4773_v48  ;;  %v430_v54 = vrot.slane %v4773_v48, 7  ;;  %v461_v13 = vsel %vm448_vm3, %v428_v23, %v444_v42 }
  0x60   : > { %v5003_v1 = vpack.c.bf16 %v460_v49, %v476_v16  ;;  %v477_v8 = vsel %vm448_vm3, %v444_v42, %v428_v23  ;;  %v462_v32 = vsel %vm448_vm3, %v429_v11, %v445_v55  ;;  %v478_v48 = vsel %vm448_vm3, %v445_v55, %v429_v11  ;;  %v4274_v11 = vld [vmem:[%s5788_s1 + $0xa0] sm:$0xff]  }
  0x61   : > { %3314 = vmatmul.mubr.msk.bf16.gmra.mrb[20].mxu1 %vm4529_vm5, %v4554_v20  ;;  %v5014_v56 = vpack.c.bf16 %v461_v13, %v477_v8  ;;  %v446_v58 = vrot.slane %v4782_v59, 7  ;;  %v5021_v49 = vpack.c.bf16 %v4820_v46, %v4806_v17  ;;  %v5024_v23 = vpack.c.bf16 %v462_v32, %v478_v48 }
  0x62   : > { %1567 = vmatprep.mubr.bf16.mxu1 %v4599_v60  ;;  %3953 = vmatpush3.bf16.msra.mxu1 %v4272_v63  ;;  %v431_v42 = vrot.slane %v4806_v17, 7  ;;  %v447_v20 = vrot.slane %v4820_v46, 7  ;;  %v5823_v16 = vrot.slane %v4506_v52, 1  ;;  %v5824_v13 = vrot.slane %v4504_v51, 1 }
  0x63   : > { %3954 = vmatprep.subr.bf16.mxu1 %v4273_v29  ;;  %v463_v63 = vsel %vm448_vm3, %v430_v54, %v446_v58  ;;  %v479_v17 = vsel %vm448_vm3, %v446_v58, %v430_v54  ;;  %v5049_v32 = vpack.c.bf16 %v4618_v15, %v4614_v14  ;;  %v517_v14 = vrot.slane %v4654_v7, 1 }
  0x64   : > { %v548_v59 = vsel %vm547_vm2, %v5824_v13, %v5823_v16  ;;  %v5825_v46 = vmov %v5824_v13  ;;  %v5826_v55 = vmov %v5823_v16  ;;  %3236 = vmatmul.mubr.msk.bf16.gmra.mrb[24].mxu0 %vm4529_vm5, %v4925_v30  ;;  %v5054_v48 = vpack.c.bf16 %v463_v63, %v479_v17 }
  0x65   : > { %v564_v8 = vsel %vm547_vm2, %v5826_v55, %v5825_v46  ;;  %v464_v54 = vsel %vm448_vm3, %v431_v42, %v447_v20  ;;  %v480_v51 = vsel %vm448_vm3, %v447_v20, %v431_v42  ;;  %1141 = vmatprep.mubr.bf16.mxu0 %v4935_v24  ;;  %v533_v15 = vrot.slane %v4671_v53, 1  ;;  %v4275_v20 = vld [vmem:[%s5788_s1 + $0xa8] sm:$0xff]  }
  0x66   : > { %v5060_v52 = vpack.c.bf16 %v564_v8, %v548_v59  ;;  %v5063_v58 = vpack.c.bf16 %v464_v54, %v480_v51  ;;  %v518_v16 = vrot.slane %v4740_v12, 1  ;;  %3955 = vmatpush3.bf16.msra.mxu1 %v4273_v29  ;;  %v534_v13 = vrot.slane %v4742_v22, 1 }
  0x67   : > { %v519_v63 = vrot.slane %v4836_v27, 1  ;;  %v535_v17 = vrot.slane %v4838_v44, 1  ;;  %v520_v42 = vrot.slane %v4846_v61, 1  ;;  %3956 = vmatprep.subr.bf16.mxu1 %v4274_v11  ;;  %v550_v7 = vsel %vm547_vm2, %v517_v14, %v533_v15 }
  0x68   : > { %v566_v53 = vsel %vm547_vm2, %v533_v15, %v517_v14  ;;  %v536_v12 = vrot.slane %v4857_v39, 1  ;;  %v521_v22 = vrot.slane %v4879_v38, 1  ;;  %v551_v44 = vsel %vm547_vm2, %v518_v16, %v534_v13  ;;  %v4276_v14 = vld [vmem:[%s5788_s1 + $0xb0] sm:$0xff]  }
  0x69   : > { %v5081_v27 = vpack.c.bf16 %v566_v53, %v550_v7  ;;  %v567_v61 = vsel %vm547_vm2, %v534_v13, %v518_v16  ;;  %v552_v29 = vsel %vm547_vm2, %v519_v63, %v535_v17  ;;  %3317 = vmatmul.mubr.msk.bf16.gmra.mrb[24].mxu1 %vm4529_vm5, %v4636_v31  ;;  %v568_v38 = vsel %vm547_vm2, %v535_v17, %v519_v63  ;;  %v4285_v63 = vld [vmem:[%s5788_s1 + $0xb8] sm:$0xff]   ;;  %v4278_v17 = vld [vmem:[%s5788_s1 + $0x180] sm:$0xff]   ;;  %v4281_v7 = vld [vmem:[%s5788_s1 + $0x1d0] sm:$0xff]  }
  0x6a   : > { %v5092_v59 = vpack.c.bf16 %v567_v61, %v551_v44  ;;  %v553_v39 = vsel %vm547_vm2, %v520_v42, %v536_v12  ;;  %v569_v46 = vsel %vm547_vm2, %v536_v12, %v520_v42  ;;  %1575 = vmatprep.mubr.bf16.mxu1 %v4686_v4  ;;  %3957 = vmatpush3.bf16.msra.mxu1 %v4274_v11  ;;  %v537_v54 = vrot.slane %v4881_v9, 1  ;;  %v4279_v42 = vld [vmem:[%s5788_s1 + $0x1c8] sm:$0xff]   ;;  %v4282_v53 = vld [vmem:[%s5788_s1 + $0x190] sm:$0xff]   ;;  %v4283_v12 = vld [vmem:[%s5788_s1 + $0x1d8] sm:$0xff]  }
  0x6b   : > { %v5101_v55 = vpack.c.bf16 %v568_v38, %v552_v29  ;;  %v5103_v8 = vpack.c.bf16 %v569_v46, %v553_v39  ;;  %v522_v51 = vrot.slane %v4910_v40, 1  ;;  %3958 = vmatprep.subr.bf16.mxu1 %v4275_v20  ;;  %v538_v15 = vrot.slane %v4922_v34, 1  ;;  %v4286_v44 = vld [vmem:[%s5788_s1 + $0x1e0] sm:$0xff]   ;;  %v4288_v29 = vld [vmem:[%s5788_s1 + $0x1e8] sm:$0xff]   ;;  %v4290_v39 = vld [vmem:[%s5788_s1 + $0x1f0] sm:$0xff]  }
  0x6c   : > { %3239 = vmatmul.mubr.msk.bf16.gmra.mrb[28].mxu0 %vm4529_vm5, %v4968_v0  ;;  %v554_v11 = vsel %vm547_vm2, %v521_v22, %v537_v54  ;;  %v570_v16 = vsel %vm547_vm2, %v537_v54, %v521_v22  ;;  %v4284_v22 = vld [vmem:[%s5788_s1 + $0x198] sm:$0xff]   ;;  %v4287_v61 = vld [vmem:[%s5788_s1 + $0x1a0] sm:$0xff]   ;;  %v4289_v38 = vld [vmem:[%s5788_s1 + $0x1a8] sm:$0xff]  }
  0x6d   : > { %1149 = vmatprep.mubr.bf16.mxu0 %v4887_v35  ;;  %v5119_v9 = vpack.c.bf16 %v570_v16, %v554_v11  ;;  %v555_v40 = vsel %vm547_vm2, %v522_v51, %v538_v15  ;;  %v571_v34 = vsel %vm547_vm2, %v538_v15, %v522_v51  ;;  %v4291_v46 = vld [vmem:[%s5788_s1 + $0x1b0] sm:$0xff]   ;;  %v4292_v54 = vld [vmem:[%s5788_s1 + $0x1f8] sm:$0xff]  }
  0x6e   : > { %3959 = vmatpush3.bf16.msra.mxu1 %v4275_v20  ;;  %v5125_v13 = vpack.c.bf16 %v571_v34, %v555_v40  ;;  %v4280_v20 = vld [vmem:[%s5788_s1 + $0x188] sm:$0xff]   ;;  %v4293_v51 = vld [vmem:[%s5788_s1 + $0x1b8] sm:$0xff]  }
  0x6f   : > { %3960 = vmatprep.subr.bf16.mxu1 %v4276_v14  ;;  %v5830_v11 = vld [vmem:[#allocation6_spill] sm:$0xff] }
  0x71   : > { %3320 = vmatmul.mubr.msk.bf16.gmra.mrb[28].mxu1 %vm4529_vm5, %v4712_v43 }
  0x72   : > { %1583 = vmatprep.mubr.bf16.mxu1 %v4757_v37  ;;  %3961 = vmatpush3.bf16.msra.mxu1 %v4276_v14  ;;  %v4295_v14 = vld [vmem:[%s5788_s1 + $0x208] sm:$0xff]  }
  0x73   : > { %3962 = vmatprep.subr.bf16.mxu1 %v4285_v63 }
  0x74   : > { %3242 = vmatmul.mubr.msk.bf16.gmra.mrb[32].mxu0 %vm4529_vm5, %v4938_v33 }
  0x75   : > { %1157 = vmatprep.mubr.bf16.mxu0 %v4915_v62 }
  0x76   : > { %3963 = vmatpush3.bf16.msra.mxu1 %v4285_v63 }
  0x77   : > { %3996 = vmatprep.subr.bf16.mxu1 %v5137_v19 }
  0x79   : > { %3323 = vmatmul.mubr.msk.bf16.gmra.mrb[32].mxu1 %vm4529_vm5, %v4784_v2 }
  0x7a   : > { %1591 = vmatprep.mubr.bf16.mxu1 %v4853_v28 }
  0x7c   : > { %3245 = vmatmul.mubr.msk.bf16.gmra.mrb[36].mxu0 %vm4529_vm5, %v4959_v50 }
  0x7d   : > { %1165 = vmatprep.mubr.bf16.mxu0 %v4948_v25 }
  0x81   : > { %3326 = vmatmul.mubr.msk.bf16.gmra.mrb[36].mxu1 %vm4529_vm5, %v4872_v21 }
  0x82   : > { %1599 = vmatprep.mubr.bf16.mxu1 %v4876_v45 }
  0x84   : > { %3248 = vmatmul.mubr.msk.bf16.gmra.mrb[40].mxu0 %vm4529_vm5, %v4976_v57 }
  0x85   : > { %1173 = vmatprep.mubr.bf16.mxu0 %v4963_v47 }
  0x89   : > { %3329 = vmatmul.mubr.msk.bf16.gmra.mrb[40].mxu1 %vm4529_vm5, %v4899_v6 }
  0x8a   : > { %1607 = vmatprep.mubr.bf16.mxu1 %v4903_v41 }
  0x8c   : > { %3251 = vmatmul.mubr.msk.bf16.gmra.mrb[44].mxu0 %vm4529_vm5, %v5003_v1 }
  0x8d   : > { %1181 = vmatprep.mubr.bf16.mxu0 %v4981_v5 }
  0x91   : > { %3332 = vmatmul.mubr.msk.bf16.gmra.mrb[44].mxu1 %vm4529_vm5, %v4925_v30 }
  0x92   : > { %1615 = vmatprep.mubr.bf16.mxu1 %v4935_v24 }
  0x94   : > { %3254 = vmatmul.mubr.msk.bf16.gmra.mrb[48].mxu0 %vm4529_vm5, %v5014_v56 }
  0x95   : > { %1189 = vmatprep.mubr.bf16.mxu0 %v4987_v26 }
  0x99   : > { %3335 = vmatmul.mubr.msk.bf16.gmra.mrb[48].mxu1 %vm4529_vm5, %v4968_v0 }
  0x9a   : > { %1623 = vmatprep.mubr.bf16.mxu1 %v4887_v35 }
  0x9c   : > { %3257 = vmatmul.mubr.msk.bf16.gmra.mrb[52].mxu0 %vm4529_vm5, %v5024_v23 }
  0x9d   : > { %1197 = vmatprep.mubr.bf16.mxu0 %v5000_v10 }
  0xa1   : > { %3338 = vmatmul.mubr.msk.bf16.gmra.mrb[52].mxu1 %vm4529_vm5, %v4938_v33 }
  0xa2   : > { %1631 = vmatprep.mubr.bf16.mxu1 %v4915_v62 }
  0xa4   : > { %3260 = vmatmul.mubr.msk.bf16.gmra.mrb[56].mxu0 %vm4529_vm5, %v5054_v48 }
  0xa5   : > { %1205 = vmatprep.mubr.bf16.mxu0 %v5021_v49 }
  0xa9   : > { %3341 = vmatmul.mubr.msk.bf16.gmra.mrb[56].mxu1 %vm4529_vm5, %v4959_v50 }
  0xaa   : > { %1639 = vmatprep.mubr.bf16.mxu1 %v4948_v25 }
  0xac   : > { %3263 = vmatmul.mubr.msk.bf16.gmra.mrb[60].mxu0 %vm4529_vm5, %v5063_v58 }
  0xad   : > { %3916 = vmatprep.mubr.msk.bf16.mxu0 %vm4550_vm6, %v5060_v52 }
  0xb1   : > { %3344 = vmatmul.mubr.msk.bf16.gmra.mrb[60].mxu1 %vm4529_vm5, %v4976_v57 }
  0xb2   : > { %1647 = vmatprep.mubr.bf16.mxu1 %v4963_v47 }
  0xb4   : > { %3917 = vmatmul.mubr.msk.bf16.vlgmr.msra.gmra.mrb[64].mxu0 %vm4550_vm6, %v5049_v32 }
  0xb5   : > { %3765 = vmatpush3.bf16.msra.mxu0 %v4278_v17  ;;  %3920 = vmatprep.mubr.msk.bf16.mxu0 %vm4550_vm6, %v5081_v27 }
  0xb6   : > { %3766 = vmatprep.subr.bf16.mxu0 %v4279_v42  ;;  %v5833_v42 = vld [vmem:[#allocation9_spill] sm:$0xff] }
  0xb9   : > { %3347 = vmatmul.mubr.msk.bf16.gmra.mrb[64].mxu1 %vm4529_vm5, %v5003_v1  ;;  %3767 = vmatpush3.bf16.msra.mxu0 %v4280_v20 }
  0xba   : > { %1655 = vmatprep.mubr.bf16.mxu1 %v4981_v5  ;;  %3768 = vmatprep.subr.bf16.mxu0 %v4281_v7 }
  0xbc   : > { %3921 = vmatmul.mubr.msk.bf16.gmra.mrb[68].mxu0 %vm4550_vm6, %v5092_v59 }
  0xbd   : > { %3769 = vmatpush3.bf16.msra.mxu0 %v4282_v53  ;;  %3924 = vmatprep.mubr.msk.bf16.mxu0 %vm4550_vm6, %v5101_v55 }
  0xbe   : > { %3770 = vmatprep.subr.bf16.mxu0 %v4283_v12 }
  0xc1   : > { %3350 = vmatmul.mubr.msk.bf16.gmra.mrb[68].mxu1 %vm4529_vm5, %v5014_v56  ;;  %3771 = vmatpush3.bf16.msra.mxu0 %v4284_v22 }
  0xc2   : > { %1663 = vmatprep.mubr.bf16.mxu1 %v4987_v26  ;;  %3772 = vmatprep.subr.bf16.mxu0 %v4286_v44 }
  0xc4   : > { %3925 = vmatmul.mubr.msk.bf16.gmra.mrb[72].mxu0 %vm4550_vm6, %v5103_v8 }
  0xc5   : > { %3773 = vmatpush3.bf16.msra.mxu0 %v4287_v61  ;;  %3928 = vmatprep.mubr.msk.bf16.mxu0 %vm4550_vm6, %v5119_v9 }
  0xc6   : > { %3774 = vmatprep.subr.bf16.mxu0 %v4288_v29 }
  0xc9   : > { %3353 = vmatmul.mubr.msk.bf16.gmra.mrb[72].mxu1 %vm4529_vm5, %v5024_v23  ;;  %3775 = vmatpush3.bf16.msra.mxu0 %v4289_v38 }
  0xca   : > { %1671 = vmatprep.mubr.bf16.mxu1 %v5000_v10  ;;  %3776 = vmatprep.subr.bf16.mxu0 %v4290_v39 }
  0xcc   : > { %3929 = vmatmul.mubr.msk.bf16.gmra.mrb[76].mxu0 %vm4550_vm6, %v5125_v13 }
  0xcd   : > { %3777 = vmatpush3.bf16.msra.mxu0 %v4291_v46  ;;  %2115 = vmatprep.mubr.bf16.mxu0 %v4599_v60  ;;  %v4296_v60 = vld [vmem:[%s5788_s1 + $0x210] sm:$0xff]  }
  0xce   : > { %3778 = vmatprep.subr.bf16.mxu0 %v4292_v54 }
  0xd1   : > { %3356 = vmatmul.mubr.msk.bf16.gmra.mrb[76].mxu1 %vm4529_vm5, %v5054_v48  ;;  %3779 = vmatpush3.bf16.msra.mxu0 %v4293_v51 }
  0xd2   : > { %3964 = vmatprep.mubr.bf16.mxu1 %v5822_v36 }
  0xd4   : > { %3404 = vmatmul.mubr.msk.bf16.vlgmr.msra.gmra.mrb[80].mxu0 %vm4529_vm5, %v4636_v31  ;;  %v4297_v31 = vld [vmem:[%s5788_s1 + $0x218] sm:$0xff]  }
  0xd5   : > { %2123 = vmatprep.mubr.bf16.mxu0 %v4686_v4  ;;  %v4298_v4 = vld [vmem:[%s5788_s1 + $0x220] sm:$0xff]  }
  0xd9   : > { %3965 = vmatmul.mubr.msk.bf16.vlgmr.msra.gmra.mrb[80].mxu1 %vm4550_vm6, %v5060_v52 }
  0xda   : > { %3997 = vmatpush3.bf16.msra.mxu1 %v5137_v19  ;;  %3968 = vmatprep.mubr.msk.bf16.mxu1 %vm4550_vm6, %v5049_v32 }
  0xdb   : > { %3998 = vmatprep.subr.bf16.mxu1 %v4295_v14 }
  0xdc   : > { %3407 = vmatmul.mubr.msk.bf16.gmra.mrb[84].mxu0 %vm4529_vm5, %v4712_v43  ;;  %v4299_v43 = vld [vmem:[%s5788_s1 + $0x228] sm:$0xff]  }
  0xdd   : > { %2131 = vmatprep.mubr.bf16.mxu0 %v4757_v37  ;;  %v4300_v37 = vld [vmem:[%s5788_s1 + $0x230] sm:$0xff]  }
  0xde   : > { %3999 = vmatpush3.bf16.msra.mxu1 %v4295_v14 }
  0xdf   : > { %4000 = vmatprep.subr.bf16.mxu1 %v4296_v60 }
  0xe1   : > { %3969 = vmatmul.mubr.msk.bf16.gmra.mrb[84].mxu1 %vm4550_vm6, %v5081_v27 }
  0xe2   : > { %3972 = vmatprep.mubr.msk.bf16.mxu1 %vm4550_vm6, %v5092_v59  ;;  %4001 = vmatpush3.bf16.msra.mxu1 %v4296_v60 }
  0xe3   : > { %4002 = vmatprep.subr.bf16.mxu1 %v4297_v31 }
  0xe4   : > { %3410 = vmatmul.mubr.msk.bf16.gmra.mrb[88].mxu0 %vm4529_vm5, %v4784_v2  ;;  %v4301_v2 = vld [vmem:[%s5788_s1 + $0x238] sm:$0xff]  }
  0xe5   : > { %2139 = vmatprep.mubr.bf16.mxu0 %v4853_v28  ;;  %v5827_v28 = vld [vmem:[#allocation3_spill] sm:$0xff] }
  0xe6   : > { %4003 = vmatpush3.bf16.msra.mxu1 %v4297_v31 }
  0xe7   : > { %4004 = vmatprep.subr.bf16.mxu1 %v4298_v4 }
  0xe9   : > { %3973 = vmatmul.mubr.msk.bf16.gmra.mrb[88].mxu1 %vm4550_vm6, %v5101_v55 }
  0xea   : > { %3976 = vmatprep.mubr.msk.bf16.mxu1 %vm4550_vm6, %v5103_v8  ;;  %4005 = vmatpush3.bf16.msra.mxu1 %v4298_v4 }
  0xeb   : > { %4006 = vmatprep.subr.bf16.mxu1 %v4299_v43 }
  0xec   : > { %3413 = vmatmul.mubr.msk.bf16.gmra.mrb[92].mxu0 %vm4529_vm5, %v4872_v21  ;;  %v5828_v21 = vld [vmem:[#allocation4_spill] sm:$0xff] }
  0xed   : > { %2147 = vmatprep.mubr.bf16.mxu0 %v4876_v45 }
  0xee   : > { %4007 = vmatpush3.bf16.msra.mxu1 %v4299_v43 }
  0xef   : > { %4008 = vmatprep.subr.bf16.mxu1 %v4300_v37 }
  0xf1   : > { %3977 = vmatmul.mubr.msk.bf16.gmra.mrb[92].mxu1 %vm4550_vm6, %v5119_v9 }
  0xf2   : > { %3980 = vmatprep.mubr.msk.bf16.mxu1 %vm4550_vm6, %v5125_v13  ;;  %4009 = vmatpush3.bf16.msra.mxu1 %v4300_v37 }
  0xf3   : > { %4010 = vmatprep.subr.bf16.mxu1 %v4301_v2 }
  0xf4   : > { %3416 = vmatmul.mubr.msk.bf16.gmra.mrb[96].mxu0 %vm4529_vm5, %v4899_v6  ;;  %v5829_v6 = vld [vmem:[#allocation5_spill] sm:$0xff] }
  0xf5   : > { %2155 = vmatprep.mubr.bf16.mxu0 %v4903_v41 }
  0xf6   : > { %4011 = vmatpush3.bf16.msra.mxu1 %v4301_v2 }
  0xf9   : > { %3981 = vmatmul.mubr.msk.bf16.gmra.mrb[0].mxu1 %vm4550_vm6, %v5827_v28 }
  0xfa   : > { %3984 = vmatprep.mubr.msk.bf16.mxu1 %vm4550_vm6, %v5828_v21 }
  0xfc   : > { %3419 = vmatmul.mubr.msk.bf16.gmra.mrb[100].mxu0 %vm4529_vm5, %v4925_v30  ;;  %v5832_v30 = vld [vmem:[#allocation8_spill] sm:$0xff] }
  0xfd   : > { %2163 = vmatprep.mubr.bf16.mxu0 %v4935_v24  ;;  %v5831_v24 = vld [vmem:[#allocation7_spill] sm:$0xff] }
 0x101   : > { %3985 = vmatmul.mubr.msk.bf16.gmra.mrb[4].mxu1 %vm4550_vm6, %v5829_v6 }
 0x102   : > { %v3508_v45 = vpop.f32.mrb[0].mxu0  ;;  %3988 = vmatprep.mubr.msk.bf16.mxu1 %vm4550_vm6, %v5830_v11 }
 0x103   : > { %v3509_v52 = vpop.f32.mrb[1].mxu0 }
 0x104   : > { %v5368_v41 = vadd.f32 %v3509_v52, %v3508_v45  ;;  %v3511_v15 = vpop.f32.mrb[2].mxu0  ;;  %3422 = vmatmul.mubr.msk.bf16.gmra.mrb[104].mxu0 %vm4529_vm5, %v4968_v0 }
 0x105   : > { %v3512_v16 = vpop.f32.mrb[3].mxu0  ;;  %2171 = vmatprep.mubr.bf16.mxu0 %v4887_v35 }
 0x106   : > { %v5373_v40 = vadd.f32 %v3512_v16, %v3511_v15 }
 0x109   : > { %3989 = vmatmul.mubr.msk.bf16.gmra.mrb[8].mxu1 %vm4550_vm6, %v5831_v24 }
 0x10a   : > { %3992 = vmatprep.mubr.msk.bf16.mxu1 %vm4550_vm6, %v5832_v30 }
 0x10c   : > { %v3514_v34 = vpop.f32.mrb[4].mxu0  ;;  %3425 = vmatmul.mubr.msk.bf16.gmra.mrb[108].mxu0 %vm4529_vm5, %v4938_v33 }
 0x10d   : > { %v3515_v63 = vpop.f32.mrb[5].mxu0  ;;  %2179 = vmatprep.mubr.bf16.mxu0 %v4915_v62 }
 0x10e   : > { %v5388_v19 = vadd.f32 %v3515_v63, %v3514_v34  ;;  %v3517_v17 = vpop.f32.mrb[6].mxu0 }
 0x10f   : > { %v3518_v0 = vpop.f32.mrb[7].mxu0 }
 0x110   : > { %v5391_v35 = vadd.f32 %v3518_v0, %v3517_v17 }
 0x111   : > { %3993 = vmatmul.mubr.msk.bf16.gmra.mrb[12].mxu1 %vm4550_vm6, %v5833_v42 }
 0x112   : > { %4012 = vmatprep.mubr.msk.bf16.mxu1 %vm4550_vm6, %v5049_v32 }
 0x114   : > { %v3520_v20 = vpop.f32.mrb[8].mxu0  ;;  %3428 = vmatmul.mubr.msk.bf16.gmra.mrb[112].mxu0 %vm4529_vm5, %v4959_v50 }
 0x115   : > { %v3521_v33 = vpop.f32.mrb[9].mxu0  ;;  %2187 = vmatprep.mubr.bf16.mxu0 %v4948_v25 }
 0x116   : > { %v5402_v7 = vadd.f32 %v3521_v33, %v3520_v20  ;;  %v3523_v53 = vpop.f32.mrb[10].mxu0 }
 0x117   : > { %v3524_v62 = vpop.f32.mrb[11].mxu0 }
 0x118   : > { %v5405_v12 = vadd.f32 %v3524_v62, %v3523_v53 }
 0x119   : > { %4013 = vmatmul.mubr.msk.bf16.vlgmr.msra.gmra.mrb[80].mxu1 %vm4550_vm6, %v5081_v27 }
 0x11a   : > { %4016 = vmatprep.mubr.msk.bf16.mxu1 %vm4550_vm6, %v5092_v59 }
 0x11c   : > { %v3526_v32 = vpop.f32.mrb[12].mxu0  ;;  %3431 = vmatmul.mubr.msk.bf16.gmra.mrb[116].mxu0 %vm4529_vm5, %v4976_v57 }
 0x11d   : > { %v3527_v50 = vpop.f32.mrb[13].mxu0  ;;  %2195 = vmatprep.mubr.bf16.mxu0 %v4963_v47 }
 0x11e   : > { %v5416_v22 = vadd.f32 %v3527_v50, %v3526_v32  ;;  %v3529_v25 = vpop.f32.mrb[14].mxu0 }
 0x11f   : > { %v3530_v44 = vpop.f32.mrb[15].mxu0 }
 0x120   : > { %v5419_v61 = vadd.f32 %v3530_v44, %v3529_v25 }
 0x121   : > { %4017 = vmatmul.mubr.msk.bf16.gmra.mrb[84].mxu1 %vm4550_vm6, %v5101_v55 }
 0x122   : > { %4020 = vmatprep.mubr.msk.bf16.mxu1 %vm4550_vm6, %v5103_v8 }
 0x124   : > { %3434 = vmatmul.mubr.msk.bf16.gmra.mrb[120].mxu0 %vm4529_vm5, %v5003_v1 }
 0x125   : > { %2203 = vmatprep.mubr.bf16.mxu0 %v4981_v5 }
 0x127   : > { %v3532_v57 = vpop.f32.mrb[16].mxu0 }
 0x128   : > { %v3533_v27 = vpop.f32.mrb[17].mxu0 }
 0x129   : > { %4021 = vmatmul.mubr.msk.bf16.gmra.mrb[88].mxu1 %vm4550_vm6, %v5119_v9  ;;  %v5434_v47 = vadd.f32 %v3533_v27, %v3532_v57  ;;  %v3535_v59 = vpop.f32.mrb[18].mxu0 }
 0x12a   : > { %v3536_v55 = vpop.f32.mrb[19].mxu0  ;;  %4024 = vmatprep.mubr.msk.bf16.mxu1 %vm4550_vm6, %v5125_v13 }
 0x12b   : > { %v5439_v8 = vadd.f32 %v3536_v55, %v3535_v59 }
 0x12c   : > { %v3644_v29 = vpop.f32.mrb[16].mxu1  ;;  %3437 = vmatmul.mubr.msk.bf16.gmra.mrb[124].mxu0 %vm4529_vm5, %v5014_v56 }
 0x12d   : > { %v3645_v5 = vpop.f32.mrb[17].mxu1  ;;  %2211 = vmatprep.mubr.bf16.mxu0 %v4987_v26 }
 0x12e   : > { %v5445_v1 = vadd.f32 %v3645_v5, %v3644_v29  ;;  %v3647_v9 = vpop.f32.mrb[18].mxu1 }
 0x12f   : > { %v3648_v38 = vpop.f32.mrb[19].mxu1  ;;  %v3538_v39 = vpop.f32.mrb[20].mxu0 }
 0x130   : > { %v5447_v46 = vadd.f32 %v3648_v38, %v3647_v9  ;;  %v3539_v54 = vpop.f32.mrb[21].mxu0 }
 0x131   : > { %4025 = vmatmul.mubr.msk.bf16.gmra.mrb[92].mxu1 %vm4550_vm6, %v5827_v28  ;;  %v5452_v13 = vadd.f32 %v3539_v54, %v3538_v39  ;;  %v3541_v51 = vpop.f32.mrb[22].mxu0 }
 0x132   : > { %v3542_v14 = vpop.f32.mrb[23].mxu0  ;;  %4028 = vmatprep.mubr.msk.bf16.mxu1 %vm4550_vm6, %v5828_v21 }
 0x133   : > { %v5457_v26 = vadd.f32 %v3542_v14, %v3541_v51 }
 0x134   : > { %v3650_v56 = vpop.f32.mrb[20].mxu1  ;;  %3440 = vmatmul.mubr.msk.bf16.gmra.mrb[128].mxu0 %vm4529_vm5, %v5024_v23 }
 0x135   : > { %v3651_v60 = vpop.f32.mrb[21].mxu1  ;;  %2219 = vmatprep.mubr.bf16.mxu0 %v5000_v10 }
 0x136   : > { %v5463_v31 = vadd.f32 %v3651_v60, %v3650_v56  ;;  %v3653_v4 = vpop.f32.mrb[22].mxu1 }
 0x137   : > { %v3654_v43 = vpop.f32.mrb[23].mxu1  ;;  %v3544_v37 = vpop.f32.mrb[24].mxu0 }
 0x138   : > { %v5465_v2 = vadd.f32 %v3654_v43, %v3653_v4  ;;  %v3545_v28 = vpop.f32.mrb[25].mxu0 }
 0x139   : > { %4029 = vmatmul.mubr.msk.bf16.gmra.mrb[0].mxu1 %vm4550_vm6, %v5829_v6  ;;  %v5470_v21 = vadd.f32 %v3545_v28, %v3544_v37  ;;  %v3547_v45 = vpop.f32.mrb[26].mxu0 }
 0x13a   : > { %v3548_v52 = vpop.f32.mrb[27].mxu0  ;;  %4032 = vmatprep.mubr.msk.bf16.mxu1 %vm4550_vm6, %v5830_v11 }
 0x13b   : > { %v5475_v10 = vadd.f32 %v3548_v52, %v3547_v45 }
 0x13c   : > { %v3656_v23 = vpop.f32.mrb[24].mxu1  ;;  %3443 = vmatmul.mubr.msk.bf16.gmra.mrb[132].mxu0 %vm4529_vm5, %v5054_v48 }
 0x13d   : > { %v3657_v15 = vpop.f32.mrb[25].mxu1  ;;  %2227 = vmatprep.mubr.bf16.mxu0 %v5021_v49 }
 0x13e   : > { %v5481_v16 = vadd.f32 %v3657_v15, %v3656_v23  ;;  %v3659_v6 = vpop.f32.mrb[26].mxu1 }
 0x13f   : > { %v3660_v34 = vpop.f32.mrb[27].mxu1  ;;  %v3550_v63 = vpop.f32.mrb[28].mxu0 }
 0x140   : > { %v5483_v17 = vadd.f32 %v3660_v34, %v3659_v6  ;;  %v3551_v0 = vpop.f32.mrb[29].mxu0 }
 0x141   : > { %4033 = vmatmul.mubr.msk.bf16.gmra.mrb[4].mxu1 %vm4550_vm6, %v5831_v24  ;;  %v5488_v11 = vadd.f32 %v3551_v0, %v3550_v63  ;;  %v3553_v20 = vpop.f32.mrb[30].mxu0 }
 0x142   : > { %v3554_v33 = vpop.f32.mrb[31].mxu0  ;;  %4036 = vmatprep.mubr.msk.bf16.mxu1 %vm4550_vm6, %v5832_v30 }
 0x143   : > { %v5493_v49 = vadd.f32 %v3554_v33, %v3553_v20 }
 0x144   : > { %v3662_v48 = vpop.f32.mrb[28].mxu1  ;;  %3446 = vmatmul.mubr.msk.bf16.gmra.mrb[136].mxu0 %vm4529_vm5, %v5063_v58 }
 0x145   : > { %v3663_v53 = vpop.f32.mrb[29].mxu1  ;;  %2235 = vmatprep.mubr.bf16.mxu0 %v5822_v36 }
 0x146   : > { %v5499_v62 = vadd.f32 %v3663_v53, %v3662_v48  ;;  %v3665_v24 = vpop.f32.mrb[30].mxu1 }
 0x147   : > { %v3666_v32 = vpop.f32.mrb[31].mxu1  ;;  %v3556_v50 = vpop.f32.mrb[32].mxu0 }
 0x148   : > { %v5501_v25 = vadd.f32 %v3666_v32, %v3665_v24  ;;  %v3557_v44 = vpop.f32.mrb[33].mxu0 }
 0x149   : > { %4037 = vmatmul.mubr.msk.bf16.gmra.mrb[8].mxu1 %vm4550_vm6, %v5833_v42  ;;  %v3558_v30 = vadd.f32 %v3557_v44, %v3556_v50  ;;  %v3559_v57 = vpop.f32.mrb[34].mxu0 }
 0x14a   : > { %v3560_v27 = vpop.f32.mrb[35].mxu0  ;;  %4040 = vmatprep.mubr.msk.bf16.mxu1 %vm4550_vm6, %v5834_v3 }
 0x14b   : > { %v3561_v58 = vadd.f32 %v3560_v27, %v3559_v57 }
 0x14c   : > { %v3668_v59 = vpop.f32.mrb[32].mxu1  ;;  %2236 = vmatmul.mubr.bf16.gmra.mrb[140].mxu0 %v5822_v36 }
 0x14d   : > { %v3669_v55 = vpop.f32.mrb[33].mxu1 }
 0x14e   : > { %v5510_v29 = vadd.f32 %v3669_v55, %v3668_v59  ;;  %v3671_v5 = vpop.f32.mrb[34].mxu1 }
 0x14f   : > { %v3672_v9 = vpop.f32.mrb[35].mxu1  ;;  %v3562_v38 = vpop.f32.mrb[36].mxu0 }
 0x150   : > { %v5512_v39 = vadd.f32 %v3672_v9, %v3671_v5  ;;  %v3563_v42 = vpop.f32.mrb[37].mxu0 }
 0x151   : > { %4041 = vmatmul.mubr.bf16.gmra.mrb[12].mxu1 %v5822_v36  ;;  %v3564_v54 = vadd.f32 %v3563_v42, %v3562_v38  ;;  %v3565_v51 = vpop.f32.mrb[38].mxu0 }
 0x152   : > { %v3566_v14 = vpop.f32.mrb[39].mxu0 }
 0x153   : > { %v3567_v18 = vadd.f32 %v3566_v14, %v3565_v51 }
 0x154   : > { %v3674_v56 = vpop.f32.mrb[36].mxu1 }
 0x155   : > { %v3675_v60 = vpop.f32.mrb[37].mxu1 }
 0x156   : > { %v5515_v4 = vadd.f32 %v3675_v60, %v3674_v56  ;;  %v3677_v43 = vpop.f32.mrb[38].mxu1 }
 0x157   : > { %v3678_v37 = vpop.f32.mrb[39].mxu1  ;;  %v3568_v28 = vpop.f32.mrb[40].mxu0 }
 0x158   : > { %v5517_v45 = vadd.f32 %v3678_v37, %v3677_v43  ;;  %v3569_v52 = vpop.f32.mrb[41].mxu0 }
 0x159   : > { %v3570_v23 = vadd.f32 %v3569_v52, %v3568_v28  ;;  %v3571_v15 = vpop.f32.mrb[42].mxu0 }
 0x15a   : > { %v3572_v6 = vpop.f32.mrb[43].mxu0 }
 0x15b   : > { %v5519_v34 = vadd.f32 %v3572_v6, %v3571_v15 }
 0x15c   : > { %v3680_v36 = vpop.f32.mrb[40].mxu1 }
 0x15d   : > { %v3681_v63 = vpop.f32.mrb[41].mxu1 }
 0x15e   : > { %v5521_v0 = vadd.f32 %v3681_v63, %v3680_v36  ;;  %v3683_v20 = vpop.f32.mrb[42].mxu1 }
 0x15f   : > { %v3684_v33 = vpop.f32.mrb[43].mxu1  ;;  %v3574_v48 = vpop.f32.mrb[44].mxu0 }
 0x160   : > { %v5523_v53 = vadd.f32 %v3684_v33, %v3683_v20  ;;  %v3575_v24 = vpop.f32.mrb[45].mxu0 }
 0x161   : > { %v5525_v32 = vadd.f32 %v3575_v24, %v3574_v48  ;;  %v3577_v50 = vpop.f32.mrb[46].mxu0 }
 0x162   : > { %v3578_v44 = vpop.f32.mrb[47].mxu0 }
 0x163   : > { %v5527_v57 = vadd.f32 %v3578_v44, %v3577_v50 }
 0x164   : > { %v3686_v27 = vpop.f32.mrb[44].mxu1 }
 0x165   : > { %v3687_v3 = vpop.f32.mrb[45].mxu1 }
 0x166   : > { %v5529_v59 = vadd.f32 %v3687_v3, %v3686_v27  ;;  %v3689_v55 = vpop.f32.mrb[46].mxu1 }
 0x167   : > { %v3690_v5 = vpop.f32.mrb[47].mxu1  ;;  %v3580_v9 = vpop.f32.mrb[48].mxu0 }
 0x168   : > { %v5531_v38 = vadd.f32 %v3690_v5, %v3689_v55  ;;  %v3581_v42 = vpop.f32.mrb[49].mxu0 }
 0x169   : > { %v5533_v51 = vadd.f32 %v3581_v42, %v3580_v9  ;;  %v3583_v14 = vpop.f32.mrb[50].mxu0 }
 0x16a   : > { %v3584_v56 = vpop.f32.mrb[51].mxu0 }
 0x16b   : > { %v5535_v60 = vadd.f32 %v3584_v56, %v3583_v14 }
 0x16c   : > { %v3692_v43 = vpop.f32.mrb[48].mxu1 }
 0x16d   : > { %v3693_v37 = vpop.f32.mrb[49].mxu1 }
 0x16e   : > { %v3694_v28 = vadd.f32 %v3693_v37, %v3692_v43  ;;  %v3695_v52 = vpop.f32.mrb[50].mxu1 }
 0x16f   : > { %v3696_v15 = vpop.f32.mrb[51].mxu1  ;;  %v3586_v6 = vpop.f32.mrb[52].mxu0 }
 0x170   : > { %v5537_v36 = vadd.f32 %v3694_v28, %v3558_v30  ;;  %v3697_v63 = vadd.f32 %v3696_v15, %v3695_v52  ;;  %v3587_v20 = vpop.f32.mrb[53].mxu0 }
 0x171   : > { %v5539_v33 = vadd.f32 %v3587_v20, %v3586_v6  ;;  %v3589_v48 = vpop.f32.mrb[54].mxu0 }
 0x172   : > { %v5541_v24 = vadd.f32 %v3697_v63, %v3561_v58  ;;  %v3590_v50 = vpop.f32.mrb[55].mxu0 }
 0x173   : > { %v5543_v44 = vadd.f32 %v3590_v50, %v3589_v48 }
 0x174   : > { %v3698_v27 = vpop.f32.mrb[52].mxu1 }
 0x175   : > { %v3699_v3 = vpop.f32.mrb[53].mxu1 }
 0x176   : > { %v3700_v55 = vadd.f32 %v3699_v3, %v3698_v27  ;;  %v3701_v5 = vpop.f32.mrb[54].mxu1 }
 0x177   : > { %v3702_v9 = vpop.f32.mrb[55].mxu1  ;;  %v3592_v42 = vpop.f32.mrb[56].mxu0 }
 0x178   : > { %v5545_v14 = vadd.f32 %v3700_v55, %v3564_v54  ;;  %v3703_v30 = vadd.f32 %v3702_v9, %v3701_v5  ;;  %v3593_v56 = vpop.f32.mrb[57].mxu0 }
 0x179   : > { %v5547_v43 = vadd.f32 %v3593_v56, %v3592_v42  ;;  %v3595_v37 = vpop.f32.mrb[58].mxu0 }
 0x17a   : > { %v5549_v28 = vadd.f32 %v3703_v30, %v3567_v18  ;;  %v3596_v58 = vpop.f32.mrb[59].mxu0 }
 0x17b   : > { %v5551_v52 = vadd.f32 %v3596_v58, %v3595_v37 }
 0x17c   : > { %v3704_v15 = vpop.f32.mrb[56].mxu1 }
 0x17d   : > { %v3705_v6 = vpop.f32.mrb[57].mxu1 }
 0x17e   : > { %v3706_v63 = vadd.f32 %v3705_v6, %v3704_v15  ;;  %v3707_v20 = vpop.f32.mrb[58].mxu1 }
 0x17f   : > { %v3708_v48 = vpop.f32.mrb[59].mxu1  ;;  %v3598_v50 = vpop.f32.mrb[60].mxu0 }
 0x180   : > { %v5553_v27 = vadd.f32 %v3706_v63, %v3570_v23  ;;  %v3709_v54 = vadd.f32 %v3708_v48, %v3707_v20  ;;  %v3599_v3 = vpop.f32.mrb[61].mxu0 }
 0x181   : > { %v5555_v55 = vadd.f32 %v3599_v3, %v3598_v50  ;;  %v3601_v5 = vpop.f32.mrb[62].mxu0 }
 0x182   : > { %v5558_v9 = vadd.f32 %v3709_v54, %v5519_v34  ;;  %v3602_v18 = vpop.f32.mrb[63].mxu0 }
 0x183   : > { %v5560_v42 = vadd.f32 %v3602_v18, %v3601_v5 }
 0x184   : > { %v3710_v30 = vpop.f32.mrb[60].mxu1 }
 0x185   : > { %v3711_v56 = vpop.f32.mrb[61].mxu1 }
 0x186   : > { %v3712_v37 = vadd.f32 %v3711_v56, %v3710_v30  ;;  %v3713_v58 = vpop.f32.mrb[62].mxu1 }
 0x187   : > { %v3714_v15 = vpop.f32.mrb[63].mxu1  ;;  %v3918_v6 = vpop.f32.mrb[64].mxu0 }
 0x188   : > { %v5563_v23 = vadd.f32 %v3712_v37, %v5525_v32  ;;  %v3715_v63 = vadd.f32 %v3714_v15, %v3713_v58  ;;  %v1257_v20 = vadd.f32 %v3918_v6, %v5388_v19  ;;  %v1248_v48 = vpop.f32.mrb[65].mxu0 }
 0x189   : > { %v1249_v50 = vadd.f32 %v5368_v41, %v1248_v48  ;;  %v3919_v34 = vpop.f32.mrb[66].mxu0 }
 0x18a   : > { %v5568_v54 = vadd.f32 %v3715_v63, %v5527_v57  ;;  %v5571_v3 = vadd.f32 %v5463_v31, %v1257_v20  ;;  %v1260_v5 = vadd.f32 %v3919_v34, %v5391_v35  ;;  %v1251_v18 = vpop.f32.mrb[67].mxu0 }
 0x18b   : > { %v5575_v30 = vadd.f32 %v5445_v1, %v1249_v50  ;;  %v1252_v32 = vadd.f32 %v5373_v40, %v1251_v18 }
 0x18c   : > { %v3716_v56 = vpop.f32.mrb[64].mxu1  ;;  %v5579_v19 = vadd.f32 %v5465_v2, %v1260_v5 }
 0x18d   : > { %v3717_v41 = vpop.f32.mrb[65].mxu1  ;;  %v5582_v37 = vadd.f32 %v5447_v46, %v1252_v32 }
 0x18e   : > { %v3718_v57 = vadd.f32 %v3717_v41, %v3716_v56  ;;  %v3719_v58 = vpop.f32.mrb[66].mxu1 }
 0x18f   : > { %v3720_v31 = vpop.f32.mrb[67].mxu1  ;;  %v3922_v15 = vpop.f32.mrb[68].mxu0 }
 0x190   : > { %v5585_v35 = vadd.f32 %v3718_v57, %v5533_v51  ;;  %v3721_v6 = vadd.f32 %v3720_v31, %v3719_v58  ;;  %v1273_v1 = vadd.f32 %v3922_v15, %v5416_v22  ;;  %v1264_v63 = vpop.f32.mrb[69].mxu0 }
 0x191   : > { %v1265_v40 = vadd.f32 %v5402_v7, %v1264_v63  ;;  %v3923_v20 = vpop.f32.mrb[70].mxu0 }
 0x192   : > { %v5590_v2 = vadd.f32 %v3721_v6, %v5535_v60  ;;  %v5593_v46 = vadd.f32 %v5499_v62, %v1273_v1  ;;  %v1276_v48 = vadd.f32 %v3923_v20, %v5419_v61  ;;  %v1267_v50 = vpop.f32.mrb[71].mxu0 }
 0x193   : > { %v5597_v34 = vadd.f32 %v5481_v16, %v1265_v40  ;;  %v1268_v51 = vadd.f32 %v5405_v12, %v1267_v50 }
 0x194   : > { %v3722_v5 = vpop.f32.mrb[68].mxu1  ;;  %v5601_v22 = vadd.f32 %v5501_v25, %v1276_v48 }
 0x195   : > { %v3723_v7 = vpop.f32.mrb[69].mxu1  ;;  %v5604_v18 = vadd.f32 %v5483_v17, %v1268_v51 }
 0x196   : > { %v3724_v60 = vadd.f32 %v3723_v7, %v3722_v5  ;;  %v3725_v32 = vpop.f32.mrb[70].mxu1 }
 0x197   : > { %v3726_v62 = vpop.f32.mrb[71].mxu1  ;;  %v3926_v56 = vpop.f32.mrb[72].mxu0 }
 0x198   : > { %v5607_v61 = vadd.f32 %v3724_v60, %v5539_v33  ;;  %v3727_v41 = vadd.f32 %v3726_v62, %v3725_v32  ;;  %v1289_v16 = vadd.f32 %v3926_v56, %v5452_v13  ;;  %v1280_v57 = vpop.f32.mrb[73].mxu0 }
 0x199   : > { %v1281_v12 = vadd.f32 %v5434_v47, %v1280_v57  ;;  %v3927_v58 = vpop.f32.mrb[74].mxu0 }
 0x19a   : > { %v5612_v25 = vadd.f32 %v3727_v41, %v5543_v44  ;;  %v5615_v17 = vadd.f32 %v5515_v4, %v1289_v16  ;;  %v1292_v31 = vadd.f32 %v3927_v58, %v5457_v26  ;;  %v1283_v15 = vpop.f32.mrb[75].mxu0 }
 0x19b   : > { %v5619_v6 = vadd.f32 %v5510_v29, %v1281_v12  ;;  %v1284_v33 = vadd.f32 %v5439_v8, %v1283_v15 }
 0x19c   : > { %v3728_v1 = vpop.f32.mrb[72].mxu1  ;;  %v5623_v13 = vadd.f32 %v5517_v45, %v1292_v31 }
 0x19d   : > { %v3729_v47 = vpop.f32.mrb[73].mxu1  ;;  %v5626_v63 = vadd.f32 %v5512_v39, %v1284_v33 }
 0x19e   : > { %v3730_v44 = vadd.f32 %v3729_v47, %v3728_v1  ;;  %v3731_v40 = vpop.f32.mrb[74].mxu1 }
 0x19f   : > { %v3732_v4 = vpop.f32.mrb[75].mxu1  ;;  %v3930_v20 = vpop.f32.mrb[76].mxu0 }
 0x1a0   : > { %v5629_v26 = vadd.f32 %v3730_v44, %v5547_v43  ;;  %v3733_v48 = vadd.f32 %v3732_v4, %v3731_v40  ;;  %v1305_v29 = vadd.f32 %v3930_v20, %v5488_v11  ;;  %v1296_v50 = vpop.f32.mrb[77].mxu0 }
 0x1a1   : > { %v1297_v8 = vadd.f32 %v5470_v21, %v1296_v50  ;;  %v3931_v51 = vpop.f32.mrb[78].mxu0 }
 0x1a2   : > { %v5634_v45 = vadd.f32 %v3733_v48, %v5551_v52  ;;  %v5637_v39 = vadd.f32 %v5529_v59, %v1305_v29  ;;  %v1308_v5 = vadd.f32 %v3931_v51, %v5493_v49  ;;  %v1299_v7 = vpop.f32.mrb[79].mxu0 }
 0x1a3   : > { %v5641_v60 = vadd.f32 %v5521_v0, %v1297_v8  ;;  %v1300_v43 = vadd.f32 %v5475_v10, %v1299_v7 }
 0x1a4   : > { %v3734_v32 = vpop.f32.mrb[76].mxu1  ;;  %v5645_v11 = vadd.f32 %v5531_v38, %v1308_v5 }
 0x1a5   : > { %v3735_v21 = vpop.f32.mrb[77].mxu1  ;;  %v1605_v62 = vadd.f32 %v5523_v53, %v1300_v43 }
 0x1a6   : > { %v3736_v52 = vadd.f32 %v3735_v21, %v3734_v32  ;;  %v3737_v56 = vpop.f32.mrb[78].mxu1 }
 0x1a7   : > { %v3738_v41 = vpop.f32.mrb[79].mxu1  ;;  %v3780_v59 = vpop.f32.mrb[80].mxu0 }
 0x1a8   : > { %v5649_v16 = vadd.f32 %v3736_v52, %v5555_v55  ;;  %v3739_v49 = vadd.f32 %v3738_v41, %v3737_v56  ;;  %v3781_v57 = vpop.f32.mrb[81].mxu0 }
 0x1a9   : > { %v3782_v0 = vadd.f32 %v3781_v57, %v3780_v59  ;;  %v3783_v12 = vpop.f32.mrb[82].mxu0 }
 0x1aa   : > { %v5652_v10 = vadd.f32 %v3739_v49, %v5560_v42  ;;  %v3784_v58 = vpop.f32.mrb[83].mxu0 }
 0x1ab   : > { %v3785_v38 = vadd.f32 %v3784_v58, %v3783_v12  ;;  %v5655_v31 = vadd.f32 %v3782_v0, %v5575_v30 }
 0x1ad   : > { %v5658_v53 = vadd.f32 %v3785_v38, %v5582_v37 }
 0x1af   : > { %v3786_v15 = vpop.f32.mrb[84].mxu0 }
 0x1b0   : > { %v3787_v33 = vpop.f32.mrb[85].mxu0 }
 0x1b1   : > { %v3788_v1 = vadd.f32 %v3787_v33, %v3786_v15  ;;  %v3789_v55 = vpop.f32.mrb[86].mxu0 }
 0x1b2   : > { %v3790_v47 = vpop.f32.mrb[87].mxu0 }
 0x1b3   : > { %v3791_v44 = vadd.f32 %v3790_v47, %v3789_v55  ;;  %v4062_v40 = vadd.f32 %v3788_v1, %v5571_v3 }
 0x1b5   : > { %v4070_v4 = vadd.f32 %v3791_v44, %v5579_v19 }
 0x1b7   : > { %v3792_v42 = vpop.f32.mrb[88].mxu0 }
 0x1b8   : > { %v3793_v20 = vpop.f32.mrb[89].mxu0 }
 0x1b9   : > { %v3794_v48 = vadd.f32 %v3793_v20, %v3792_v42  ;;  %v3795_v29 = vpop.f32.mrb[90].mxu0 }
 0x1ba   : > { %v3796_v50 = vpop.f32.mrb[91].mxu0 }
 0x1bb   : > { %v3797_v30 = vadd.f32 %v3796_v50, %v3795_v29  ;;  %v5663_v8 = vadd.f32 %v3794_v48, %v5597_v34 }
 0x1bd   : > { %v5666_v37 = vadd.f32 %v3797_v30, %v5604_v18 }
 0x1bf   : > { %v3798_v51 = vpop.f32.mrb[92].mxu0 }
 0x1c0   : > { %v3799_v5 = vpop.f32.mrb[93].mxu0 }
 0x1c1   : > { %v3800_v7 = vadd.f32 %v3799_v5, %v3798_v51  ;;  %v3801_v43 = vpop.f32.mrb[94].mxu0 }
 0x1c2   : > { %v3802_v32 = vpop.f32.mrb[95].mxu0 }
 0x1c3   : > { %v3803_v3 = vadd.f32 %v3802_v32, %v3801_v43  ;;  %v5669_v19 = vadd.f32 %v3800_v7, %v5593_v46 }
 0x1c5   : > { %v5672_v21 = vadd.f32 %v3803_v3, %v5601_v22 }
 0x1c7   : > { %v3804_v52 = vpop.f32.mrb[96].mxu0 }
 0x1c8   : > { %v3805_v56 = vpop.f32.mrb[97].mxu0 }
 0x1c9   : > { %v3806_v41 = vadd.f32 %v3805_v56, %v3804_v52  ;;  %v3807_v34 = vpop.f32.mrb[98].mxu0 }
 0x1ca   : > { %v3808_v59 = vpop.f32.mrb[99].mxu0 }
 0x1cb   : > { %v3809_v49 = vadd.f32 %v3808_v59, %v3807_v34  ;;  %v5675_v18 = vadd.f32 %v3806_v41, %v5619_v6 }
 0x1cd   : > { %v5678_v57 = vadd.f32 %v3809_v49, %v5626_v63 }
 0x1cf   : > { %v3810_v0 = vpop.f32.mrb[100].mxu0 }
 0x1d0   : > { %v3811_v12 = vpop.f32.mrb[101].mxu0 }
 0x1d1   : > { %v3812_v58 = vadd.f32 %v3811_v12, %v3810_v0  ;;  %v3813_v46 = vpop.f32.mrb[102].mxu0 }
 0x1d2   : > { %v3814_v38 = vpop.f32.mrb[103].mxu0 }
 0x1d3   : > { %v3815_v15 = vadd.f32 %v3814_v38, %v3813_v46  ;;  %v5681_v22 = vadd.f32 %v3812_v58, %v5615_v17 }
 0x1d5   : > { %v5684_v33 = vadd.f32 %v3815_v15, %v5623_v13 }
 0x1d7   : > { %v3816_v1 = vpop.f32.mrb[104].mxu0 }
 0x1d8   : > { %v3817_v55 = vpop.f32.mrb[105].mxu0 }
 0x1d9   : > { %v3818_v47 = vadd.f32 %v3817_v55, %v3816_v1  ;;  %v3819_v6 = vpop.f32.mrb[106].mxu0 }
 0x1da   : > { %v3820_v44 = vpop.f32.mrb[107].mxu0 }
 0x1db   : > { %v3821_v42 = vadd.f32 %v3820_v44, %v3819_v6  ;;  %v5687_v63 = vadd.f32 %v3818_v47, %v5641_v60 }
 0x1dd   : > { %v5689_v20 = vadd.f32 %v3821_v42, %v1605_v62 }
 0x1df   : > { %v3822_v48 = vpop.f32.mrb[108].mxu0 }
 0x1e0   : > { %v3823_v29 = vpop.f32.mrb[109].mxu0 }
 0x1e1   : > { %v3824_v50 = vadd.f32 %v3823_v29, %v3822_v48  ;;  %v3825_v30 = vpop.f32.mrb[110].mxu0 }
 0x1e2   : > { %v3826_v17 = vpop.f32.mrb[111].mxu0 }
 0x1e3   : > { %v3827_v51 = vadd.f32 %v3826_v17, %v3825_v30  ;;  %v5692_v13 = vadd.f32 %v3824_v50, %v5637_v39 }
 0x1e5   : > { %v5695_v5 = vadd.f32 %v3827_v51, %v5645_v11 }
 0x1e7   : > { %v3828_v7 = vpop.f32.mrb[112].mxu0 }
 0x1e8   : > { %v3829_v43 = vpop.f32.mrb[113].mxu0 }
 0x1e9   : > { %v3830_v32 = vadd.f32 %v3829_v43, %v3828_v7  ;;  %v3831_v60 = vpop.f32.mrb[114].mxu0 }
 0x1ea   : > { %v3832_v3 = vpop.f32.mrb[115].mxu0 }
 0x1eb   : > { %v3833_v62 = vadd.f32 %v3832_v3, %v3831_v60  ;;  %v5698_v52 = vadd.f32 %v5537_v36, %v3830_v32 }
 0x1ec   : > { %v4014_v56 = vpop.f32.mrb[80].mxu1 }
 0x1ed   : > { %v4063_v41 = vadd.f32 %v4062_v40, %v4014_v56  ;;  %v2278_v34 = vpop.f32.mrb[81].mxu1  ;;  %v5701_v59 = vadd.f32 %v5541_v24, %v3833_v62 }
 0x1ee   : > { %v4067_v39 = vadd.f32 %v5655_v31, %v2278_v34  ;;  %v4015_v11 = vpop.f32.mrb[82].mxu1 }
 0x1ef   : > { %v4071_v49 = vadd.f32 %v4070_v4, %v4015_v11  ;;  %v2281_v0 = vpop.f32.mrb[83].mxu1  ;;  %v3834_v12 = vpop.f32.mrb[116].mxu0  ;;  %v2637_v6 = vmul.f32 %v4063_v41, %v4063_v41 }
 0x1f0   : > { %v4075_v36 = vadd.f32 %v5658_v53, %v2281_v0  ;;  %v3835_v40 = vpop.f32.mrb[117].mxu0  ;;  %v2635_v38 = vmul.f32 %v4067_v39, %v4067_v39 }
 0x1f1   : > { %v3114_v58 = vpack.c.bf16 %v4071_v49, %v4063_v41  ;;  %v3836_v24 = vadd.f32 %v3835_v40, %v3834_v12  ;;  %v3837_v46 = vpop.f32.mrb[118].mxu0  ;;  %v2638_v30 = vmul.f32 %v4071_v49, %v4071_v49 }
 0x1f2   : > { %v3109_v31 = vpack.c.bf16 %v4075_v36, %v4067_v39  ;;  %v2597_v15 = vadd.f32 %v4075_v36, %v4067_v39  ;;  %v2636_v4 = vmul.f32 %v4075_v36, %v4075_v36  ;;  %v3838_v1 = vpop.f32.mrb[119].mxu0 }
 0x1f3   : > { %3201 = vst [vmem:[%s5709_s20 + $0x8] sm:$0xff] %v3114_v58   ;;  %v3839_v55 = vadd.f32 %v3838_v1, %v3837_v46  ;;  %v5714_v47 = vadd.f32 %v5545_v14, %v3836_v24 }
 0x1f4   : > { %3110 = vst [vmem:[%s5709_s20] sm:$0xff] %v3109_v31   ;;  %v2598_v44 = vadd.f32 %v4063_v41, %v2597_v15  ;;  %v2667_v42 = vadd.f32 %v2636_v4, %v2635_v38  ;;  %v4018_v48 = vpop.f32.mrb[84].mxu1 }
 0x1f5   : > { %v4079_v53 = vadd.f32 %v5669_v19, %v4018_v48  ;;  %v2294_v29 = vpop.f32.mrb[85].mxu1  ;;  %v5719_v50 = vadd.f32 %v5549_v28, %v3839_v55 }
 0x1f6   : > { %v2668_v17 = vadd.f32 %v2667_v42, %v2637_v6  ;;  %v4083_v51 = vadd.f32 %v5663_v8, %v2294_v29  ;;  %v2599_v7 = vadd.f32 %v4071_v49, %v2598_v44  ;;  %v4019_v43 = vpop.f32.mrb[86].mxu1 }
 0x1f7   : > { %v4087_v14 = vadd.f32 %v5672_v21, %v4019_v43  ;;  %v2297_v32 = vpop.f32.mrb[87].mxu1  ;;  %v3840_v60 = vpop.f32.mrb[120].mxu0  ;;  %v2641_v40 = vmul.f32 %v4079_v53, %v4079_v53 }
 0x1f8   : > { %v2600_v3 = vadd.f32 %v4083_v51, %v2599_v7  ;;  %v2639_v62 = vmul.f32 %v4083_v51, %v4083_v51  ;;  %v2669_v56 = vadd.f32 %v2668_v17, %v2638_v30  ;;  %v4091_v19 = vadd.f32 %v5666_v37, %v2297_v32  ;;  %v3841_v41 = vpop.f32.mrb[121].mxu0 }
 0x1f9   : > { %v3124_v28 = vpack.c.bf16 %v4087_v14, %v4079_v53  ;;  %v3842_v34 = vadd.f32 %v3841_v41, %v3840_v60  ;;  %v3843_v39 = vpop.f32.mrb[122].mxu0  ;;  %v2642_v15 = vmul.f32 %v4087_v14, %v4087_v14 }
 0x1fa   : > { %v2670_v11 = vadd.f32 %v2669_v56, %v2639_v62  ;;  %v3119_v0 = vpack.c.bf16 %v4091_v19, %v4083_v51  ;;  %v2601_v8 = vadd.f32 %v4091_v19, %v2600_v3  ;;  %v2640_v49 = vmul.f32 %v4091_v19, %v4091_v19  ;;  %v3844_v12 = vpop.f32.mrb[123].mxu0 }
 0x1fb   : > { %3203 = vst [vmem:[%s5709_s20 + $0x18] sm:$0xff] %v3124_v28   ;;  %v3845_v21 = vadd.f32 %v3844_v12, %v3843_v39  ;;  %v5726_v36 = vadd.f32 %v5553_v27, %v3842_v34 }
 0x1fc   : > { %3202 = vst [vmem:[%s5709_s20 + $0x10] sm:$0xff] %v3119_v0   ;;  %v2602_v58 = vadd.f32 %v4079_v53, %v2601_v8  ;;  %v2671_v24 = vadd.f32 %v2670_v11, %v2640_v49  ;;  %v4022_v46 = vpop.f32.mrb[88].mxu1 }
 0x1fd   : > { %v4095_v37 = vadd.f32 %v5681_v22, %v4022_v46  ;;  %v2310_v38 = vpop.f32.mrb[89].mxu1  ;;  %v5731_v31 = vadd.f32 %v5558_v9, %v3845_v21 }
 0x1fe   : > { %v2672_v4 = vadd.f32 %v2671_v24, %v2641_v40  ;;  %v4099_v1 = vadd.f32 %v5675_v18, %v2310_v38  ;;  %v2603_v55 = vadd.f32 %v4087_v14, %v2602_v58  ;;  %v4023_v6 = vpop.f32.mrb[90].mxu1 }
 0x1ff   : > { %v4103_v27 = vadd.f32 %v5684_v33, %v4023_v6  ;;  %v2313_v44 = vpop.f32.mrb[91].mxu1  ;;  %v3846_v42 = vpop.f32.mrb[124].mxu0  ;;  %v2645_v3 = vmul.f32 %v4095_v37, %v4095_v37 }
 0x200   : > { %v2604_v48 = vadd.f32 %v4099_v1, %v2603_v55  ;;  %v2643_v53 = vmul.f32 %v4099_v1, %v4099_v1  ;;  %v2673_v29 = vadd.f32 %v2672_v4, %v2642_v15  ;;  %v4107_v22 = vadd.f32 %v5678_v57, %v2313_v44  ;;  %v3847_v30 = vpop.f32.mrb[125].mxu0 }
 0x201   : > { %v3134_v9 = vpack.c.bf16 %v4103_v27, %v4095_v37  ;;  %v3848_v17 = vadd.f32 %v3847_v30, %v3846_v42  ;;  %v3849_v51 = vpop.f32.mrb[126].mxu0  ;;  %v2646_v34 = vmul.f32 %v4103_v27, %v4103_v27 }
 0x202   : > { %v2674_v7 = vadd.f32 %v2673_v29, %v2643_v53  ;;  %v3129_v43 = vpack.c.bf16 %v4107_v22, %v4099_v1  ;;  %v2605_v18 = vadd.f32 %v4107_v22, %v2604_v48  ;;  %v2644_v14 = vmul.f32 %v4107_v22, %v4107_v22  ;;  %v3850_v32 = vpop.f32.mrb[127].mxu0 }
 0x203   : > { %3205 = vst [vmem:[%s5709_s20 + $0x28] sm:$0xff] %v3134_v9   ;;  %v3851_v33 = vadd.f32 %v3850_v32, %v3849_v51  ;;  %v5738_v60 = vadd.f32 %v5563_v23, %v3848_v17 }
 0x204   : > { %3204 = vst [vmem:[%s5709_s20 + $0x20] sm:$0xff] %v3129_v43   ;;  %v2606_v62 = vadd.f32 %v4095_v37, %v2605_v18  ;;  %v2675_v56 = vadd.f32 %v2674_v7, %v2644_v14  ;;  %v4026_v19 = vpop.f32.mrb[92].mxu1 }
 0x205   : > { %v4111_v57 = vadd.f32 %v5692_v13, %v4026_v19  ;;  %v2326_v41 = vpop.f32.mrb[93].mxu1  ;;  %v5743_v28 = vadd.f32 %v5568_v54, %v3851_v33 }
 0x206   : > { %v2676_v39 = vadd.f32 %v2675_v56, %v2645_v3  ;;  %v4115_v11 = vadd.f32 %v5687_v63, %v2326_v41  ;;  %v2607_v0 = vadd.f32 %v4103_v27, %v2606_v62  ;;  %v4027_v8 = vpop.f32.mrb[94].mxu1 }
 0x207   : > { %v4119_v23 = vadd.f32 %v5695_v5, %v4027_v8  ;;  %v2329_v49 = vpop.f32.mrb[95].mxu1  ;;  %v3852_v12 = vpop.f32.mrb[128].mxu0  ;;  %v2649_v6 = vmul.f32 %v4111_v57, %v4111_v57 }
 0x208   : > { %v2608_v21 = vadd.f32 %v4115_v11, %v2607_v0  ;;  %v2647_v40 = vmul.f32 %v4115_v11, %v4115_v11  ;;  %v2677_v58 = vadd.f32 %v2676_v39, %v2646_v34  ;;  %v4123_v13 = vadd.f32 %v5689_v20, %v2329_v49  ;;  %v3853_v24 = vpop.f32.mrb[129].mxu0 }
 0x209   : > { %v3144_v54 = vpack.c.bf16 %v4119_v23, %v4111_v57  ;;  %v3854_v46 = vadd.f32 %v3853_v24, %v3852_v12  ;;  %v3855_v37 = vpop.f32.mrb[130].mxu0  ;;  %v2650_v29 = vmul.f32 %v4119_v23, %v4119_v23 }
 0x20a   : > { %v2678_v38 = vadd.f32 %v2677_v58, %v2647_v40  ;;  %v3139_v15 = vpack.c.bf16 %v4123_v13, %v4115_v11  ;;  %v2609_v63 = vadd.f32 %v4123_v13, %v2608_v21  ;;  %v2648_v4 = vmul.f32 %v4123_v13, %v4123_v13  ;;  %v3856_v1 = vpop.f32.mrb[131].mxu0 }
 0x20b   : > { %3207 = vst [vmem:[%s5709_s20 + $0x38] sm:$0xff] %v3144_v54   ;;  %v3857_v5 = vadd.f32 %v3856_v1, %v3855_v37  ;;  %v5750_v55 = vadd.f32 %v5585_v35, %v3854_v46 }
 0x20c   : > { %3206 = vst [vmem:[%s5709_s20 + $0x30] sm:$0xff] %v3139_v15   ;;  %v2610_v27 = vadd.f32 %v4111_v57, %v2609_v63  ;;  %v2679_v44 = vadd.f32 %v2678_v38, %v2648_v4  ;;  %v4030_v42 = vpop.f32.mrb[0].mxu1 }
 0x20d   : > { %v4126_v20 = vadd.f32 %v5714_v47, %v4030_v42  ;;  %v2342_v48 = vpop.f32.mrb[1].mxu1  ;;  %v5755_v53 = vadd.f32 %v5590_v2, %v3857_v5 }
 0x20e   : > { %v2680_v22 = vadd.f32 %v2679_v44, %v2649_v6  ;;  %v4129_v30 = vadd.f32 %v5698_v52, %v2342_v48  ;;  %v2611_v9 = vadd.f32 %v4119_v23, %v2610_v27  ;;  %v4031_v17 = vpop.f32.mrb[2].mxu1 }
 0x20f   : > { %v4132_v35 = vadd.f32 %v5719_v50, %v4031_v17  ;;  %v2345_v51 = vpop.f32.mrb[3].mxu1  ;;  %v3858_v7 = vpop.f32.mrb[132].mxu0  ;;  %v2653_v34 = vmul.f32 %v4126_v20, %v4126_v20 }
 0x210   : > { %v2612_v43 = vadd.f32 %v4129_v30, %v2611_v9  ;;  %v2651_v18 = vmul.f32 %v4129_v30, %v4129_v30  ;;  %v2681_v14 = vadd.f32 %v2680_v22, %v2650_v29  ;;  %v4135_v47 = vadd.f32 %v5701_v59, %v2345_v51  ;;  %v3859_v32 = vpop.f32.mrb[133].mxu0 }
 0x211   : > { %v3154_v2 = vpack.c.bf16 %v4132_v35, %v4126_v20  ;;  %v3860_v33 = vadd.f32 %v3859_v32, %v3858_v7  ;;  %v3861_v3 = vpop.f32.mrb[134].mxu0  ;;  %v2654_v49 = vmul.f32 %v4132_v35, %v4132_v35 }
 0x212   : > { %v2682_v62 = vadd.f32 %v2681_v14, %v2651_v18  ;;  %v3149_v56 = vpack.c.bf16 %v4135_v47, %v4129_v30  ;;  %v2613_v52 = vadd.f32 %v4135_v47, %v2612_v43  ;;  %v2652_v19 = vmul.f32 %v4135_v47, %v4135_v47  ;;  %v3862_v57 = vpop.f32.mrb[135].mxu0 }
 0x213   : > { %3209 = vst [vmem:[%s5709_s20 + $0x48] sm:$0xff] %v3154_v2   ;;  %v3863_v50 = vadd.f32 %v3862_v57, %v3861_v3  ;;  %v4149_v41 = vadd.f32 %v5607_v61, %v3860_v33 }
 0x214   : > { %3208 = vst [vmem:[%s5709_s20 + $0x40] sm:$0xff] %v3149_v56   ;;  %v2614_v39 = vadd.f32 %v4126_v20, %v2613_v52  ;;  %v2683_v11 = vadd.f32 %v2682_v62, %v2652_v19  ;;  %v4034_v0 = vpop.f32.mrb[4].mxu1 }
 0x215   : > { %v4138_v59 = vadd.f32 %v5738_v60, %v4034_v0  ;;  %v2358_v8 = vpop.f32.mrb[5].mxu1  ;;  %v4155_v23 = vadd.f32 %v5612_v25, %v3863_v50 }
 0x216   : > { %v2684_v12 = vadd.f32 %v2683_v11, %v2653_v34  ;;  %v4141_v21 = vadd.f32 %v5726_v36, %v2358_v8  ;;  %v2615_v40 = vadd.f32 %v4132_v35, %v2614_v39  ;;  %v4035_v58 = vpop.f32.mrb[6].mxu1 }
 0x217   : > { %v4144_v13 = vadd.f32 %v5743_v28, %v4035_v58  ;;  %v2361_v61 = vpop.f32.mrb[7].mxu1  ;;  %v3864_v24 = vpop.f32.mrb[136].mxu0  ;;  %v2657_v44 = vmul.f32 %v4138_v59, %v4138_v59 }
 0x218   : > { %v2616_v54 = vadd.f32 %v4141_v21, %v2615_v40  ;;  %v2655_v46 = vmul.f32 %v4141_v21, %v4141_v21  ;;  %v2685_v37 = vadd.f32 %v2684_v12, %v2654_v49  ;;  %v4147_v60 = vadd.f32 %v5731_v31, %v2361_v61  ;;  %v3865_v38 = vpop.f32.mrb[137].mxu0 }
 0x219   : > { %v3164_v15 = vpack.c.bf16 %v4144_v13, %v4138_v59  ;;  %v3866_v25 = vadd.f32 %v3865_v38, %v3864_v24  ;;  %v3867_v63 = vpop.f32.mrb[138].mxu0  ;;  %v2658_v30 = vmul.f32 %v4144_v13, %v4144_v13 }
 0x21a   : > { %v2686_v4 = vadd.f32 %v2685_v37, %v2655_v46  ;;  %v3159_v1 = vpack.c.bf16 %v4147_v60, %v4141_v21  ;;  %v2617_v36 = vadd.f32 %v4147_v60, %v2616_v54  ;;  %v2656_v5 = vmul.f32 %v4147_v60, %v4147_v60  ;;  %v3868_v6 = vpop.f32.mrb[139].mxu0 }
 0x21b   : > { %3211 = vst [vmem:[%s5709_s20 + $0x58] sm:$0xff] %v3164_v15   ;;  %v3869_v28 = vadd.f32 %v3868_v6, %v3867_v63  ;;  %v4164_v27 = vadd.f32 %v5629_v26, %v3866_v25 }
 0x21c   : > { %3210 = vst [vmem:[%s5709_s20 + $0x50] sm:$0xff] %v3159_v1   ;;  %v2618_v42 = vadd.f32 %v4138_v59, %v2617_v36  ;;  %v2687_v20 = vadd.f32 %v2686_v4, %v2656_v5  ;;  %v4038_v48 = vpop.f32.mrb[8].mxu1 }
 0x21d   : > { %v4150_v29 = vadd.f32 %v4149_v41, %v4038_v48  ;;  %v2374_v31 = vpop.f32.mrb[9].mxu1  ;;  %v4170_v22 = vadd.f32 %v5634_v45, %v3869_v28 }
 0x21e   : > { %v2688_v9 = vadd.f32 %v2687_v20, %v2657_v44  ;;  %v4153_v17 = vadd.f32 %v5750_v55, %v2374_v31  ;;  %v2619_v35 = vadd.f32 %v4144_v13, %v2618_v42  ;;  %v4039_v51 = vpop.f32.mrb[10].mxu1 }
 0x21f   : > { %v4156_v7 = vadd.f32 %v4155_v23, %v4039_v51  ;;  %v2377_v43 = vpop.f32.mrb[11].mxu1  ;;  %v3870_v18 = vpop.f32.mrb[140].mxu0  ;;  %v2661_v41 = vmul.f32 %v4150_v29, %v4150_v29 }
 0x220   : > { %v2620_v26 = vadd.f32 %v4153_v17, %v2619_v35  ;;  %v2659_v14 = vmul.f32 %v4153_v17, %v4153_v17  ;;  %v2689_v47 = vadd.f32 %v2688_v9, %v2658_v30  ;;  %v4159_v32 = vadd.f32 %v5755_v53, %v2377_v43  ;;  %v3871_v2 = vpop.f32.mrb[141].mxu0 }
 0x221   : > { %v3174_v33 = vpack.c.bf16 %v4156_v7, %v4150_v29  ;;  %v3872_v3 = vadd.f32 %v3871_v2, %v3870_v18  ;;  %v3873_v45 = vpop.f32.mrb[142].mxu0  ;;  %v2662_v8 = vmul.f32 %v4156_v7, %v4156_v7 }
 0x222   : > { %v2690_v62 = vadd.f32 %v2689_v47, %v2659_v14  ;;  %v3169_v56 = vpack.c.bf16 %v4159_v32, %v4153_v17  ;;  %v2621_v52 = vadd.f32 %v4159_v32, %v2620_v26  ;;  %v2660_v55 = vmul.f32 %v4159_v32, %v4159_v32  ;;  %v3874_v19 = vpop.f32.mrb[143].mxu0 }
 0x223   : > { %3213 = vst [vmem:[%s5709_s20 + $0x68] sm:$0xff] %v3174_v33   ;;  %v4161_v57 = vadd.f32 %v5649_v16, %v3872_v3  ;;  %v3875_v50 = vadd.f32 %v3874_v19, %v3873_v45 }
 0x224   : > { %3212 = vst [vmem:[%s5709_s20 + $0x60] sm:$0xff] %v3169_v56   ;;  %v2622_v34 = vadd.f32 %v4150_v29, %v2621_v52  ;;  %v2691_v39 = vadd.f32 %v2690_v62, %v2660_v55  ;;  %v4042_v11 = vpop.f32.mrb[12].mxu1 }
 0x225   : > { %v4162_v0 = vadd.f32 %v4161_v57, %v4042_v11  ;;  %v2390_v53 = vpop.f32.mrb[13].mxu1  ;;  %v4167_v59 = vadd.f32 %v5652_v10, %v3875_v50 }
 0x226   : > { %v2692_v23 = vadd.f32 %v2691_v39, %v2661_v41  ;;  %v4165_v49 = vadd.f32 %v4164_v27, %v2390_v53  ;;  %v2623_v12 = vadd.f32 %v4156_v7, %v2622_v34  ;;  %v4043_v21 = vpop.f32.mrb[14].mxu1 }
 0x227   : > { %v4168_v40 = vadd.f32 %v4167_v59, %v4043_v21  ;;  %v2393_v58 = vpop.f32.mrb[15].mxu1  ;;  %v2665_v54 = vmul.f32 %v4162_v0, %v4162_v0 }
 0x228   : > { %v2624_v16 = vadd.f32 %v4165_v49, %v2623_v12  ;;  %v2663_v13 = vmul.f32 %v4165_v49, %v4165_v49  ;;  %v2693_v61 = vadd.f32 %v2692_v23, %v2662_v8  ;;  %v4171_v24 = vadd.f32 %v4170_v22, %v2393_v58 }
 0x229   : > { %v3184_v46 = vpack.c.bf16 %v4168_v40, %v4162_v0  ;;  %v2666_v10 = vmul.f32 %v4168_v40, %v4168_v40 }
 0x22a   : > { %v2694_v37 = vadd.f32 %v2693_v61, %v2663_v13  ;;  %v3179_v60 = vpack.c.bf16 %v4171_v24, %v4165_v49  ;;  %v2625_v38 = vadd.f32 %v4171_v24, %v2624_v16  ;;  %v2664_v15 = vmul.f32 %v4171_v24, %v4171_v24 }
 0x22b   : > { %3215 = vst [vmem:[%s5709_s20 + $0x78] sm:$0xff] %v3184_v46  }
 0x22c   : > { %3214 = vst [vmem:[%s5709_s20 + $0x70] sm:$0xff] %v3179_v60   ;;  %v2626_v25 = vadd.f32 %v4162_v0, %v2625_v38  ;;  %v2695_v63 = vadd.f32 %v2694_v37, %v2664_v15 }
 0x22e   : > { %v2627_v4 = vadd.f32 %v4168_v40, %v2626_v25  ;;  %v2696_v1 = vadd.f32 %v2695_v63, %v2665_v54 }
 0x230   : > { %v2628_v36 = vrot.slane %v2627_v4, 4  ;;  %v2697_v5 = vadd.f32 %v2696_v1, %v2666_v10 }
 0x232   : > { %v2629_v6 = vadd.f32 %v2628_v36, %v2627_v4  ;;  %v2698_v28 = vrot.slane %v2697_v5, 4 }
 0x234   : > { %v2630_v27 = vrot.slane %v2629_v6, 2  ;;  %v2699_v44 = vadd.f32 %v2698_v28, %v2697_v5 }
 0x236   : > { %v2631_v42 = vadd.f32 %v2630_v27, %v2629_v6  ;;  %v2700_v20 = vrot.slane %v2699_v44, 2 }
 0x238   : > { %v2632_v48 = vrot.slane %v2631_v42, 1  ;;  %v2701_v29 = vadd.f32 %v2700_v20, %v2699_v44 }
 0x23a   : > { %v2702_v31 = vrot.slane %v2701_v29, 1  ;;  %v2633_v22 = vadd.f32 %v2632_v48, %v2631_v42 }
 0x23c   : > { %v2703_v30 = vadd.f32 %v2702_v31, %v2701_v29 }
 0x23e   : > { %v2706_v9 = vsel %vm2705_vm7, %v2633_v22, %v2703_v30 }
 0x23f   : > { %2707 = vst [vmem:[%s235_s23] sm:$0x3] %v2706_v9 }
 0x240 PF: > { %s16_s18 = sadd.s32 1, %s4308_s18  }
 0x241   : > { %p13_p4 = scmp.ge.s32.totalorder %s16_s18, 4  }
 0x243   :  { %15 = sbr.rel (!%p13_p4) target bundleno = 1 (0x1), region = 83 }

</bundles_post_ra>
